<compile_context>
chip_gen: v7x
topology: tpu7x:2x2x1
jax: 0.10.0
libtpu: 0.0.40
codegen_flags: <defaults>
</compile_context>

<pallas_src>
import functools

import jax
import jax.numpy as jnp
from jax.experimental import pallas as pl
from jax.experimental.pallas import tpu as pltpu

BN_EPS = 1e-5
LANE = 128


def _round_up(x, m):
    return ((x + m - 1) // m) * m


def _vmem_spec():
    return pl.BlockSpec(memory_space=pltpu.MemorySpace.VMEM)


# ---------------------------------------------------------------------------
# Fused kernel: [GINConv(MLP) -> ReLU -> BatchNorm1d] x L -> pool -> proj_head
# ---------------------------------------------------------------------------
def _fused_forward_kernel(n_nodes, num_layers, *refs):
    ahat_ref, pool_ref, x_ref = refs[:3]
    layer_refs = refs[3:3 + 7 * num_layers]          # per layer: w1,b1,w2,b2,gamma,beta,wp1_blk
    bp1_ref, wp2_ref, bp2_ref = refs[3 + 7 * num_layers:3 + 7 * num_layers + 3]
    out_ref = refs[-1]

    bf16 = jnp.bfloat16
    f32 = jnp.float32

    ahat = ahat_ref[...]            # [N_pad, N_pad]  bf16, A_hat = I + A (padded cols/rows = 0)
    pool = pool_ref[...]            # [G_pad, N_pad]  bf16, P[g, n] = 1 iff batch[n] == g
    h_bf = x_ref[...]               # [N_pad, F_pad]  bf16 node features (already bf16)
    n_pad = ahat.shape[0]
    g_rows = pool.shape[0]
    e_pad = bp1_ref.shape[1]
    inv_n = 1.0 / n_nodes

    # Validity mask over node rows (padded rows excluded from BN statistics); computed once,
    # keeps everything tile-aligned (no sublane-unaligned slices).
    row_idx = jax.lax.broadcasted_iota(jnp.int32, (n_pad, 1), 0)
    mask = (row_idx < n_nodes).astype(f32)

    # Accumulator for the proj_head first Linear (replaces concat(y_parts) @ wp1).
    z_acc = jnp.zeros((g_rows, e_pad), f32)

    for l in range(num_layers):
        w1, b1, w2, b2, gamma, beta, wp1 = layer_refs[7 * l:7 * l + 7]

        # GINConv (eps=0): aggregate = (I + A) @ h, then internal MLP Linear -> ReLU -> Linear
        agg = jnp.dot(ahat, h_bf, preferred_element_type=f32)
        t = jnp.dot(agg.astype(bf16), w1[...], preferred_element_type=f32) + b1[...]
        t = jnp.maximum(t, 0.0)
        t = jnp.dot(t.astype(bf16), w2[...], preferred_element_type=f32) + b2[...]
        # Encoder: x = F.relu(conv(x)); x = bn(x)
        t = jnp.maximum(t, 0.0)

        # BatchNorm1d, training mode (biased batch variance); single-pass stats over real rows.
        tm = t * mask
        s1 = jnp.sum(tm, axis=0, keepdims=True)
        s2 = jnp.sum(tm * tm, axis=0, keepdims=True)
        mean = s1 * inv_n
        var = jnp.maximum(s2 * inv_n - mean * mean, 0.0)
        scale = gamma[...] * jax.lax.rsqrt(var + BN_EPS)      # [1, H_pad]
        shift = beta[...] - mean * scale                      # [1, H_pad]
        h = t * scale + shift                                 # fused 2-op BN apply

        # Single bf16 cast, reused for the pooling dot AND the next layer's aggregation.
        h_bf = h.astype(bf16)

        # global_add_pool of this layer's node embeddings, immediately consumed by the
        # corresponding row-block of the proj_head first Linear (no concat materialized).
        y_l = jnp.dot(pool, h_bf, preferred_element_type=f32)           # [G_pad, H_pad]
        z_acc = z_acc + jnp.dot(y_l.astype(bf16), wp1[...], preferred_element_type=f32)

    # proj_head: (accumulated Linear 1) -> ReLU -> Linear 2
    z = jnp.maximum(z_acc + bp1_ref[...], 0.0)
    out_ref[...] = jnp.dot(z.astype(bf16), wp2_ref[...], preferred_element_type=f32) + bp2_ref[...]


# ---------------------------------------------------------------------------
# Host wrapper: pad to lane-dense shapes, call the fused kernel once.
# ---------------------------------------------------------------------------
def simclr_forward(params, x, ahat, pool, num_graphs):
    n_nodes, num_features = x.shape
    num_layers = len(params["gin_layers"])
    hidden = params["gin_layers"][0]["w1"].shape[1]
    emb = hidden * num_layers

    n_pad = _round_up(n_nodes, LANE)          # lane-dense A_hat / pooling contraction
    f_pad = _round_up(num_features, LANE)
    h_pad = _round_up(hidden, LANE)
    e_pad = _round_up(emb, LANE)
    g_rows = max(_round_up(pool.shape[0], 8), 8)

    def pad2(a, r, c, dtype):
        out = jnp.zeros((r, c), dtype)
        return out.at[:a.shape[0], :a.shape[1]].set(a.astype(dtype))

    # Padded operands. INVARIANT: padded rows/cols of ahat and pool are exact zeros — this is
    # what masks the bias-propagated garbage in padded node rows out of every contraction.
    ahat_p = pad2(ahat, n_pad, n_pad, jnp.bfloat16)
    pool_p = pad2(pool, g_rows, n_pad, jnp.bfloat16)
    x_p = pad2(x, n_pad, f_pad, jnp.bfloat16)          # bf16 on host: half the DMA bytes for x

    args = [ahat_p, pool_p, x_p]
    for i, layer in enumerate(params["gin_layers"]):
        fin_pad = f_pad if i == 0 else h_pad
        # wp1 row-block for this layer (rows l*hidden:(l+1)*hidden of the proj-1 weight).
        wp1_blk = params["wp1"][i * hidden:(i + 1) * hidden, :]
        args += [
            pad2(layer["w1"], fin_pad, h_pad, jnp.bfloat16),
            pad2(layer["b1"], 1, h_pad, jnp.float32),
            pad2(layer["w2"], h_pad, h_pad, jnp.bfloat16),
            pad2(layer["b2"], 1, h_pad, jnp.float32),
            pad2(layer["gamma"], 1, h_pad, jnp.float32),
            pad2(layer["beta"], 1, h_pad, jnp.float32),
            pad2(wp1_blk, h_pad, e_pad, jnp.bfloat16),
        ]
    args += [
        pad2(params["bp1"], 1, e_pad, jnp.float32),
        pad2(params["wp2"], e_pad, e_pad, jnp.bfloat16),
        pad2(params["bp2"], 1, e_pad, jnp.float32),
    ]

    # Cost estimate (padded shapes).
    flops = 0
    for i in range(num_layers):
        fin_pad = f_pad if i == 0 else h_pad
        flops += 2 * n_pad * n_pad * fin_pad          # aggregation (I + A) @ h
        flops += 2 * n_pad * fin_pad * h_pad          # GIN MLP linear 1
        flops += 2 * n_pad * h_pad * h_pad            # GIN MLP linear 2
        flops += 2 * g_rows * n_pad * h_pad           # pooling of this layer block
        flops += 2 * g_rows * h_pad * e_pad           # proj linear 1 row-block accumulate
    flops += 2 * g_rows * e_pad * e_pad               # proj linear 2
    in_bytes = sum(int(a.size) * a.dtype.itemsize for a in args)
    out_bytes = g_rows * e_pad * 4
    cost = pl.CostEstimate(flops=flops,
                           transcendentals=num_layers * h_pad,
                           bytes_accessed=in_bytes + out_bytes)

    # VMEM budget: real footprint (I/O + live per-layer intermediates) with headroom, clamped
    # to <= 3/4 of the per-core VMEM capacity (v7x: 64 MiB; v5e/v6e: 128 MiB).
    widest = max(f_pad, h_pad)
    per_layer_scratch = n_pad * widest * (4 * 3 + 2 * 2)       # agg/t/h f32 + two bf16 casts
    vmem_needed = in_bytes + out_bytes + 2 * per_layer_scratch + 4 * g_rows * e_pad * 4
    try:
        vmem_cap = int(pltpu.get_tpu_info().vmem_capacity_bytes)
    except Exception:
        vmem_cap = 64 * 1024 * 1024
    vmem_limit = int(min(max(2 * vmem_needed, 32 * 1024 * 1024), (vmem_cap * 3) // 4))

    kernel = functools.partial(_fused_forward_kernel, n_nodes, num_layers)
    out = pl.pallas_call(
        kernel,
        out_shape=jax.ShapeDtypeStruct((g_rows, e_pad), jnp.float32),
        in_specs=[_vmem_spec()] * len(args),
        out_specs=_vmem_spec(),
        compiler_params=pltpu.CompilerParams(vmem_limit_bytes=vmem_limit),
        cost_estimate=cost,
    )(*args)

    return out[:num_graphs, :emb]                      # drop padded graph rows / emb cols (glue)


# ---------------------------------------------------------------------------
# Parameter init (deterministic, mirrors simclr.init_emb: xavier_uniform, bias=0)
# ---------------------------------------------------------------------------
def xavier_uniform(key, fan_in, fan_out):
    bound = (6.0 / (fan_in + fan_out)) ** 0.5
    return jax.random.uniform(key, (fan_in, fan_out), jnp.float32, -bound, bound)


def init_params(key, num_features, hidden_dim, num_gc_layers):
    params = {"gin_layers": []}
    for i in range(num_gc_layers):
        fin = num_features if i == 0 else hidden_dim
        key, k1, k2 = jax.random.split(key, 3)
        params["gin_layers"].append({
            "w1": xavier_uniform(k1, fin, hidden_dim),
            "b1": jnp.zeros((1, hidden_dim), jnp.float32),
            "w2": xavier_uniform(k2, hidden_dim, hidden_dim),
            "b2": jnp.zeros((1, hidden_dim), jnp.float32),
            "gamma": jnp.ones((1, hidden_dim), jnp.float32),   # BatchNorm default weight
            "beta": jnp.zeros((1, hidden_dim), jnp.float32),   # BatchNorm default bias
        })
    emb = hidden_dim * num_gc_layers
    key, k1, k2 = jax.random.split(key, 3)
    params["wp1"] = xavier_uniform(k1, emb, emb)
    params["bp1"] = jnp.zeros((1, emb), jnp.float32)
    params["wp2"] = xavier_uniform(k2, emb, emb)
    params["bp2"] = jnp.zeros((1, emb), jnp.float32)
    return params


# ---------------------------------------------------------------------------
# Pure-JAX reference (same math, same bf16-input / f32-accumulate matmuls, no Pallas).
# ---------------------------------------------------------------------------
def reference_forward(params, x, ahat, pool, num_graphs):
    bf = jnp.bfloat16

    def mm(a, b):
        return jnp.dot(a.astype(bf), b.astype(bf), preferred_element_type=jnp.float32)

    xs = []
    h = x
    for layer in params["gin_layers"]:
        agg = mm(ahat, h)
        t = jnp.maximum(mm(agg, layer["w1"]) + layer["b1"], 0.0)
        t = jnp.maximum(mm(t, layer["w2"]) + layer["b2"], 0.0)
        mean = jnp.mean(t, axis=0, keepdims=True)
        var = jnp.mean((t - mean) ** 2, axis=0, keepdims=True)
        h = (t - mean) * jax.lax.rsqrt(var + BN_EPS) * layer["gamma"] + layer["beta"]
        xs.append(h)
    m = jnp.concatenate(xs, axis=1)
    y = mm(pool, m)
    z = jnp.maximum(mm(y, params["wp1"]) + params["bp1"], 0.0)
    y = mm(z, params["wp2"]) + params["bp2"]
    return y[:num_graphs]


if __name__ == "__main__":
    key = jax.random.PRNGKey(0)

    # Small synthetic graph batch: 2 graphs x 8 nodes, ring topology.
    num_features = 16
    hidden_dim = 32
    num_gc_layers = 3
    nodes_per_graph = 8
    num_graphs = 2
    n = num_graphs * nodes_per_graph     # 16 nodes
    g_pad = 8                            # pad graph count for friendlier tiling

    # node features
    key, kx = jax.random.split(key)
    x = jax.random.normal(kx, (n, num_features), jnp.float32)

    # edge_index (2, E): directed ring edges in both directions per graph
    src, dst = [], []
    for g in range(num_graphs):
        off = g * nodes_per_graph
        for i in range(nodes_per_graph):
            a, b = off + i, off + (i + 1) % nodes_per_graph
            src += [a, b]
            dst += [b, a]
    edge_index = jnp.array([src, dst], dtype=jnp.int32)
    batch = jnp.repeat(jnp.arange(num_graphs, dtype=jnp.int32), nodes_per_graph)

    # Dense GIN aggregation matrix A_hat = I + A (A[dst, src] = 1)   (glue / graph setup)
    adj = jnp.zeros((n, n), jnp.float32).at[edge_index[1], edge_index[0]].add(1.0)
    ahat = adj + jnp.eye(n, dtype=jnp.float32)
    # Pooling matrix P[g, n] = 1 iff batch[n] == g (padded to g_pad rows)
    pool = (batch[None, :] == jnp.arange(g_pad, dtype=jnp.int32)[:, None]).astype(jnp.float32)

    params = init_params(key, num_features, hidden_dim, num_gc_layers)

    y = simclr_forward(params, x, ahat, pool, num_graphs)
    y = jax.block_until_ready(y)

    y_ref = reference_forward(params, x, ahat, pool, num_graphs)
    assert y.shape == (num_graphs, hidden_dim * num_gc_layers)
    assert jnp.allclose(y, y_ref, atol=2e-2, rtol=2e-2), "Pallas output mismatch vs JAX reference"

    print("KERNEL_OK")
</pallas_src>

<mosaic_0001>
module attributes {stable_mosaic.version = 11 : i64} {
  func.func @_fused_forward_kernel(%arg0: memref<128x128xbf16, #tpu.memory_space<vmem>>, %arg1: memref<8x128xbf16, #tpu.memory_space<vmem>>, %arg2: memref<128x128xbf16, #tpu.memory_space<vmem>>, %arg3: memref<128x128xbf16, #tpu.memory_space<vmem>>, %arg4: memref<1x128xf32, #tpu.memory_space<vmem>>, %arg5: memref<128x128xbf16, #tpu.memory_space<vmem>>, %arg6: memref<1x128xf32, #tpu.memory_space<vmem>>, %arg7: memref<1x128xf32, #tpu.memory_space<vmem>>, %arg8: memref<1x128xf32, #tpu.memory_space<vmem>>, %arg9: memref<128x128xbf16, #tpu.memory_space<vmem>>, %arg10: memref<128x128xbf16, #tpu.memory_space<vmem>>, %arg11: memref<1x128xf32, #tpu.memory_space<vmem>>, %arg12: memref<128x128xbf16, #tpu.memory_space<vmem>>, %arg13: memref<1x128xf32, #tpu.memory_space<vmem>>, %arg14: memref<1x128xf32, #tpu.memory_space<vmem>>, %arg15: memref<1x128xf32, #tpu.memory_space<vmem>>, %arg16: memref<128x128xbf16, #tpu.memory_space<vmem>>, %arg17: memref<128x128xbf16, #tpu.memory_space<vmem>>, %arg18: memref<1x128xf32, #tpu.memory_space<vmem>>, %arg19: memref<128x128xbf16, #tpu.memory_space<vmem>>, %arg20: memref<1x128xf32, #tpu.memory_space<vmem>>, %arg21: memref<1x128xf32, #tpu.memory_space<vmem>>, %arg22: memref<1x128xf32, #tpu.memory_space<vmem>>, %arg23: memref<128x128xbf16, #tpu.memory_space<vmem>>, %arg24: memref<1x128xf32, #tpu.memory_space<vmem>>, %arg25: memref<128x128xbf16, #tpu.memory_space<vmem>>, %arg26: memref<1x128xf32, #tpu.memory_space<vmem>>, %arg27: memref<8x128xf32, #tpu.memory_space<vmem>>) attributes {dimension_semantics = [], scalar_prefetch = 0 : i64, scratch_operands = 0 : i64, tpu.core_type = #tpu.core_type<tc>} {
    %c0 = arith.constant 0 : index
    %c0_0 = arith.constant 0 : index
    %0 = vector.load %arg0[%c0, %c0_0] : memref<128x128xbf16, #tpu.memory_space<vmem>>, vector<128x128xbf16>
    %c0_1 = arith.constant 0 : index
    %c0_2 = arith.constant 0 : index
    %1 = vector.load %arg1[%c0_1, %c0_2] : memref<8x128xbf16, #tpu.memory_space<vmem>>, vector<8x128xbf16>
    %c0_3 = arith.constant 0 : index
    %c0_4 = arith.constant 0 : index
    %2 = vector.load %arg2[%c0_3, %c0_4] : memref<128x128xbf16, #tpu.memory_space<vmem>>, vector<128x128xbf16>
    %3 = tpu.iota {dimensions = array<i32: 0>} : vector<128x1xi32>
    %c16_i32 = arith.constant 16 : i32
    %4 = vector.broadcast %c16_i32 : i32 to vector<128x1xi32>
    %5 = arith.cmpi slt, %3, %4 : vector<128x1xi32>
    %6 = arith.extui %5 : vector<128x1xi1> to vector<128x1xi32>
    %7 = arith.sitofp %6 : vector<128x1xi32> to vector<128x1xf32>
    %cst = arith.constant 0.000000e+00 : f32
    %8 = vector.broadcast %cst : f32 to vector<8x128xf32>
    %cst_5 = arith.constant dense<0.000000e+00> : vector<128x128xf32>
    %9 = tpu.matmul %0, %2, %cst_5 {dimension_numbers = #tpu.dot_dimension_numbers<[1], [0], [0], [1], [0, 0, 1, 1], [], []>} : vector<128x128xbf16>, vector<128x128xbf16>, vector<128x128xf32> -> vector<128x128xf32>
    %10 = arith.truncf %9 : vector<128x128xf32> to vector<128x128xbf16>
    %c0_6 = arith.constant 0 : index
    %c0_7 = arith.constant 0 : index
    %11 = vector.load %arg3[%c0_6, %c0_7] : memref<128x128xbf16, #tpu.memory_space<vmem>>, vector<128x128xbf16>
    %cst_8 = arith.constant dense<0.000000e+00> : vector<128x128xf32>
    %12 = tpu.matmul %10, %11, %cst_8 {dimension_numbers = #tpu.dot_dimension_numbers<[1], [0], [0], [1], [0, 0, 1, 1], [], []>} : vector<128x128xbf16>, vector<128x128xbf16>, vector<128x128xf32> -> vector<128x128xf32>
    %c0_9 = arith.constant 0 : index
    %c0_10 = arith.constant 0 : index
    %13 = vector.load %arg4[%c0_9, %c0_10] : memref<1x128xf32, #tpu.memory_space<vmem>>, vector<1x128xf32>
    %14 = vector.broadcast %13 : vector<1x128xf32> to vector<128x128xf32>
    %15 = arith.addf %12, %14 : vector<128x128xf32>
    %cst_11 = arith.constant 0.000000e+00 : f32
    %16 = vector.broadcast %cst_11 : f32 to vector<128x128xf32>
    %17 = arith.maximumf %15, %16 : vector<128x128xf32>
    %18 = arith.truncf %17 : vector<128x128xf32> to vector<128x128xbf16>
    %c0_12 = arith.constant 0 : index
    %c0_13 = arith.constant 0 : index
    %19 = vector.load %arg5[%c0_12, %c0_13] : memref<128x128xbf16, #tpu.memory_space<vmem>>, vector<128x128xbf16>
    %cst_14 = arith.constant dense<0.000000e+00> : vector<128x128xf32>
    %20 = tpu.matmul %18, %19, %cst_14 {dimension_numbers = #tpu.dot_dimension_numbers<[1], [0], [0], [1], [0, 0, 1, 1], [], []>} : vector<128x128xbf16>, vector<128x128xbf16>, vector<128x128xf32> -> vector<128x128xf32>
    %c0_15 = arith.constant 0 : index
    %c0_16 = arith.constant 0 : index
    %21 = vector.load %arg6[%c0_15, %c0_16] : memref<1x128xf32, #tpu.memory_space<vmem>>, vector<1x128xf32>
    %22 = vector.broadcast %21 : vector<1x128xf32> to vector<128x128xf32>
    %23 = arith.addf %20, %22 : vector<128x128xf32>
    %cst_17 = arith.constant 0.000000e+00 : f32
    %24 = vector.broadcast %cst_17 : f32 to vector<128x128xf32>
    %25 = arith.maximumf %23, %24 : vector<128x128xf32>
    %26 = vector.broadcast %7 : vector<128x1xf32> to vector<128x128xf32>
    %27 = arith.mulf %25, %26 : vector<128x128xf32>
    %cst_18 = arith.constant dense<0.000000e+00> : vector<128xf32>
    %28 = vector.multi_reduction <add>, %27, %cst_18 [0] : vector<128x128xf32> to vector<128xf32>
    %29 = vector.shape_cast %28 : vector<128xf32> to vector<1x128xf32>
    %30 = arith.mulf %27, %27 : vector<128x128xf32>
    %cst_19 = arith.constant dense<0.000000e+00> : vector<128xf32>
    %31 = vector.multi_reduction <add>, %30, %cst_19 [0] : vector<128x128xf32> to vector<128xf32>
    %32 = vector.shape_cast %31 : vector<128xf32> to vector<1x128xf32>
    %cst_20 = arith.constant 6.250000e-02 : f32
    %33 = vector.broadcast %cst_20 : f32 to vector<1x128xf32>
    %34 = arith.mulf %29, %33 : vector<1x128xf32>
    %cst_21 = arith.constant 6.250000e-02 : f32
    %35 = vector.broadcast %cst_21 : f32 to vector<1x128xf32>
    %36 = arith.mulf %32, %35 : vector<1x128xf32>
    %37 = arith.mulf %34, %34 : vector<1x128xf32>
    %38 = arith.subf %36, %37 : vector<1x128xf32>
    %cst_22 = arith.constant 0.000000e+00 : f32
    %39 = vector.broadcast %cst_22 : f32 to vector<1x128xf32>
    %40 = arith.maximumf %38, %39 : vector<1x128xf32>
    %c0_23 = arith.constant 0 : index
    %c0_24 = arith.constant 0 : index
    %41 = vector.load %arg7[%c0_23, %c0_24] : memref<1x128xf32, #tpu.memory_space<vmem>>, vector<1x128xf32>
    %cst_25 = arith.constant 9.99999974E-6 : f32
    %42 = vector.broadcast %cst_25 : f32 to vector<1x128xf32>
    %43 = arith.addf %40, %42 : vector<1x128xf32>
    %44 = math.rsqrt %43 : vector<1x128xf32>
    %45 = arith.mulf %41, %44 : vector<1x128xf32>
    %c0_26 = arith.constant 0 : index
    %c0_27 = arith.constant 0 : index
    %46 = vector.load %arg8[%c0_26, %c0_27] : memref<1x128xf32, #tpu.memory_space<vmem>>, vector<1x128xf32>
    %47 = arith.mulf %34, %45 : vector<1x128xf32>
    %48 = arith.subf %46, %47 : vector<1x128xf32>
    %49 = vector.broadcast %45 : vector<1x128xf32> to vector<128x128xf32>
    %50 = arith.mulf %25, %49 : vector<128x128xf32>
    %51 = vector.broadcast %48 : vector<1x128xf32> to vector<128x128xf32>
    %52 = arith.addf %50, %51 : vector<128x128xf32>
    %53 = arith.truncf %52 : vector<128x128xf32> to vector<128x128xbf16>
    %cst_28 = arith.constant dense<0.000000e+00> : vector<8x128xf32>
    %54 = tpu.matmul %1, %53, %cst_28 {dimension_numbers = #tpu.dot_dimension_numbers<[1], [0], [0], [1], [0, 0, 1, 1], [], []>} : vector<8x128xbf16>, vector<128x128xbf16>, vector<8x128xf32> -> vector<8x128xf32>
    %55 = arith.truncf %54 : vector<8x128xf32> to vector<8x128xbf16>
    %c0_29 = arith.constant 0 : index
    %c0_30 = arith.constant 0 : index
    %56 = vector.load %arg9[%c0_29, %c0_30] : memref<128x128xbf16, #tpu.memory_space<vmem>>, vector<128x128xbf16>
    %cst_31 = arith.constant dense<0.000000e+00> : vector<8x128xf32>
    %57 = tpu.matmul %55, %56, %cst_31 {dimension_numbers = #tpu.dot_dimension_numbers<[1], [0], [0], [1], [0, 0, 1, 1], [], []>} : vector<8x128xbf16>, vector<128x128xbf16>, vector<8x128xf32> -> vector<8x128xf32>
    %58 = arith.addf %8, %57 : vector<8x128xf32>
    %cst_32 = arith.constant dense<0.000000e+00> : vector<128x128xf32>
    %59 = tpu.matmul %0, %53, %cst_32 {dimension_numbers = #tpu.dot_dimension_numbers<[1], [0], [0], [1], [0, 0, 1, 1], [], []>} : vector<128x128xbf16>, vector<128x128xbf16>, vector<128x128xf32> -> vector<128x128xf32>
    %60 = arith.truncf %59 : vector<128x128xf32> to vector<128x128xbf16>
    %c0_33 = arith.constant 0 : index
    %c0_34 = arith.constant 0 : index
    %61 = vector.load %arg10[%c0_33, %c0_34] : memref<128x128xbf16, #tpu.memory_space<vmem>>, vector<128x128xbf16>
    %cst_35 = arith.constant dense<0.000000e+00> : vector<128x128xf32>
    %62 = tpu.matmul %60, %61, %cst_35 {dimension_numbers = #tpu.dot_dimension_numbers<[1], [0], [0], [1], [0, 0, 1, 1], [], []>} : vector<128x128xbf16>, vector<128x128xbf16>, vector<128x128xf32> -> vector<128x128xf32>
    %c0_36 = arith.constant 0 : index
    %c0_37 = arith.constant 0 : index
    %63 = vector.load %arg11[%c0_36, %c0_37] : memref<1x128xf32, #tpu.memory_space<vmem>>, vector<1x128xf32>
    %64 = vector.broadcast %63 : vector<1x128xf32> to vector<128x128xf32>
    %65 = arith.addf %62, %64 : vector<128x128xf32>
    %cst_38 = arith.constant 0.000000e+00 : f32
    %66 = vector.broadcast %cst_38 : f32 to vector<128x128xf32>
    %67 = arith.maximumf %65, %66 : vector<128x128xf32>
    %68 = arith.truncf %67 : vector<128x128xf32> to vector<128x128xbf16>
    %c0_39 = arith.constant 0 : index
    %c0_40 = arith.constant 0 : index
    %69 = vector.load %arg12[%c0_39, %c0_40] : memref<128x128xbf16, #tpu.memory_space<vmem>>, vector<128x128xbf16>
    %cst_41 = arith.constant dense<0.000000e+00> : vector<128x128xf32>
    %70 = tpu.matmul %68, %69, %cst_41 {dimension_numbers = #tpu.dot_dimension_numbers<[1], [0], [0], [1], [0, 0, 1, 1], [], []>} : vector<128x128xbf16>, vector<128x128xbf16>, vector<128x128xf32> -> vector<128x128xf32>
    %c0_42 = arith.constant 0 : index
    %c0_43 = arith.constant 0 : index
    %71 = vector.load %arg13[%c0_42, %c0_43] : memref<1x128xf32, #tpu.memory_space<vmem>>, vector<1x128xf32>
    %72 = vector.broadcast %71 : vector<1x128xf32> to vector<128x128xf32>
    %73 = arith.addf %70, %72 : vector<128x128xf32>
    %cst_44 = arith.constant 0.000000e+00 : f32
    %74 = vector.broadcast %cst_44 : f32 to vector<128x128xf32>
    %75 = arith.maximumf %73, %74 : vector<128x128xf32>
    %76 = vector.broadcast %7 : vector<128x1xf32> to vector<128x128xf32>
    %77 = arith.mulf %75, %76 : vector<128x128xf32>
    %cst_45 = arith.constant dense<0.000000e+00> : vector<128xf32>
    %78 = vector.multi_reduction <add>, %77, %cst_45 [0] : vector<128x128xf32> to vector<128xf32>
    %79 = vector.shape_cast %78 : vector<128xf32> to vector<1x128xf32>
    %80 = arith.mulf %77, %77 : vector<128x128xf32>
    %cst_46 = arith.constant dense<0.000000e+00> : vector<128xf32>
    %81 = vector.multi_reduction <add>, %80, %cst_46 [0] : vector<128x128xf32> to vector<128xf32>
    %82 = vector.shape_cast %81 : vector<128xf32> to vector<1x128xf32>
    %cst_47 = arith.constant 6.250000e-02 : f32
    %83 = vector.broadcast %cst_47 : f32 to vector<1x128xf32>
    %84 = arith.mulf %79, %83 : vector<1x128xf32>
    %cst_48 = arith.constant 6.250000e-02 : f32
    %85 = vector.broadcast %cst_48 : f32 to vector<1x128xf32>
    %86 = arith.mulf %82, %85 : vector<1x128xf32>
    %87 = arith.mulf %84, %84 : vector<1x128xf32>
    %88 = arith.subf %86, %87 : vector<1x128xf32>
    %cst_49 = arith.constant 0.000000e+00 : f32
    %89 = vector.broadcast %cst_49 : f32 to vector<1x128xf32>
    %90 = arith.maximumf %88, %89 : vector<1x128xf32>
    %c0_50 = arith.constant 0 : index
    %c0_51 = arith.constant 0 : index
    %91 = vector.load %arg14[%c0_50, %c0_51] : memref<1x128xf32, #tpu.memory_space<vmem>>, vector<1x128xf32>
    %cst_52 = arith.constant 9.99999974E-6 : f32
    %92 = vector.broadcast %cst_52 : f32 to vector<1x128xf32>
    %93 = arith.addf %90, %92 : vector<1x128xf32>
    %94 = math.rsqrt %93 : vector<1x128xf32>
    %95 = arith.mulf %91, %94 : vector<1x128xf32>
    %c0_53 = arith.constant 0 : index
    %c0_54 = arith.constant 0 : index
    %96 = vector.load %arg15[%c0_53, %c0_54] : memref<1x128xf32, #tpu.memory_space<vmem>>, vector<1x128xf32>
    %97 = arith.mulf %84, %95 : vector<1x128xf32>
    %98 = arith.subf %96, %97 : vector<1x128xf32>
    %99 = vector.broadcast %95 : vector<1x128xf32> to vector<128x128xf32>
    %100 = arith.mulf %75, %99 : vector<128x128xf32>
    %101 = vector.broadcast %98 : vector<1x128xf32> to vector<128x128xf32>
    %102 = arith.addf %100, %101 : vector<128x128xf32>
    %103 = arith.truncf %102 : vector<128x128xf32> to vector<128x128xbf16>
    %cst_55 = arith.constant dense<0.000000e+00> : vector<8x128xf32>
    %104 = tpu.matmul %1, %103, %cst_55 {dimension_numbers = #tpu.dot_dimension_numbers<[1], [0], [0], [1], [0, 0, 1, 1], [], []>} : vector<8x128xbf16>, vector<128x128xbf16>, vector<8x128xf32> -> vector<8x128xf32>
    %105 = arith.truncf %104 : vector<8x128xf32> to vector<8x128xbf16>
    %c0_56 = arith.constant 0 : index
    %c0_57 = arith.constant 0 : index
    %106 = vector.load %arg16[%c0_56, %c0_57] : memref<128x128xbf16, #tpu.memory_space<vmem>>, vector<128x128xbf16>
    %cst_58 = arith.constant dense<0.000000e+00> : vector<8x128xf32>
    %107 = tpu.matmul %105, %106, %cst_58 {dimension_numbers = #tpu.dot_dimension_numbers<[1], [0], [0], [1], [0, 0, 1, 1], [], []>} : vector<8x128xbf16>, vector<128x128xbf16>, vector<8x128xf32> -> vector<8x128xf32>
    %108 = arith.addf %58, %107 : vector<8x128xf32>
    %cst_59 = arith.constant dense<0.000000e+00> : vector<128x128xf32>
    %109 = tpu.matmul %0, %103, %cst_59 {dimension_numbers = #tpu.dot_dimension_numbers<[1], [0], [0], [1], [0, 0, 1, 1], [], []>} : vector<128x128xbf16>, vector<128x128xbf16>, vector<128x128xf32> -> vector<128x128xf32>
    %110 = arith.truncf %109 : vector<128x128xf32> to vector<128x128xbf16>
    %c0_60 = arith.constant 0 : index
    %c0_61 = arith.constant 0 : index
    %111 = vector.load %arg17[%c0_60, %c0_61] : memref<128x128xbf16, #tpu.memory_space<vmem>>, vector<128x128xbf16>
    %cst_62 = arith.constant dense<0.000000e+00> : vector<128x128xf32>
    %112 = tpu.matmul %110, %111, %cst_62 {dimension_numbers = #tpu.dot_dimension_numbers<[1], [0], [0], [1], [0, 0, 1, 1], [], []>} : vector<128x128xbf16>, vector<128x128xbf16>, vector<128x128xf32> -> vector<128x128xf32>
    %c0_63 = arith.constant 0 : index
    %c0_64 = arith.constant 0 : index
    %113 = vector.load %arg18[%c0_63, %c0_64] : memref<1x128xf32, #tpu.memory_space<vmem>>, vector<1x128xf32>
    %114 = vector.broadcast %113 : vector<1x128xf32> to vector<128x128xf32>
    %115 = arith.addf %112, %114 : vector<128x128xf32>
    %cst_65 = arith.constant 0.000000e+00 : f32
    %116 = vector.broadcast %cst_65 : f32 to vector<128x128xf32>
    %117 = arith.maximumf %115, %116 : vector<128x128xf32>
    %118 = arith.truncf %117 : vector<128x128xf32> to vector<128x128xbf16>
    %c0_66 = arith.constant 0 : index
    %c0_67 = arith.constant 0 : index
    %119 = vector.load %arg19[%c0_66, %c0_67] : memref<128x128xbf16, #tpu.memory_space<vmem>>, vector<128x128xbf16>
    %cst_68 = arith.constant dense<0.000000e+00> : vector<128x128xf32>
    %120 = tpu.matmul %118, %119, %cst_68 {dimension_numbers = #tpu.dot_dimension_numbers<[1], [0], [0], [1], [0, 0, 1, 1], [], []>} : vector<128x128xbf16>, vector<128x128xbf16>, vector<128x128xf32> -> vector<128x128xf32>
    %c0_69 = arith.constant 0 : index
    %c0_70 = arith.constant 0 : index
    %121 = vector.load %arg20[%c0_69, %c0_70] : memref<1x128xf32, #tpu.memory_space<vmem>>, vector<1x128xf32>
    %122 = vector.broadcast %121 : vector<1x128xf32> to vector<128x128xf32>
    %123 = arith.addf %120, %122 : vector<128x128xf32>
    %cst_71 = arith.constant 0.000000e+00 : f32
    %124 = vector.broadcast %cst_71 : f32 to vector<128x128xf32>
    %125 = arith.maximumf %123, %124 : vector<128x128xf32>
    %126 = vector.broadcast %7 : vector<128x1xf32> to vector<128x128xf32>
    %127 = arith.mulf %125, %126 : vector<128x128xf32>
    %cst_72 = arith.constant dense<0.000000e+00> : vector<128xf32>
    %128 = vector.multi_reduction <add>, %127, %cst_72 [0] : vector<128x128xf32> to vector<128xf32>
    %129 = vector.shape_cast %128 : vector<128xf32> to vector<1x128xf32>
    %130 = arith.mulf %127, %127 : vector<128x128xf32>
    %cst_73 = arith.constant dense<0.000000e+00> : vector<128xf32>
    %131 = vector.multi_reduction <add>, %130, %cst_73 [0] : vector<128x128xf32> to vector<128xf32>
    %132 = vector.shape_cast %131 : vector<128xf32> to vector<1x128xf32>
    %cst_74 = arith.constant 6.250000e-02 : f32
    %133 = vector.broadcast %cst_74 : f32 to vector<1x128xf32>
    %134 = arith.mulf %129, %133 : vector<1x128xf32>
    %cst_75 = arith.constant 6.250000e-02 : f32
    %135 = vector.broadcast %cst_75 : f32 to vector<1x128xf32>
    %136 = arith.mulf %132, %135 : vector<1x128xf32>
    %137 = arith.mulf %134, %134 : vector<1x128xf32>
    %138 = arith.subf %136, %137 : vector<1x128xf32>
    %cst_76 = arith.constant 0.000000e+00 : f32
    %139 = vector.broadcast %cst_76 : f32 to vector<1x128xf32>
    %140 = arith.maximumf %138, %139 : vector<1x128xf32>
    %c0_77 = arith.constant 0 : index
    %c0_78 = arith.constant 0 : index
    %141 = vector.load %arg21[%c0_77, %c0_78] : memref<1x128xf32, #tpu.memory_space<vmem>>, vector<1x128xf32>
    %cst_79 = arith.constant 9.99999974E-6 : f32
    %142 = vector.broadcast %cst_79 : f32 to vector<1x128xf32>
    %143 = arith.addf %140, %142 : vector<1x128xf32>
    %144 = math.rsqrt %143 : vector<1x128xf32>
    %145 = arith.mulf %141, %144 : vector<1x128xf32>
    %c0_80 = arith.constant 0 : index
    %c0_81 = arith.constant 0 : index
    %146 = vector.load %arg22[%c0_80, %c0_81] : memref<1x128xf32, #tpu.memory_space<vmem>>, vector<1x128xf32>
    %147 = arith.mulf %134, %145 : vector<1x128xf32>
    %148 = arith.subf %146, %147 : vector<1x128xf32>
    %149 = vector.broadcast %145 : vector<1x128xf32> to vector<128x128xf32>
    %150 = arith.mulf %125, %149 : vector<128x128xf32>
    %151 = vector.broadcast %148 : vector<1x128xf32> to vector<128x128xf32>
    %152 = arith.addf %150, %151 : vector<128x128xf32>
    %153 = arith.truncf %152 : vector<128x128xf32> to vector<128x128xbf16>
    %cst_82 = arith.constant dense<0.000000e+00> : vector<8x128xf32>
    %154 = tpu.matmul %1, %153, %cst_82 {dimension_numbers = #tpu.dot_dimension_numbers<[1], [0], [0], [1], [0, 0, 1, 1], [], []>} : vector<8x128xbf16>, vector<128x128xbf16>, vector<8x128xf32> -> vector<8x128xf32>
    %155 = arith.truncf %154 : vector<8x128xf32> to vector<8x128xbf16>
    %c0_83 = arith.constant 0 : index
    %c0_84 = arith.constant 0 : index
    %156 = vector.load %arg23[%c0_83, %c0_84] : memref<128x128xbf16, #tpu.memory_space<vmem>>, vector<128x128xbf16>
    %cst_85 = arith.constant dense<0.000000e+00> : vector<8x128xf32>
    %157 = tpu.matmul %155, %156, %cst_85 {dimension_numbers = #tpu.dot_dimension_numbers<[1], [0], [0], [1], [0, 0, 1, 1], [], []>} : vector<8x128xbf16>, vector<128x128xbf16>, vector<8x128xf32> -> vector<8x128xf32>
    %158 = arith.addf %108, %157 : vector<8x128xf32>
    %c0_86 = arith.constant 0 : index
    %c0_87 = arith.constant 0 : index
    %159 = vector.load %arg24[%c0_86, %c0_87] : memref<1x128xf32, #tpu.memory_space<vmem>>, vector<1x128xf32>
    %160 = vector.broadcast %159 : vector<1x128xf32> to vector<8x128xf32>
    %161 = arith.addf %158, %160 : vector<8x128xf32>
    %cst_88 = arith.constant 0.000000e+00 : f32
    %162 = vector.broadcast %cst_88 : f32 to vector<8x128xf32>
    %163 = arith.maximumf %161, %162 : vector<8x128xf32>
    %164 = arith.truncf %163 : vector<8x128xf32> to vector<8x128xbf16>
    %c0_89 = arith.constant 0 : index
    %c0_90 = arith.constant 0 : index
    %165 = vector.load %arg25[%c0_89, %c0_90] : memref<128x128xbf16, #tpu.memory_space<vmem>>, vector<128x128xbf16>
    %cst_91 = arith.constant dense<0.000000e+00> : vector<8x128xf32>
    %166 = tpu.matmul %164, %165, %cst_91 {dimension_numbers = #tpu.dot_dimension_numbers<[1], [0], [0], [1], [0, 0, 1, 1], [], []>} : vector<8x128xbf16>, vector<128x128xbf16>, vector<8x128xf32> -> vector<8x128xf32>
    %c0_92 = arith.constant 0 : index
    %c0_93 = arith.constant 0 : index
    %167 = vector.load %arg26[%c0_92, %c0_93] : memref<1x128xf32, #tpu.memory_space<vmem>>, vector<1x128xf32>
    %168 = vector.broadcast %167 : vector<1x128xf32> to vector<8x128xf32>
    %169 = arith.addf %166, %168 : vector<8x128xf32>
    %c0_94 = arith.constant 0 : index
    %c0_95 = arith.constant 0 : index
    %170 = vector.load %arg27[%c0_94, %c0_95] : memref<8x128xf32, #tpu.memory_space<vmem>>, vector<8x128xf32>
    tpu.vector_store %arg27[%c0_94, %c0_95], %169 {strides = array<i32>} : memref<8x128xf32, #tpu.memory_space<vmem>>, vector<8x128xf32>,
    return
  }
}

</mosaic_0001>

<bundles_post_ra>
// kernel: tpu_custom_call.1
= control target key start
LH: loop header
LB: loop body
LE: loop exit
PB: predicated region body
PF: predicated region fallthrough
CT: control target
= control target key end

     0   :  { %s5328_s0 = inlined_call_operand.hbm [shape: bf16[128,128], index: 0, kind: input, shape index: {}]   ;;  %s5329_s1 = inlined_call_operand.hbm [shape: bf16[8,128], index: 1, kind: input, shape index: {}]   ;;  %s5330_s2 = inlined_call_operand.hbm [shape: bf16[128,128], index: 2, kind: input, shape index: {}]   ;;  %s5331_s3 = inlined_call_operand.hbm [shape: bf16[128,128], index: 3, kind: input, shape index: {}]   ;;  %s5332_s4 = inlined_call_operand.hbm [shape: f32[1,128], index: 4, kind: input, shape index: {}]   ;;  %s5333_s5 = inlined_call_operand.hbm [shape: bf16[128,128], index: 5, kind: input, shape index: {}]   ;;  %s5334_s6 = inlined_call_operand.hbm [shape: f32[1,128], index: 6, kind: input, shape index: {}]   ;;  %s5335_s7 = inlined_call_operand.hbm [shape: f32[1,128], index: 7, kind: input, shape index: {}]   ;;  %s5336_s8 = inlined_call_operand.hbm [shape: f32[1,128], index: 8, kind: input, shape index: {}]   ;;  %s5337_s9 = inlined_call_operand.hbm [shape: bf16[128,128], index: 9, kind: input, shape index: {}]   ;;  %s5338_s10 = inlined_call_operand.hbm [shape: bf16[128,128], index: 10, kind: input, shape index: {}]   ;;  %s5339_s11 = inlined_call_operand.hbm [shape: f32[1,128], index: 11, kind: input, shape index: {}]   ;;  %s5340_s12 = inlined_call_operand.hbm [shape: bf16[128,128], index: 12, kind: input, shape index: {}]   ;;  %s5341_s13 = inlined_call_operand.hbm [shape: f32[1,128], index: 13, kind: input, shape index: {}]   ;;  %s5342_s14 = inlined_call_operand.hbm [shape: f32[1,128], index: 14, kind: input, shape index: {}]   ;;  %s5343_s15 = inlined_call_operand.hbm [shape: f32[1,128], index: 15, kind: input, shape index: {}]   ;;  %s5344_s16 = inlined_call_operand.hbm [shape: bf16[128,128], index: 16, kind: input, shape index: {}]   ;;  %s5345_s17 = inlined_call_operand.vmem [shape: bf16[128,128], index: 17, kind: input, shape index: {}]   ;;  %s5346_s18 = inlined_call_operand.vmem [shape: f32[1,128], index: 18, kind: input, shape index: {}]   ;;  %s5347_s19 = inlined_call_operand.hbm [shape: bf16[128,128], index: 19, kind: input, shape index: {}]   ;;  %s5348_s20 = inlined_call_operand.vmem [shape: f32[1,128], index: 20, kind: input, shape index: {}]   ;;  %s5349_s21 = inlined_call_operand.vmem [shape: f32[1,128], index: 21, kind: input, shape index: {}]   ;;  %s5350_s22 = inlined_call_operand.vmem [shape: f32[1,128], index: 22, kind: input, shape index: {}]   ;;  %s5351_s23 = inlined_call_operand.hbm [shape: bf16[128,128], index: 23, kind: input, shape index: {}]   ;;  %s5352_s24 = inlined_call_operand.vmem [shape: f32[1,128], index: 24, kind: input, shape index: {}]   ;;  %s5353_s25 = inlined_call_operand.hbm [shape: bf16[128,128], index: 25, kind: input, shape index: {}]   ;;  %s5354_s26 = inlined_call_operand.vmem [shape: f32[1,128], index: 26, kind: input, shape index: {}]   ;;  %s5355_s27 = inlined_call_operand.hbm [shape: f32[8,128], index: 27, kind: output, shape index: {}]  }
   0x1   :  { %5369 = sst [smem:[#allocation47_spill]] %s5328_s0 }
   0x2   :  { %5370 = sst [smem:[#allocation48_spill]] %s5329_s1 }
   0x3   :  { %5371 = sst [smem:[#allocation49_spill]] %s5330_s2 }
   0x4   :  { %5372 = sst [smem:[#allocation50_spill]] %s5331_s3 }
   0x5   :  { %5373 = sst [smem:[#allocation51_spill]] %s5332_s4 }
   0x6   :  { %5374 = sst [smem:[#allocation52_spill]] %s5333_s5 }
   0x7   :  { %5375 = sst [smem:[#allocation53_spill]] %s5334_s6 }
   0x8   :  { %5376 = sst [smem:[#allocation54_spill]] %s5335_s7 }
   0x9   :  { %5377 = sst [smem:[#allocation55_spill]] %s5336_s8 }
   0xa   :  { %5378 = sst [smem:[#allocation56_spill]] %s5337_s9 }
   0xb   :  { %5379 = sst [smem:[#allocation57_spill]] %s5338_s10 }
   0xc   :  { %5380 = sst [smem:[#allocation58_spill]] %s5339_s11 }
   0xd   :  { %5381 = sst [smem:[#allocation59_spill]] %s5352_s24 }
   0xe   :  { %5382 = sst [smem:[#allocation60_spill]] %s5354_s26 }
   0xf   :  { %5383 = sst [smem:[#allocation61_spill]] %s5355_s27 }
  0x10   :  { %32 = vsyncpa [#allocation3], 0 }
  0x11   :  { %33 = vsyncpa [#allocation6], 0 }
  0x12   :  { %34 = vsyncpa [#allocation9], 0 }
  0x13   :  { %35 = vsyncpa [#allocation12], 0 }
  0x14   :  { %36 = vsyncpa [#allocation15], 0 }
  0x15   :  { %37 = vsyncpa [#allocation18], 0 }
  0x16   :  { %38 = vsyncpa [#allocation21], 0 }
  0x17   :  { %39 = vsyncpa [#allocation24], 0 }
  0x18   :  { %40 = vsyncpa [#allocation27], 0 }
  0x19   :  { %41 = vsyncpa [#allocation30], 0 }
  0x1a   :  { %42 = vsyncpa [#allocation33], 0 }
  0x1b   :  { %43 = vsyncpa [#allocation4], 0  ;;  %s4336_s7 = smov [#allocation5]   ;;  %s5384_s9 = sld [smem:[#allocation48_spill]] }
  0x1c   :  { %s62_s4 = sshll.u32 %s4336_s7, 4  ;;  %s63_s4 = int_to_ptr.vmem [resolvable:$true] %s62_s4 }
  0x21   :  { %s3850_s5 = scalar_lea.hbm %s5384_s9, 64 }
  0x22   :  { %p3851_p0 = scmp.ne.s32.totalorder %s5384_s9, %s3850_s5  ;;  %p3854_p1 = scmp.lt.u32.totalorder %s3850_s5, %s5384_s9 }
  0x24   :  { %p3856_p2 = pnand %p3854_p1, %p3851_p0 }
  0x26   :  { %3859 = shalt.err (!%p3856_p2)
}
  0x27   :  { %s3860_s1 = scalar_lea.vmem %s63_s4, 64  ;;  %p3865_p4 = scmp.lt.s32.totalorder %s63_s4, %s63_s4 }
  0x28   :  { %p3861_p3 = scmp.ne.s32.totalorder %s63_s4, %s3860_s1  ;;  %p3866_p5 = scmp.lt.s32.totalorder %s3860_s1, %s3860_s1 }
  0x2a   :  { %p3867_p6 = por %p3866_p5, %p3865_p4 }
  0x2c   :  { %p3868_p7 = pnand %p3867_p6, %p3861_p3 }
  0x2e   :  { %3871 = shalt.err (!%p3868_p7)
}
  0x2f   :  { %65 = dma.hbm_to_vmem [thread:$0]  %s5384_s9, 64, %s63_s4, [#allocation6]  }
  0x30   :  { %s4337_s2 = smov [#allocation8]   ;;  %s4338_s7 = smov [#allocation11]  }
  0x31   :  { %s83_s3 = sshll.u32 %s4337_s2, 4  ;;  %s105_s8 = sshll.u32 %s4338_s7, 4  ;;  %s84_s3 = int_to_ptr.vmem [resolvable:$true] %s83_s3  ;;  %s106_s8 = int_to_ptr.vmem [resolvable:$true] %s105_s8 }
  0x32   :  { %s5385_s28 = sld [smem:[#allocation50_spill]] }
  0x38   :  { %s3872_s0 = scalar_lea.hbm %s5385_s28, 1024 }
  0x39   :  { %p3873_p8 = scmp.ne.s32.totalorder %s5385_s28, %s3872_s0  ;;  %p3876_p9 = scmp.lt.u32.totalorder %s3872_s0, %s5385_s28 }
  0x3b   :  { %p3878_p10 = pnand %p3876_p9, %p3873_p8 }
  0x3d   :  { %3881 = shalt.err (!%p3878_p10)
}
  0x3e   :  { %s3882_s4 = scalar_lea.vmem %s84_s3, 1024  ;;  %p3887_p12 = scmp.lt.s32.totalorder %s84_s3, %s84_s3 }
  0x3f   :  { %p3883_p11 = scmp.ne.s32.totalorder %s84_s3, %s3882_s4  ;;  %p3888_p13 = scmp.lt.s32.totalorder %s3882_s4, %s3882_s4 }
  0x41   :  { %p3889_p0 = por %p3888_p13, %p3887_p12 }
  0x43   :  { %p3890_p1 = pnand %p3889_p0, %p3883_p11 }
  0x45   :  { %3893 = shalt.err (!%p3890_p1)
}
  0x46   :  { %s4339_s9 = smov 64   ;;  %s4340_s6 = smov 4  }
  0x47   :  { %89 = dma.hbm_to_vmem [thread:$0]  %s5385_s28, 1024, %s84_s3, [#allocation9], %s4339_s9, %s4339_s9, %s4340_s6  }
  0x48   :  { %s5386_s30 = sld [smem:[#allocation52_spill]] }
  0x4e   :  { %s3894_s5 = scalar_lea.hbm %s5386_s30, 1024 }
  0x4f   :  { %p3895_p2 = scmp.ne.s32.totalorder %s5386_s30, %s3894_s5  ;;  %p3898_p3 = scmp.lt.u32.totalorder %s3894_s5, %s5386_s30 }
  0x51   :  { %p3900_p4 = pnand %p3898_p3, %p3895_p2 }
  0x53   :  { %3903 = shalt.err (!%p3900_p4)
}
  0x54   :  { %s3904_s4 = scalar_lea.vmem %s106_s8, 1024  ;;  %p3909_p6 = scmp.lt.s32.totalorder %s106_s8, %s106_s8 }
  0x55   :  { %p3905_p5 = scmp.ne.s32.totalorder %s106_s8, %s3904_s4  ;;  %p3910_p7 = scmp.lt.s32.totalorder %s3904_s4, %s3904_s4 }
  0x57   :  { %p3911_p8 = por %p3910_p7, %p3909_p6 }
  0x59   :  { %p3912_p9 = pnand %p3911_p8, %p3905_p5 }
  0x5b   :  { %3915 = shalt.err (!%p3912_p9)
}
  0x5c   :  { %111 = dma.hbm_to_vmem [thread:$0]  %s5386_s30, 1024, %s106_s8, [#allocation12], %s4339_s9, %s4339_s9, %s4340_s6  }
  0x5d   :  { %s4341_s11 = smov [#allocation14]   ;;  %s4342_s27 = smov [#allocation17]  }
  0x5e   :  { %s128_s2 = sshll.u32 %s4341_s11, 4  ;;  %s147_s7 = sshll.u32 %s4342_s27, 4  ;;  %s129_s2 = int_to_ptr.vmem [resolvable:$true] %s128_s2  ;;  %s148_s7 = int_to_ptr.vmem [resolvable:$true] %s147_s7 }
  0x5f   :  { %s5387_s10 = sld [smem:[#allocation54_spill]] }
  0x65   :  { %s3916_s29 = scalar_lea.hbm %s5387_s10, 16 }
  0x66   :  { %p3917_p10 = scmp.ne.s32.totalorder %s5387_s10, %s3916_s29  ;;  %p3920_p11 = scmp.lt.u32.totalorder %s3916_s29, %s5387_s10 }
  0x68   :  { %p3922_p12 = pnand %p3920_p11, %p3917_p10 }
  0x6a   :  { %3925 = shalt.err (!%p3922_p12)
}
  0x6b   :  { %s3926_s8 = scalar_lea.vmem %s129_s2, 16  ;;  %s3930_s30 = scalar_lea.vmem %s129_s2, 32 }
  0x6c   :  { %p3927_p13 = scmp.ne.s32.totalorder %s129_s2, %s3926_s8  ;;  %p3931_p0 = scmp.lt.s32.totalorder %s129_s2, %s129_s2 }
  0x6d   :  { %p3932_p1 = scmp.lt.s32.totalorder %s3930_s30, %s3926_s8 }
  0x6f   :  { %p3933_p2 = por %p3932_p1, %p3931_p0 }
  0x71   :  { %p3934_p3 = pnand %p3933_p2, %p3927_p13 }
  0x73   :  { %3937 = shalt.err (!%p3934_p3)
}
  0x74   :  { %131 = dma.hbm_to_vmem [thread:$0]  %s5387_s10, 16, %s129_s2, [#allocation15]  }
  0x75   :  { %s5388_s5 = sld [smem:[#allocation56_spill]] }
  0x7b   :  { %s3938_s24 = scalar_lea.hbm %s5388_s5, 1024 }
  0x7c   :  { %p3939_p4 = scmp.ne.s32.totalorder %s5388_s5, %s3938_s24  ;;  %p3942_p5 = scmp.lt.u32.totalorder %s3938_s24, %s5388_s5 }
  0x7e   :  { %p3944_p6 = pnand %p3942_p5, %p3939_p4 }
  0x80   :  { %3947 = shalt.err (!%p3944_p6)
}
  0x81   :  { %s3948_s4 = scalar_lea.vmem %s148_s7, 1024  ;;  %p3953_p8 = scmp.lt.s32.totalorder %s148_s7, %s148_s7 }
  0x82   :  { %p3949_p7 = scmp.ne.s32.totalorder %s148_s7, %s3948_s4  ;;  %p3954_p9 = scmp.lt.s32.totalorder %s3948_s4, %s3948_s4 }
  0x84   :  { %p3955_p10 = por %p3954_p9, %p3953_p8 }
  0x86   :  { %p3956_p11 = pnand %p3955_p10, %p3949_p7 }
  0x88   :  { %3959 = shalt.err (!%p3956_p11)
}
  0x89   :  { %153 = dma.hbm_to_vmem [thread:$0]  %s5388_s5, 1024, %s148_s7, [#allocation18], %s4339_s9, %s4339_s9, %s4340_s6  }
  0x8a   :  { %s4343_s8 = smov [#allocation20]   ;;  %s4344_s3 = smov [#allocation23]  }
  0x8b   :  { %s172_s30 = sshll.u32 %s4343_s8, 4  ;;  %s194_s28 = sshll.u32 %s4344_s3, 4  ;;  %s173_s30 = int_to_ptr.vmem [resolvable:$true] %s172_s30  ;;  %s195_s28 = int_to_ptr.vmem [resolvable:$true] %s194_s28 }
  0x8c   :  { %s5389_s24 = sld [smem:[#allocation58_spill]] }
  0x92   :  { %s3960_s26 = scalar_lea.hbm %s5389_s24, 16 }
  0x93   :  { %p3961_p12 = scmp.ne.s32.totalorder %s5389_s24, %s3960_s26  ;;  %p3964_p13 = scmp.lt.u32.totalorder %s3960_s26, %s5389_s24 }
  0x95   :  { %p3966_p0 = pnand %p3964_p13, %p3961_p12 }
  0x97   :  { %3969 = shalt.err (!%p3966_p0)
}
  0x98   :  { %s3970_s7 = scalar_lea.vmem %s173_s30, 16  ;;  %s3974_s5 = scalar_lea.vmem %s173_s30, 32 }
  0x99   :  { %p3971_p1 = scmp.ne.s32.totalorder %s173_s30, %s3970_s7  ;;  %p3975_p2 = scmp.lt.s32.totalorder %s173_s30, %s173_s30 }
  0x9a   :  { %p3976_p3 = scmp.lt.s32.totalorder %s3974_s5, %s3970_s7 }
  0x9c   :  { %p3977_p4 = por %p3976_p3, %p3975_p2 }
  0x9e   :  { %p3978_p5 = pnand %p3977_p4, %p3971_p1 }
  0xa0   :  { %3981 = shalt.err (!%p3978_p5)
}
  0xa1   :  { %175 = dma.hbm_to_vmem [thread:$0]  %s5389_s24, 16, %s173_s30, [#allocation21]  }
  0xa2   :  { %s3982_s11 = scalar_lea.hbm %s5341_s13, 16 }
  0xa3   :  { %p3983_p6 = scmp.ne.s32.totalorder %s5341_s13, %s3982_s11  ;;  %p3986_p7 = scmp.lt.u32.totalorder %s3982_s11, %s5341_s13 }
  0xa5   :  { %p3988_p8 = pnand %p3986_p7, %p3983_p6 }
  0xa7   :  { %3991 = shalt.err (!%p3988_p8)
}
  0xa8   :  { %s3992_s1 = scalar_lea.vmem %s195_s28, 16  ;;  %s3996_s4 = scalar_lea.vmem %s195_s28, 32 }
  0xa9   :  { %p3993_p9 = scmp.ne.s32.totalorder %s195_s28, %s3992_s1  ;;  %p3997_p10 = scmp.lt.s32.totalorder %s195_s28, %s195_s28 }
  0xaa   :  { %p3998_p11 = scmp.lt.s32.totalorder %s3996_s4, %s3992_s1 }
  0xac   :  { %p3999_p12 = por %p3998_p11, %p3997_p10 }
  0xae   :  { %p4000_p13 = pnand %p3999_p12, %p3993_p9 }
  0xb0   :  { %4003 = shalt.err (!%p4000_p13)
}
  0xb1   :  { %197 = dma.hbm_to_vmem [thread:$0]  %s5341_s13, 16, %s195_s28, [#allocation24]  }
  0xb2   :  { %s4345_s7 = smov [#allocation26]   ;;  %s4346_s2 = smov [#allocation29]  }
  0xb3   :  { %s214_s5 = sshll.u32 %s4345_s7, 4  ;;  %s239_s10 = sshll.u32 %s4346_s2, 4  ;;  %s215_s5 = int_to_ptr.vmem [resolvable:$true] %s214_s5  ;;  %s240_s10 = int_to_ptr.vmem [resolvable:$true] %s239_s10 }
  0xb4   :  { %s4004_s11 = scalar_lea.hbm %s5343_s15, 16 }
  0xb5   :  { %p4005_p0 = scmp.ne.s32.totalorder %s5343_s15, %s4004_s11  ;;  %p4008_p1 = scmp.lt.u32.totalorder %s4004_s11, %s5343_s15 }
  0xb7   :  { %p4010_p2 = pnand %p4008_p1, %p4005_p0 }
  0xb9   :  { %4013 = shalt.err (!%p4010_p2)
}
  0xba   :  { %s4014_s13 = scalar_lea.vmem %s215_s5, 16  ;;  %s4018_s28 = scalar_lea.vmem %s215_s5, 32 }
  0xbb   :  { %p4015_p3 = scmp.ne.s32.totalorder %s215_s5, %s4014_s13  ;;  %p4019_p4 = scmp.lt.s32.totalorder %s215_s5, %s215_s5 }
  0xbc   :  { %p4020_p5 = scmp.lt.s32.totalorder %s4018_s28, %s4014_s13 }
  0xbe   :  { %p4021_p6 = por %p4020_p5, %p4019_p4 }
  0xc0   :  { %p4022_p7 = pnand %p4021_p6, %p4015_p3 }
  0xc2   :  { %4025 = shalt.err (!%p4022_p7)
}
  0xc3   :  { %217 = dma.hbm_to_vmem [thread:$0]  %s5343_s15, 16, %s215_s5, [#allocation27]  }
  0xc4   :  { %s4026_s7 = scalar_lea.hbm %s5347_s19, 1024 }
  0xc5   :  { %p4027_p8 = scmp.ne.s32.totalorder %s5347_s19, %s4026_s7  ;;  %p4030_p9 = scmp.lt.u32.totalorder %s4026_s7, %s5347_s19 }
  0xc7   :  { %p4032_p10 = pnand %p4030_p9, %p4027_p8 }
  0xc9   :  { %4035 = shalt.err (!%p4032_p10)
}
  0xca   :  { %s4036_s27 = scalar_lea.vmem %s240_s10, 1024  ;;  %p4041_p12 = scmp.lt.s32.totalorder %s240_s10, %s240_s10 }
  0xcb   :  { %p4037_p11 = scmp.ne.s32.totalorder %s240_s10, %s4036_s27  ;;  %p4042_p13 = scmp.lt.s32.totalorder %s4036_s27, %s4036_s27 }
  0xcd   :  { %p4043_p0 = por %p4042_p13, %p4041_p12 }
  0xcf   :  { %p4044_p1 = pnand %p4043_p0, %p4037_p11 }
  0xd1   :  { %4047 = shalt.err (!%p4044_p1)
}
  0xd2   :  { %245 = dma.hbm_to_vmem [thread:$0]  %s5347_s19, 1024, %s240_s10, [#allocation30], %s4339_s9, %s4339_s9, %s4340_s6  }
  0xd3   :  { %s4347_s26 = smov [#allocation2]   ;;  %s4348_s29 = smov [#allocation7]  }
  0xd4   :  { %s49_s0 = sshll.u32 %s4347_s26, 4  ;;  %s71_s13 = sshll.u32 %s4348_s29, 4  ;;  %s50_s0 = int_to_ptr.vmem [resolvable:$true] %s49_s0  ;;  %s72_s13 = int_to_ptr.vmem [resolvable:$true] %s71_s13 }
  0xd5   :  { %s5390_s4 = sld [smem:[#allocation47_spill]] }
  0xdb   :  { %s4048_s30 = scalar_lea.hbm %s5390_s4, 1024 }
  0xdc   :  { %p4049_p2 = scmp.ne.s32.totalorder %s5390_s4, %s4048_s30  ;;  %p4052_p3 = scmp.lt.u32.totalorder %s4048_s30, %s5390_s4 }
  0xde   :  { %p4054_p4 = pnand %p4052_p3, %p4049_p2 }
  0xe0   :  { %4057 = shalt.err (!%p4054_p4)
}
  0xe1   :  { %s4058_s19 = scalar_lea.vmem %s50_s0, 1024  ;;  %p4063_p6 = scmp.lt.s32.totalorder %s50_s0, %s50_s0 }
  0xe2   :  { %p4059_p5 = scmp.ne.s32.totalorder %s50_s0, %s4058_s19  ;;  %p4064_p7 = scmp.lt.s32.totalorder %s4058_s19, %s4058_s19 }
  0xe4   :  { %p4065_p8 = por %p4064_p7, %p4063_p6 }
  0xe6   :  { %p4066_p9 = pnand %p4065_p8, %p4059_p5 }
  0xe8   :  { %4069 = shalt.err (!%p4066_p9)
}
  0xe9   :  { %55 = dma.hbm_to_vmem [thread:$0]  %s5390_s4, 1024, %s50_s0, [#allocation3], %s4339_s9, %s4339_s9, %s4340_s6  }
  0xea   :  { %s5391_s15 = sld [smem:[#allocation49_spill]] }
  0xf0   :  { %s4070_s5 = scalar_lea.hbm %s5391_s15, 1024 }
  0xf1   :  { %p4071_p10 = scmp.ne.s32.totalorder %s5391_s15, %s4070_s5  ;;  %p4074_p11 = scmp.lt.u32.totalorder %s4070_s5, %s5391_s15 }
  0xf3   :  { %p4076_p12 = pnand %p4074_p11, %p4071_p10 }
  0xf5   :  { %4079 = shalt.err (!%p4076_p12)
}
  0xf6   :  { %s4080_s30 = scalar_lea.vmem %s72_s13, 1024  ;;  %p4085_p0 = scmp.lt.s32.totalorder %s72_s13, %s72_s13 }
  0xf7   :  { %p4081_p13 = scmp.ne.s32.totalorder %s72_s13, %s4080_s30  ;;  %p4086_p1 = scmp.lt.s32.totalorder %s4080_s30, %s4080_s30 }
  0xf9   :  { %p4087_p2 = por %p4086_p1, %p4085_p0 }
  0xfb   :  { %p4088_p3 = pnand %p4087_p2, %p4081_p13 }
  0xfd   :  { %4091 = shalt.err (!%p4088_p3)
}
  0xfe   :  { %77 = dma.hbm_to_vmem [thread:$0]  %s5391_s15, 1024, %s72_s13, [#allocation6], %s4339_s9, %s4339_s9, %s4340_s6  }
  0xff   :  { %s4349_s24 = smov [#allocation10]   ;;  %s4350_s2 = smov [#allocation13]  }
 0x100   :  { %s96_s7 = sshll.u32 %s4349_s24, 4  ;;  %s118_s8 = sshll.u32 %s4350_s2, 4  ;;  %s97_s7 = int_to_ptr.vmem [resolvable:$true] %s96_s7  ;;  %s119_s8 = int_to_ptr.vmem [resolvable:$true] %s118_s8 }
 0x101   :  { %s5392_s3 = sld [smem:[#allocation51_spill]] }
 0x107   :  { %s4092_s11 = scalar_lea.hbm %s5392_s3, 16 }
 0x108   :  { %p4093_p4 = scmp.ne.s32.totalorder %s5392_s3, %s4092_s11  ;;  %p4096_p5 = scmp.lt.u32.totalorder %s4092_s11, %s5392_s3 }
 0x10a   :  { %p4098_p6 = pnand %p4096_p5, %p4093_p4 }
 0x10c   :  { %4101 = shalt.err (!%p4098_p6)
}
 0x10d   :  { %s4102_s13 = scalar_lea.vmem %s97_s7, 16  ;;  %s4106_s15 = scalar_lea.vmem %s97_s7, 32 }
 0x10e   :  { %p4103_p7 = scmp.ne.s32.totalorder %s97_s7, %s4102_s13  ;;  %p4107_p8 = scmp.lt.s32.totalorder %s97_s7, %s97_s7 }
 0x10f   :  { %p4108_p9 = scmp.lt.s32.totalorder %s4106_s15, %s4102_s13 }
 0x111   :  { %p4109_p10 = por %p4108_p9, %p4107_p8 }
 0x113   :  { %p4110_p11 = pnand %p4109_p10, %p4103_p7 }
 0x115   :  { %4113 = shalt.err (!%p4110_p11)
}
 0x116   :  { %99 = dma.hbm_to_vmem [thread:$0]  %s5392_s3, 16, %s97_s7, [#allocation9]  }
 0x117   :  { %s5393_s4 = sld [smem:[#allocation53_spill]] }
 0x11d   :  { %s4114_s24 = scalar_lea.hbm %s5393_s4, 16 }
 0x11e   :  { %p4115_p12 = scmp.ne.s32.totalorder %s5393_s4, %s4114_s24  ;;  %p4118_p13 = scmp.lt.u32.totalorder %s4114_s24, %s5393_s4 }
 0x120   :  { %p4120_p0 = pnand %p4118_p13, %p4115_p12 }
 0x122   :  { %4123 = shalt.err (!%p4120_p0)
}
 0x123   :  { %s4124_s27 = scalar_lea.vmem %s119_s8, 16  ;;  %s4128_s5 = scalar_lea.vmem %s119_s8, 32 }
 0x124   :  { %p4125_p1 = scmp.ne.s32.totalorder %s119_s8, %s4124_s27  ;;  %p4129_p2 = scmp.lt.s32.totalorder %s119_s8, %s119_s8 }
 0x125   :  { %p4130_p3 = scmp.lt.s32.totalorder %s4128_s5, %s4124_s27 }
 0x127   :  { %p4131_p4 = por %p4130_p3, %p4129_p2 }
 0x129   :  { %p4132_p5 = pnand %p4131_p4, %p4125_p1 }
 0x12b   :  { %4135 = shalt.err (!%p4132_p5)
}
 0x12c   :  { %121 = dma.hbm_to_vmem [thread:$0]  %s5393_s4, 16, %s119_s8, [#allocation12]  }
 0x12d   :  { %s4351_s26 = smov [#allocation16]   ;;  %s4352_s13 = smov [#allocation19]  }
 0x12e   :  { %s138_s29 = sshll.u32 %s4351_s26, 4  ;;  %s159_s15 = sshll.u32 %s4352_s13, 4  ;;  %s139_s29 = int_to_ptr.vmem [resolvable:$true] %s138_s29  ;;  %s160_s15 = int_to_ptr.vmem [resolvable:$true] %s159_s15 }
 0x12f   :  { %s5394_s30 = sld [smem:[#allocation55_spill]] }
 0x135   :  { %s4136_s0 = scalar_lea.hbm %s5394_s30, 16 }
 0x136   :  { %p4137_p6 = scmp.ne.s32.totalorder %s5394_s30, %s4136_s0  ;;  %p4140_p7 = scmp.lt.u32.totalorder %s4136_s0, %s5394_s30 }
 0x138   :  { %p4142_p8 = pnand %p4140_p7, %p4137_p6 }
 0x13a   :  { %4145 = shalt.err (!%p4142_p8)
}
 0x13b   :  { %s4146_s8 = scalar_lea.vmem %s139_s29, 16  ;;  %s4150_s4 = scalar_lea.vmem %s139_s29, 32 }
 0x13c   :  { %p4147_p9 = scmp.ne.s32.totalorder %s139_s29, %s4146_s8  ;;  %p4151_p10 = scmp.lt.s32.totalorder %s139_s29, %s139_s29 }
 0x13d   :  { %p4152_p11 = scmp.lt.s32.totalorder %s4150_s4, %s4146_s8 }
 0x13f   :  { %p4153_p12 = por %p4152_p11, %p4151_p10 }
 0x141   :  { %p4154_p13 = pnand %p4153_p12, %p4147_p9 }
 0x143   :  { %4157 = shalt.err (!%p4154_p13)
}
 0x144   :  { %141 = dma.hbm_to_vmem [thread:$0]  %s5394_s30, 16, %s139_s29, [#allocation15]  }
 0x145   :  { %s5395_s3 = sld [smem:[#allocation57_spill]] }
 0x14b   :  { %s4158_s26 = scalar_lea.hbm %s5395_s3, 1024 }
 0x14c   :  { %p4159_p0 = scmp.ne.s32.totalorder %s5395_s3, %s4158_s26  ;;  %p4162_p1 = scmp.lt.u32.totalorder %s4158_s26, %s5395_s3 }
 0x14e   :  { %p4164_p2 = pnand %p4162_p1, %p4159_p0 }
 0x150   :  { %4167 = shalt.err (!%p4164_p2)
}
 0x151   :  { %s4168_s24 = scalar_lea.vmem %s160_s15, 1024  ;;  %p4173_p4 = scmp.lt.s32.totalorder %s160_s15, %s160_s15 }
 0x152   :  { %p4169_p3 = scmp.ne.s32.totalorder %s160_s15, %s4168_s24  ;;  %p4174_p5 = scmp.lt.s32.totalorder %s4168_s24, %s4168_s24 }
 0x154   :  { %p4175_p6 = por %p4174_p5, %p4173_p4 }
 0x156   :  { %p4176_p7 = pnand %p4175_p6, %p4169_p3 }
 0x158   :  { %4179 = shalt.err (!%p4176_p7)
}
 0x159   :  { %165 = dma.hbm_to_vmem [thread:$0]  %s5395_s3, 1024, %s160_s15, [#allocation18], %s4339_s9, %s4339_s9, %s4340_s6  }
 0x15a   :  { %s4353_s2 = smov [#allocation22]   ;;  %s4354_s10 = smov [#allocation25]  }
 0x15b   :  { %s181_s19 = sshll.u32 %s4353_s2, 4  ;;  %s204_s8 = sshll.u32 %s4354_s10, 4  ;;  %s182_s19 = int_to_ptr.vmem [resolvable:$true] %s181_s19  ;;  %s205_s8 = int_to_ptr.vmem [resolvable:$true] %s204_s8 }
 0x15c   :  { %s4180_s27 = scalar_lea.hbm %s5340_s12, 1024 }
 0x15d   :  { %p4181_p8 = scmp.ne.s32.totalorder %s5340_s12, %s4180_s27  ;;  %p4184_p9 = scmp.lt.u32.totalorder %s4180_s27, %s5340_s12 }
 0x15f   :  { %p4186_p10 = pnand %p4184_p9, %p4181_p8 }
 0x161   :  { %4189 = shalt.err (!%p4186_p10)
}
 0x162   :  { %s4190_s15 = scalar_lea.vmem %s182_s19, 1024  ;;  %p4195_p12 = scmp.lt.s32.totalorder %s182_s19, %s182_s19 }
 0x163   :  { %p4191_p11 = scmp.ne.s32.totalorder %s182_s19, %s4190_s15  ;;  %p4196_p13 = scmp.lt.s32.totalorder %s4190_s15, %s4190_s15 }
 0x165   :  { %p4197_p0 = por %p4196_p13, %p4195_p12 }
 0x167   :  { %p4198_p1 = pnand %p4197_p0, %p4191_p11 }
 0x169   :  { %4201 = shalt.err (!%p4198_p1)
}
 0x16a   :  { %187 = dma.hbm_to_vmem [thread:$0]  %s5340_s12, 1024, %s182_s19, [#allocation21], %s4339_s9, %s4339_s9, %s4340_s6  }
 0x16b   :  { %s4202_s24 = scalar_lea.hbm %s5342_s14, 16 }
 0x16c   :  { %p4203_p2 = scmp.ne.s32.totalorder %s5342_s14, %s4202_s24  ;;  %p4206_p3 = scmp.lt.u32.totalorder %s4202_s24, %s5342_s14 }
 0x16e   :  { %p4208_p4 = pnand %p4206_p3, %p4203_p2 }
 0x170   :  { %4211 = shalt.err (!%p4208_p4)
}
 0x171   :  { %s4212_s4 = scalar_lea.vmem %s205_s8, 16  ;;  %s4216_s11 = scalar_lea.vmem %s205_s8, 32 }
 0x172   :  { %p4213_p5 = scmp.ne.s32.totalorder %s205_s8, %s4212_s4  ;;  %p4217_p6 = scmp.lt.s32.totalorder %s205_s8, %s205_s8 }
 0x173   :  { %p4218_p7 = scmp.lt.s32.totalorder %s4216_s11, %s4212_s4 }
 0x175   :  { %p4219_p8 = por %p4218_p7, %p4217_p6 }
 0x177   :  { %p4220_p9 = pnand %p4219_p8, %p4213_p5 }
 0x179   :  { %4223 = shalt.err (!%p4220_p9)
}
 0x17a   :  { %207 = dma.hbm_to_vmem [thread:$0]  %s5342_s14, 16, %s205_s8, [#allocation24]  }
 0x17b   :  { %s4355_s27 = smov [#allocation28]   ;;  %s4356_s7 = smov [#allocation31]  }
 0x17c   :  { %s223_s5 = sshll.u32 %s4355_s27, 4  ;;  %s257_s26 = sshll.u32 %s4356_s7, 4  ;;  %s224_s5 = int_to_ptr.vmem [resolvable:$true] %s223_s5  ;;  %s258_s26 = int_to_ptr.vmem [resolvable:$true] %s257_s26 }
 0x17d   :  { %s4224_s3 = scalar_lea.hbm %s5344_s16, 1024 }
 0x17e   :  { %p4225_p10 = scmp.ne.s32.totalorder %s5344_s16, %s4224_s3  ;;  %p4228_p11 = scmp.lt.u32.totalorder %s4224_s3, %s5344_s16 }
 0x180   :  { %p4230_p12 = pnand %p4228_p11, %p4225_p10 }
 0x182   :  { %4233 = shalt.err (!%p4230_p12)
}
 0x183   :  { %s4234_s14 = scalar_lea.vmem %s224_s5, 1024  ;;  %p4239_p0 = scmp.lt.s32.totalorder %s224_s5, %s224_s5 }
 0x184   :  { %p4235_p13 = scmp.ne.s32.totalorder %s224_s5, %s4234_s14  ;;  %p4240_p1 = scmp.lt.s32.totalorder %s4234_s14, %s4234_s14 }
 0x186   :  { %p4241_p2 = por %p4240_p1, %p4239_p0 }
 0x188   :  { %p4242_p3 = pnand %p4241_p2, %p4235_p13 }
 0x18a   :  { %4245 = shalt.err (!%p4242_p3)
}
 0x18b   :  { %229 = dma.hbm_to_vmem [thread:$0]  %s5344_s16, 1024, %s224_s5, [#allocation27], %s4339_s9, %s4339_s9, %s4340_s6  }
 0x18c   :  { %s4246_s10 = scalar_lea.hbm %s5351_s23, 1024 }
 0x18d   :  { %p4247_p4 = scmp.ne.s32.totalorder %s5351_s23, %s4246_s10  ;;  %p4250_p5 = scmp.lt.u32.totalorder %s4246_s10, %s5351_s23 }
 0x18f   :  { %p4252_p6 = pnand %p4250_p5, %p4247_p4 }
 0x191   :  { %4255 = shalt.err (!%p4252_p6)
}
 0x192   :  { %s4256_s27 = scalar_lea.vmem %s258_s26, 1024  ;;  %p4261_p8 = scmp.lt.s32.totalorder %s258_s26, %s258_s26 }
 0x193   :  { %p4257_p7 = scmp.ne.s32.totalorder %s258_s26, %s4256_s27  ;;  %p4262_p9 = scmp.lt.s32.totalorder %s4256_s27, %s4256_s27 }
 0x195   :  { %p4263_p10 = por %p4262_p9, %p4261_p8 }
 0x197   :  { %p4264_p11 = pnand %p4263_p10, %p4257_p7 }
 0x199   :  { %4267 = shalt.err (!%p4264_p11)
}
 0x19a   :  { %263 = dma.hbm_to_vmem [thread:$0]  %s5351_s23, 1024, %s258_s26, [#allocation30], %s4339_s9, %s4339_s9, %s4340_s6  }
 0x19b   :  { %s4357_s7 = smov [#allocation32]   ;;  %s4268_s28 = scalar_lea.hbm %s5353_s25, 1024 }
 0x19c   :  { %s271_s13 = sshll.u32 %s4357_s7, 4  ;;  %p4269_p12 = scmp.ne.s32.totalorder %s5353_s25, %s4268_s28  ;;  %s272_s13 = int_to_ptr.vmem [resolvable:$true] %s271_s13 }
 0x19d   :  { %p4272_p13 = scmp.lt.u32.totalorder %s4268_s28, %s5353_s25 }
 0x19f   :  { %p4274_p0 = pnand %p4272_p13, %p4269_p12 }
 0x1a1   :  { %4277 = shalt.err (!%p4274_p0)
}
 0x1a2   :  { %s4278_s8 = scalar_lea.vmem %s272_s13, 1024  ;;  %p4283_p2 = scmp.lt.s32.totalorder %s272_s13, %s272_s13 }
 0x1a3   :  { %p4279_p1 = scmp.ne.s32.totalorder %s272_s13, %s4278_s8  ;;  %p4284_p3 = scmp.lt.s32.totalorder %s4278_s8, %s4278_s8 }
 0x1a5   :  { %p4285_p4 = por %p4284_p3, %p4283_p2 }
 0x1a7   :  { %p4286_p5 = pnand %p4285_p4, %p4279_p1 }
 0x1a9   :  { %4289 = shalt.err (!%p4286_p5)
}
 0x1aa   :  { %277 = dma.hbm_to_vmem [thread:$0]  %s5353_s25, 1024, %s272_s13, [#allocation33], %s4339_s9, %s4339_s9, %s4340_s6  }
 0x1ab   :  { %4312 = dma.done.wait [#allocation3], 1024  }
 0x1ac   :  { %4313 = vsyncadd [#allocation3], 4294966272 }
 0x1ad   :  { %4314 = dma.done.wait [#allocation6], 1088  }
 0x1ae   :  { %4315 = vsyncadd [#allocation6], 4294966208 }
 0x1af   :  { %4316 = dma.done.wait [#allocation9], 1040  }
 0x1b0   :  { %4317 = vsyncadd [#allocation9], 4294966256 }
 0x1b1   :  { %4318 = dma.done.wait [#allocation12], 1040  }
 0x1b2   :  { %4319 = vsyncadd [#allocation12], 4294966256 }
 0x1b3   :  { %4320 = dma.done.wait [#allocation15], 32  }
 0x1b4   :  { %4321 = vsyncadd [#allocation15], 4294967264 }
 0x1b5   :  { %4322 = dma.done.wait [#allocation18], 2048  }
 0x1b6   :  { %4323 = vsyncadd [#allocation18], 4294965248 }
 0x1b7   :  { %4324 = dma.done.wait [#allocation21], 1040  }
 0x1b8   :  { %4325 = vsyncadd [#allocation21], 4294966256 }
 0x1b9   :  { %4326 = dma.done.wait [#allocation24], 32  }
 0x1ba   :  { %4327 = vsyncadd [#allocation24], 4294967264 }
 0x1bb   :  { %4328 = dma.done.wait [#allocation27], 1040  }
 0x1bc   :  { %4329 = vsyncadd [#allocation27], 4294966256 }
 0x1bd   :  { %4330 = dma.done.wait [#allocation30], 2048  }
 0x1be   :  { %4331 = vsyncadd [#allocation30], 4294965248 }
 0x1bf   :  { %4332 = dma.done.wait [#allocation33], 1024  }
 0x1c0   :  { %4333 = vsyncadd [#allocation33], 4294966272  ;;  %v3739_v0 = vld [vmem:[#allocation7] sm:$0xff]   ;;  %v3740_v1 = vld [vmem:[#allocation7 + $0x8] sm:$0xff]   ;;  %vm4359_vm0 = vmmov 0   ;;  %s5396_s24 = sld [smem:[#allocation59_spill]] }
 0x1c1   :  { %3286 = vmatprep.subr.bf16.mxu0 %v3739_v0  ;;  %v3741_v2 = vld [vmem:[#allocation7 + $0x10] sm:$0xff]   ;;  %v3742_v3 = vld [vmem:[#allocation7 + $0x18] sm:$0xff]   ;;  %v3743_v5 = vld [vmem:[#allocation7 + $0x20] sm:$0xff]   ;;  %s5397_s23 = sld [smem:[#allocation60_spill]]  ;;  %s4360_s26 = smov [#allocation34]  }
 0x1c2   :  { %3287 = vmatpush3.bf16.msra.mxu0 %v3739_v0  ;;  %v4774_v4 = vld [vmem:[#allocation2] sm:$0xff]   ;;  %v3744_v6 = vld [vmem:[#allocation7 + $0x28] sm:$0xff]   ;;  %v3745_v9 = vld [vmem:[#allocation7 + $0x30] sm:$0xff]   ;;  %s2956_s25 = sshll.u32 %s4360_s26, 4  ;;  %s2957_s25 = int_to_ptr.vmem [resolvable:$true] %s2956_s25 }
 0x1c3   :  { %3288 = vmatprep.subr.bf16.mxu0 %v3740_v1  ;;  %3302 = vmatprep.mubr.bf16.mxu0 %v4774_v4  ;;  %v3755_v7 = vld [vmem:[#allocation8] sm:$0xff]   ;;  %v3756_v8 = vld [vmem:[#allocation8 + $0x8] sm:$0xff]   ;;  %v3757_v10 = vld [vmem:[#allocation8 + $0x10] sm:$0xff]   ;;  %s4290_s9 = scalar_lea.vmem %s2957_s25, 128  ;;  %p4295_p7 = scmp.lt.s32.totalorder %s2957_s25, %s2957_s25 }
 0x1c4   :  { %3318 = vmatprep.subr.bf16.mxu1 %v3755_v7  ;;  %v3746_v11 = vld [vmem:[#allocation7 + $0x38] sm:$0xff]   ;;  %v3759_v13 = vld [vmem:[#allocation8 + $0x20] sm:$0xff]   ;;  %v4779_v15 = vld [vmem:[#allocation2 + $0x10] sm:$0xff]   ;;  %p4291_p6 = scmp.ne.s32.totalorder %s2957_s25, %s4290_s9  ;;  %p4296_p8 = scmp.lt.s32.totalorder %s4290_s9, %s4290_s9 }
 0x1c5   :  { %3319 = vmatpush3.bf16.msra.mxu1 %v3755_v7  ;;  %v3758_v12 = vld [vmem:[#allocation8 + $0x18] sm:$0xff]   ;;  %v4777_v14 = vld [vmem:[#allocation2 + $0x8] sm:$0xff]   ;;  %v3761_v17 = vld [vmem:[#allocation8 + $0x30] sm:$0xff]  }
 0x1c6   :  { %3289 = vmatpush3.bf16.msra.mxu0 %v3740_v1  ;;  %3320 = vmatprep.subr.bf16.mxu1 %v3756_v8  ;;  %v3760_v16 = vld [vmem:[#allocation8 + $0x28] sm:$0xff]   ;;  %v4783_v18 = vld [vmem:[#allocation2 + $0x18] sm:$0xff]   ;;  %v4785_v19 = vld [vmem:[#allocation2 + $0x20] sm:$0xff]   ;;  %p4297_p9 = por %p4296_p8, %p4295_p7 }
 0x1c7   :  { %3290 = vmatprep.subr.bf16.mxu0 %v3741_v2  ;;  %v4789_v20 = vld [vmem:[#allocation2 + $0x28] sm:$0xff]   ;;  %v4791_v21 = vld [vmem:[#allocation2 + $0x30] sm:$0xff]   ;;  %v4795_v22 = vld [vmem:[#allocation2 + $0x38] sm:$0xff]  }
 0x1c8   :  { %v3762_v23 = vld [vmem:[#allocation8 + $0x38] sm:$0xff]   ;;  %v3763_v24 = vld [vmem:[#allocation11] sm:$0xff]   ;;  %v3764_v25 = vld [vmem:[#allocation11 + $0x8] sm:$0xff]   ;;  %p4298_p10 = pnand %p4297_p9, %p4291_p6 }
 0x1c9   :  { %3321 = vmatpush3.bf16.msra.mxu1 %v3756_v8  ;;  %v3765_v26 = vld [vmem:[#allocation11 + $0x10] sm:$0xff]   ;;  %v3766_v27 = vld [vmem:[#allocation11 + $0x18] sm:$0xff]   ;;  %v3767_v28 = vld [vmem:[#allocation11 + $0x20] sm:$0xff]  }
 0x1ca   :  { %3291 = vmatpush3.bf16.msra.mxu0 %v3741_v2  ;;  %3322 = vmatprep.subr.bf16.mxu1 %v3757_v10  ;;  %v3768_v29 = vld [vmem:[#allocation11 + $0x28] sm:$0xff]   ;;  %v3769_v54 = vld [vmem:[#allocation11 + $0x30] sm:$0xff]   ;;  %v3770_v55 = vld [vmem:[#allocation11 + $0x38] sm:$0xff]  }
 0x1cb   :  { %3292 = vmatprep.subr.bf16.mxu0 %v3742_v3  ;;  %v2991_v56 = vld [vmem:[#allocation10] ss:$0 sm:$0xff] }
 0x1cd   :  { %3323 = vmatpush3.bf16.msra.mxu1 %v3757_v10 }
 0x1ce   :  { %3293 = vmatpush3.bf16.msra.mxu0 %v3742_v3  ;;  %3324 = vmatprep.subr.bf16.mxu1 %v3758_v12 }
 0x1cf   :  { %3294 = vmatprep.subr.bf16.mxu0 %v3743_v5 }
 0x1d1   :  { %3325 = vmatpush3.bf16.msra.mxu1 %v3758_v12 }
 0x1d2   :  { %3295 = vmatpush3.bf16.msra.mxu0 %v3743_v5  ;;  %3326 = vmatprep.subr.bf16.mxu1 %v3759_v13 }
 0x1d3   :  { %3296 = vmatprep.subr.bf16.mxu0 %v3744_v6 }
 0x1d5   :  { %3327 = vmatpush3.bf16.msra.mxu1 %v3759_v13 }
 0x1d6   :  { %3297 = vmatpush3.bf16.msra.mxu0 %v3744_v6  ;;  %3328 = vmatprep.subr.bf16.mxu1 %v3760_v16 }
 0x1d7   :  { %3298 = vmatprep.subr.bf16.mxu0 %v3745_v9 }
 0x1d9   :  { %3329 = vmatpush3.bf16.msra.mxu1 %v3760_v16 }
 0x1da   :  { %3299 = vmatpush3.bf16.msra.mxu0 %v3745_v9  ;;  %3330 = vmatprep.subr.bf16.mxu1 %v3761_v17 }
 0x1db   :  { %3300 = vmatprep.subr.bf16.mxu0 %v3746_v11 }
 0x1dd   :  { %3331 = vmatpush3.bf16.msra.mxu1 %v3761_v17 }
 0x1de   :  { %3301 = vmatpush3.bf16.msra.mxu0 %v3746_v11  ;;  %3332 = vmatprep.subr.bf16.mxu1 %v3762_v23 }
 0x1df   :  { %3350 = vmatprep.subr.bf16.mxu0 %v3763_v24 }
 0x1e1   :  { %3303 = vmatmul.mubr.bf16.vlgmr.msra.gmra.mrb[0].mxu0 %v4777_v14  ;;  %3333 = vmatpush3.bf16.msra.mxu1 %v3762_v23 }
 0x1e2   :  { %3306 = vmatprep.mubr.bf16.mxu0 %v4779_v15  ;;  %3351 = vmatpush3.bf16.msra.mxu0 %v3763_v24 }
 0x1e3   :  { %3352 = vmatprep.subr.bf16.mxu0 %v3764_v25 }
 0x1e6   :  { %3353 = vmatpush3.bf16.msra.mxu0 %v3764_v25 }
 0x1e7   :  { %3354 = vmatprep.subr.bf16.mxu0 %v3765_v26 }
 0x1e9   :  { %3307 = vmatmul.mubr.bf16.gmra.mrb[4].mxu0 %v4783_v18 }
 0x1ea   :  { %3310 = vmatprep.mubr.bf16.mxu0 %v4785_v19  ;;  %3355 = vmatpush3.bf16.msra.mxu0 %v3765_v26 }
 0x1eb   :  { %3356 = vmatprep.subr.bf16.mxu0 %v3766_v27 }
 0x1ee   :  { %3357 = vmatpush3.bf16.msra.mxu0 %v3766_v27 }
 0x1ef   :  { %3358 = vmatprep.subr.bf16.mxu0 %v3767_v28 }
 0x1f1   :  { %3311 = vmatmul.mubr.bf16.gmra.mrb[8].mxu0 %v4789_v20 }
 0x1f2   :  { %3314 = vmatprep.mubr.bf16.mxu0 %v4791_v21  ;;  %3359 = vmatpush3.bf16.msra.mxu0 %v3767_v28 }
 0x1f3   :  { %3360 = vmatprep.subr.bf16.mxu0 %v3768_v29 }
 0x1f6   :  { %3361 = vmatpush3.bf16.msra.mxu0 %v3768_v29 }
 0x1f7   :  { %3362 = vmatprep.subr.bf16.mxu0 %v3769_v54 }
 0x1f9   :  { %3315 = vmatmul.mubr.bf16.gmra.mrb[12].mxu0 %v4795_v22 }
 0x1fa   :  { %3363 = vmatpush3.bf16.msra.mxu0 %v3769_v54 }
 0x1fb   :  { %3364 = vmatprep.subr.bf16.mxu0 %v3770_v55 }
 0x1fe   :  { %3365 = vmatpush3.bf16.msra.mxu0 %v3770_v55 }
 0x2b4   :  { %v3304_v30 = vpop.f32.mrb[0].mxu0 }
 0x2b5   :  { %v569_v31 = vpop.f32.mrb[1].mxu0 }
 0x2b6   :  { %v3305_v32 = vpop.f32.mrb[2].mxu0 }
 0x2b7   :  { %v633_v33 = vpack.c.bf16 %v3305_v32, %v3304_v30  ;;  %v572_v34 = vpop.f32.mrb[3].mxu0 }
 0x2b8   :  { %v632_v35 = vpack.c.bf16 %v572_v34, %v569_v31 }
 0x2ba   :  { %3334 = vmatprep.mubr.bf16.mxu1 %v632_v35 }
 0x2bb   :  { %3335 = vmatmul.mubr.bf16.vlgmr.msra.gmra.mrb[0].mxu1 %v633_v33 }
 0x2bc   :  { %v3308_v36 = vpop.f32.mrb[4].mxu0 }
 0x2bd   :  { %v585_v37 = vpop.f32.mrb[5].mxu0 }
 0x2be   :  { %v3309_v38 = vpop.f32.mrb[6].mxu0 }
 0x2bf   :  { %v635_v39 = vpack.c.bf16 %v3309_v38, %v3308_v36  ;;  %v588_v40 = vpop.f32.mrb[7].mxu0 }
 0x2c0   :  { %v634_v41 = vpack.c.bf16 %v588_v40, %v585_v37 }
 0x2c2   :  { %3338 = vmatprep.mubr.bf16.mxu1 %v634_v41 }
 0x2c3   :  { %3339 = vmatmul.mubr.bf16.gmra.mrb[4].mxu1 %v635_v39 }
 0x2c4   :  { %v3312_v42 = vpop.f32.mrb[8].mxu0 }
 0x2c5   :  { %v601_v43 = vpop.f32.mrb[9].mxu0 }
 0x2c6   :  { %v3313_v44 = vpop.f32.mrb[10].mxu0 }
 0x2c7   :  { %v637_v45 = vpack.c.bf16 %v3313_v44, %v3312_v42  ;;  %v604_v46 = vpop.f32.mrb[11].mxu0 }
 0x2c8   :  { %v636_v47 = vpack.c.bf16 %v604_v46, %v601_v43 }
 0x2ca   :  { %3342 = vmatprep.mubr.bf16.mxu1 %v636_v47 }
 0x2cb   :  { %3343 = vmatmul.mubr.bf16.gmra.mrb[8].mxu1 %v637_v45 }
 0x2cc   :  { %v3316_v48 = vpop.f32.mrb[12].mxu0 }
 0x2cd   :  { %v617_v49 = vpop.f32.mrb[13].mxu0 }
 0x2ce   :  { %v3317_v50 = vpop.f32.mrb[14].mxu0 }
 0x2cf   :  { %v639_v51 = vpack.c.bf16 %v3317_v50, %v3316_v48  ;;  %v620_v52 = vpop.f32.mrb[15].mxu0 }
 0x2d0   :  { %v638_v53 = vpack.c.bf16 %v620_v52, %v617_v49 }
 0x2d2   :  { %3346 = vmatprep.mubr.bf16.mxu1 %v638_v53 }
 0x2d3   :  { %3347 = vmatmul.mubr.bf16.gmra.mrb[12].mxu1 %v639_v51 }
 0x38e   :  { %v3336_v57 = vpop.f32.mrb[0].mxu1 }
 0x38f   :  { %v754_v58 = vadd.f32 %v3336_v57, %v2991_v56  ;;  %v745_v59 = vpop.f32.mrb[1].mxu1 }
 0x390   :  { %v746_v60 = vadd.f32 %v2991_v56, %v745_v59  ;;  %v3337_v61 = vpop.f32.mrb[2].mxu1  ;;  %v4800_v59 = vld [vmem:[#allocation13] ss:$0 sm:$0xff] }
 0x391   :  { %v757_v62 = vadd.f32 %v3337_v61, %v2991_v56  ;;  %v748_v63 = vpop.f32.mrb[3].mxu1  ;;  %v810_v1 = vmax.f32 %v754_v58, 0.0  ;;  %v4358_v58 = vmov 0.0  }
 0x392   :  { %v749_v0 = vadd.f32 %v2991_v56, %v748_v63  ;;  %v808_v3 = vmax.f32 %v746_v60, 0.0  ;;  %3382 = vmatprep.subr.bf16.mxu1 %v4358_v58  ;;  %3398 = vmatprep.mubr.msk.bf16.mxu1 %vm4359_vm0, %v4358_v58 }
 0x393   :  { %v811_v2 = vmax.f32 %v757_v62, 0.0 }
 0x394   :  { %v809_v5 = vmax.f32 %v749_v0, 0.0 }
 0x395   :  { %v825_v6 = vpack.c.bf16 %v811_v2, %v810_v1 }
 0x396   :  { %v824_v7 = vpack.c.bf16 %v809_v5, %v808_v3  ;;  %v3340_v8 = vpop.f32.mrb[4].mxu1 }
 0x397   :  { %v770_v9 = vadd.f32 %v3340_v8, %v2991_v56  ;;  %v761_v10 = vpop.f32.mrb[5].mxu1 }
 0x398   :  { %v762_v11 = vadd.f32 %v2991_v56, %v761_v10  ;;  %v3341_v12 = vpop.f32.mrb[6].mxu1  ;;  %3366 = vmatprep.mubr.bf16.mxu0 %v824_v7 }
 0x399   :  { %v773_v13 = vadd.f32 %v3341_v12, %v2991_v56  ;;  %v764_v16 = vpop.f32.mrb[7].mxu1  ;;  %3367 = vmatmul.mubr.bf16.vlgmr.msra.gmra.mrb[16].mxu0 %v825_v6  ;;  %v814_v23 = vmax.f32 %v770_v9, 0.0 }
 0x39a   :  { %v765_v17 = vadd.f32 %v2991_v56, %v764_v16  ;;  %v812_v25 = vmax.f32 %v762_v11, 0.0 }
 0x39b   :  { %v815_v24 = vmax.f32 %v773_v13, 0.0 }
 0x39c   :  { %v813_v26 = vmax.f32 %v765_v17, 0.0 }
 0x39d   :  { %v827_v27 = vpack.c.bf16 %v815_v24, %v814_v23 }
 0x39e   :  { %v826_v28 = vpack.c.bf16 %v813_v26, %v812_v25  ;;  %v3344_v29 = vpop.f32.mrb[8].mxu1 }
 0x39f   :  { %v786_v30 = vadd.f32 %v3344_v29, %v2991_v56  ;;  %v777_v31 = vpop.f32.mrb[9].mxu1 }
 0x3a0   :  { %v778_v32 = vadd.f32 %v2991_v56, %v777_v31  ;;  %v3345_v33 = vpop.f32.mrb[10].mxu1  ;;  %3370 = vmatprep.mubr.bf16.mxu0 %v826_v28 }
 0x3a1   :  { %v789_v34 = vadd.f32 %v3345_v33, %v2991_v56  ;;  %v780_v35 = vpop.f32.mrb[11].mxu1  ;;  %3371 = vmatmul.mubr.bf16.gmra.mrb[20].mxu0 %v827_v27  ;;  %v818_v37 = vmax.f32 %v786_v30, 0.0 }
 0x3a2   :  { %v781_v36 = vadd.f32 %v2991_v56, %v780_v35  ;;  %v816_v39 = vmax.f32 %v778_v32, 0.0 }
 0x3a3   :  { %v819_v38 = vmax.f32 %v789_v34, 0.0 }
 0x3a4   :  { %v817_v40 = vmax.f32 %v781_v36, 0.0 }
 0x3a5   :  { %v829_v41 = vpack.c.bf16 %v819_v38, %v818_v37 }
 0x3a6   :  { %v828_v42 = vpack.c.bf16 %v817_v40, %v816_v39  ;;  %v3348_v43 = vpop.f32.mrb[12].mxu1 }
 0x3a7   :  { %v802_v44 = vadd.f32 %v3348_v43, %v2991_v56  ;;  %v793_v45 = vpop.f32.mrb[13].mxu1 }
 0x3a8   :  { %v794_v46 = vadd.f32 %v2991_v56, %v793_v45  ;;  %v3349_v47 = vpop.f32.mrb[14].mxu1  ;;  %3374 = vmatprep.mubr.bf16.mxu0 %v828_v42 }
 0x3a9   :  { %v805_v48 = vadd.f32 %v3349_v47, %v2991_v56  ;;  %v796_v49 = vpop.f32.mrb[15].mxu1  ;;  %3375 = vmatmul.mubr.bf16.gmra.mrb[24].mxu0 %v829_v41  ;;  %v822_v51 = vmax.f32 %v802_v44, 0.0 }
 0x3aa   :  { %v797_v50 = vadd.f32 %v2991_v56, %v796_v49  ;;  %v820_v53 = vmax.f32 %v794_v46, 0.0 }
 0x3ab   :  { %v823_v52 = vmax.f32 %v805_v48, 0.0 }
 0x3ac   :  { %v821_v54 = vmax.f32 %v797_v50, 0.0 }
 0x3ad   :  { %v831_v55 = vpack.c.bf16 %v823_v52, %v822_v51 }
 0x3ae   :  { %v830_v57 = vpack.c.bf16 %v821_v54, %v820_v53 }
 0x3b0   :  { %3378 = vmatprep.mubr.bf16.mxu0 %v830_v57 }
 0x3b1   :  { %3379 = vmatmul.mubr.bf16.gmra.mrb[28].mxu0 %v831_v55 }
 0x3b2   :  { %3418 = vmatprep.mubr.bf16.mxu0 %v4774_v4 }
 0x46c   :  { %v3368_v60 = vpop.f32.mrb[16].mxu0 }
 0x46d   :  { %v4803_v61 = vadd.f32 %v3368_v60, %v4800_v59  ;;  %v937_v56 = vpop.f32.mrb[17].mxu0 }
 0x46e   :  { %v938_v62 = vadd.f32 %v4800_v59, %v937_v56  ;;  %v3369_v63 = vpop.f32.mrb[18].mxu0 }
 0x46f   :  { %v1002_v0 = vmax.f32 %v4803_v61, 0.0  ;;  %v4808_v1 = vadd.f32 %v3369_v63, %v4800_v59  ;;  %v940_v2 = vpop.f32.mrb[19].mxu0 }
 0x470   :  { %v4810_v4 = vmax.f32 %v938_v62, 0.0  ;;  %v941_v3 = vadd.f32 %v4800_v59, %v940_v2 }
 0x471   :  { %v1018_v5 = vmul.f32 0.0, %v1002_v0  ;;  %v1003_v6 = vmax.f32 %v4808_v1, 0.0 }
 0x472   :  { %v4816_v7 = vmax.f32 %v941_v3, 0.0  ;;  %v1053_v8 = vmul.f32 %v4810_v4, %v4810_v4 }
 0x473   :  { %v1055_v12 = vmul.f32 %v1018_v5, %v1018_v5  ;;  %v1019_v17 = vmul.f32 0.0, %v1003_v6 }
 0x474   :  { %v1032_v9 = vadd.f32 %v4816_v7, %v4810_v4  ;;  %v1054_v10 = vmul.f32 %v4816_v7, %v4816_v7  ;;  %v3372_v11 = vpop.f32.mrb[20].mxu0 }
 0x475   :  { %v4825_v13 = vadd.f32 %v3372_v11, %v4800_v59  ;;  %v953_v16 = vpop.f32.mrb[21].mxu0  ;;  %v1056_v34 = vmul.f32 %v1019_v17, %v1019_v17 }
 0x476   :  { %v1033_v23 = vadd.f32 %v1032_v9, %v1018_v5  ;;  %v1069_v24 = vadd.f32 %v1054_v10, %v1053_v8  ;;  %v4830_v25 = vadd.f32 %v4800_v59, %v953_v16  ;;  %v3373_v26 = vpop.f32.mrb[22].mxu0 }
 0x477   :  { %v1006_v27 = vmax.f32 %v4825_v13, 0.0  ;;  %v4834_v28 = vadd.f32 %v3373_v26, %v4800_v59  ;;  %v956_v29 = vpop.f32.mrb[23].mxu0 }
 0x478   :  { %v1070_v30 = vadd.f32 %v1069_v24, %v1055_v12  ;;  %v1004_v31 = vmax.f32 %v4830_v25, 0.0  ;;  %v4838_v32 = vadd.f32 %v4800_v59, %v956_v29  ;;  %v1034_v36 = vadd.f32 %v1033_v23, %v1019_v17 }
 0x479   :  { %v1007_v33 = vmax.f32 %v4834_v28, 0.0  ;;  %v1022_v38 = vmul.f32 0.0, %v1006_v27 }
 0x47a   :  { %v1020_v35 = vmul.f32 0.0, %v1004_v31  ;;  %v1005_v37 = vmax.f32 %v4838_v32, 0.0  ;;  %v1071_v41 = vadd.f32 %v1070_v30, %v1056_v34 }
 0x47b   :  { %v1023_v44 = vmul.f32 0.0, %v1007_v33  ;;  %v1059_v52 = vmul.f32 %v1022_v38, %v1022_v38 }
 0x47c   :  { %v1035_v39 = vadd.f32 %v1034_v36, %v1020_v35  ;;  %v1057_v40 = vmul.f32 %v1020_v35, %v1020_v35  ;;  %v1021_v42 = vmul.f32 0.0, %v1005_v37  ;;  %v3376_v43 = vpop.f32.mrb[24].mxu0 }
 0x47d   :  { %v4853_v45 = vadd.f32 %v3376_v43, %v4800_v59  ;;  %v969_v46 = vpop.f32.mrb[25].mxu0  ;;  %v1060_v63 = vmul.f32 %v1023_v44, %v1023_v44 }
 0x47e   :  { %v1072_v47 = vadd.f32 %v1071_v41, %v1057_v40  ;;  %v1036_v48 = vadd.f32 %v1035_v39, %v1021_v42  ;;  %v1058_v49 = vmul.f32 %v1021_v42, %v1021_v42  ;;  %v4856_v50 = vadd.f32 %v4800_v59, %v969_v46  ;;  %v3377_v51 = vpop.f32.mrb[26].mxu0 }
 0x47f   :  { %v1010_v53 = vmax.f32 %v4853_v45, 0.0  ;;  %v4860_v54 = vadd.f32 %v3377_v51, %v4800_v59  ;;  %v972_v55 = vpop.f32.mrb[27].mxu0 }
 0x480   :  { %v1037_v57 = vadd.f32 %v1036_v48, %v1022_v38  ;;  %v1073_v60 = vadd.f32 %v1072_v47, %v1058_v49  ;;  %v1008_v56 = vmax.f32 %v4856_v50, 0.0  ;;  %v4864_v62 = vadd.f32 %v4800_v59, %v972_v55 }
 0x481   :  { %v1011_v2 = vmax.f32 %v4860_v54, 0.0  ;;  %v1026_v10 = vmul.f32 0.0, %v1010_v53 }
 0x482   :  { %v1074_v3 = vadd.f32 %v1073_v60, %v1059_v52  ;;  %v1024_v5 = vmul.f32 0.0, %v1008_v56  ;;  %v1038_v8 = vadd.f32 %v1037_v57, %v1023_v44  ;;  %v1009_v9 = vmax.f32 %v4864_v62, 0.0 }
 0x483   :  { %v1027_v24 = vmul.f32 0.0, %v1011_v2  ;;  %v1063_v39 = vmul.f32 %v1026_v10, %v1026_v10 }
 0x484   :  { %v1039_v11 = vadd.f32 %v1038_v8, %v1024_v5  ;;  %v1061_v12 = vmul.f32 %v1024_v5, %v1024_v5  ;;  %v1075_v16 = vadd.f32 %v1074_v3, %v1060_v63  ;;  %v1025_v17 = vmul.f32 0.0, %v1009_v9  ;;  %v3380_v23 = vpop.f32.mrb[28].mxu0 }
 0x485   :  { %v4877_v26 = vadd.f32 %v3380_v23, %v4800_v59  ;;  %v985_v29 = vpop.f32.mrb[29].mxu0  ;;  %v1064_v48 = vmul.f32 %v1027_v24, %v1027_v24 }
 0x486   :  { %v1076_v30 = vadd.f32 %v1075_v16, %v1061_v12  ;;  %v1040_v34 = vadd.f32 %v1039_v11, %v1025_v17  ;;  %v1062_v35 = vmul.f32 %v1025_v17, %v1025_v17  ;;  %v4880_v36 = vadd.f32 %v4800_v59, %v985_v29  ;;  %v3381_v38 = vpop.f32.mrb[30].mxu0 }
 0x487   :  { %v1014_v40 = vmax.f32 %v4877_v26, 0.0  ;;  %v4884_v41 = vadd.f32 %v3381_v38, %v4800_v59  ;;  %v988_v42 = vpop.f32.mrb[31].mxu0  ;;  %v3771_v26 = vld [vmem:[#allocation19] sm:$0xff]  }
 0x488   :  { %v1041_v43 = vadd.f32 %v1040_v34, %v1026_v10  ;;  %v1077_v44 = vadd.f32 %v1076_v30, %v1062_v35  ;;  %v1012_v46 = vmax.f32 %v4880_v36, 0.0  ;;  %v989_v47 = vadd.f32 %v4800_v59, %v988_v42 }
 0x489   :  { %v1015_v49 = vmax.f32 %v4884_v41, 0.0  ;;  %v1030_v60 = vmul.f32 0.0, %v1014_v40  ;;  %v3772_v41 = vld [vmem:[#allocation19 + $0x8] sm:$0xff]  }
 0x48a   :  { %v1078_v51 = vadd.f32 %v1077_v44, %v1063_v39  ;;  %v1028_v52 = vmul.f32 0.0, %v1012_v46  ;;  %v1042_v55 = vadd.f32 %v1041_v43, %v1027_v24  ;;  %v1013_v57 = vmax.f32 %v989_v47, 0.0 }
 0x48b   :  { %v1031_v59 = vmul.f32 0.0, %v1015_v49  ;;  %v1067_v16 = vmul.f32 %v1030_v60, %v1030_v60 }
 0x48c   :  { %v1043_v63 = vadd.f32 %v1042_v55, %v1028_v52  ;;  %v1065_v3 = vmul.f32 %v1028_v52, %v1028_v52  ;;  %v1079_v5 = vadd.f32 %v1078_v51, %v1064_v48  ;;  %v1029_v8 = vmul.f32 0.0, %v1013_v57 }
 0x48d   :  { %v1068_v29 = vmul.f32 %v1031_v59, %v1031_v59 }
 0x48e   :  { %v1080_v10 = vadd.f32 %v1079_v5, %v1065_v3  ;;  %v1044_v11 = vadd.f32 %v1043_v63, %v1029_v8  ;;  %v1066_v12 = vmul.f32 %v1029_v8, %v1029_v8 }
 0x490   :  { %v1045_v17 = vadd.f32 %v1044_v11, %v1030_v60  ;;  %v1081_v23 = vadd.f32 %v1080_v10, %v1066_v12  ;;  %v1103_v11 = vlaneseq }
 0x492   :  { %v1046_v30 = vadd.f32 %v1045_v17, %v1031_v59  ;;  %v1082_v24 = vadd.f32 %v1081_v23, %v1067_v16  ;;  %v1104_v12 = vshrl.u32 %v1103_v11, 7  ;;  %v1095_v16 = vld [vmem:[#allocation14] sm:$0x1]  ;;  %v3775_v11 = vld [vmem:[#allocation19 + $0x20] sm:$0xff]  }
 0x494   :  { %v1047_v34 = vrot.slane %v1046_v30, 4  ;;  %v1083_v35 = vadd.f32 %v1082_v24, %v1068_v29  ;;  %v4895_v17 = vsub.s32 0, %v1104_v12  ;;  %v3776_v12 = vld [vmem:[#allocation19 + $0x28] sm:$0xff]  }
 0x496   :  { %v1048_v38 = vadd.f32 %v1047_v34, %v1046_v30  ;;  %v1084_v39 = vrot.slane %v1083_v35, 4  ;;  %v1099_v30 = vld [vmem:[#allocation16] sm:$0x1] }
 0x498   :  { %v1049_v42 = vrot.slane %v1048_v38, 2  ;;  %v1085_v43 = vadd.f32 %v1084_v39, %v1083_v35 }
 0x49a   :  { %v1050_v44 = vadd.f32 %v1049_v42, %v1048_v38  ;;  %v1086_v47 = vrot.slane %v1085_v43, 2 }
 0x49c   :  { %v1051_v48 = vrot.slane %v1050_v44, 1  ;;  %v1087_v51 = vadd.f32 %v1086_v47, %v1085_v43 }
 0x49e   :  { %v1052_v52 = vadd.f32 %v1051_v48, %v1050_v44  ;;  %v1088_v55 = vrot.slane %v1087_v51, 1 }
 0x4a0   :  { %v1089_v63 = vadd.f32 %v1088_v55, %v1087_v51  ;;  %v1090_v3 = vmul.f32 0.0625, %v1052_v52 }
 0x4a2   :  { %v1091_v5 = vmul.f32 0.0625, %v1089_v63  ;;  %v1092_v60 = vmul.f32 %v1090_v3, %v1090_v3 }
 0x4a4   :  { %v1093_v8 = vsub.f32 %v1091_v5, %v1092_v60 }
 0x4a6   :  { %v1094_v10 = vmax.f32 %v1093_v8, 0.0 }
 0x4a8   :  { %v1096_v59 = vadd.f32 1e-05, %v1094_v10 }
 0x4aa   :  { %3835 = vrsqrt.f32 %v1096_v59  ;;  %v3774_v59 = vld [vmem:[#allocation19 + $0x18] sm:$0xff]  }
 0x4b4   :  { %v3836_v23 = vpop.eup %3835 }
 0x4b5   :  { %v1098_v29 = vmul.f32 %v3836_v23, %v1095_v16  ;;  %v3783_v16 = vld [vmem:[#allocation22 + $0x20] sm:$0xff]  }
 0x4b7   :  { %v1100_v24 = vmul.f32 %v1098_v29, %v1090_v3  ;;  %v1106_v34 = vrot.slane %v1098_v29, %v4895_v17 }
 0x4b9   :  { %v1101_v35 = vsub.f32 %v1099_v30, %v1100_v24  ;;  %v1121_v38 = vmul.f32 %v1106_v34, %v1013_v57  ;;  %v1108_v39 = vmul.f32 %v1106_v34, %v4810_v4  ;;  %v1109_v42 = vmul.f32 %v1106_v34, %v4816_v7 }
 0x4ba   :  { %v1110_v43 = vmul.f32 %v1106_v34, %v1002_v0  ;;  %v1111_v44 = vmul.f32 %v1106_v34, %v1003_v6  ;;  %v1112_v47 = vmul.f32 %v1106_v34, %v1004_v31  ;;  %v1113_v48 = vmul.f32 %v1106_v34, %v1005_v37 }
 0x4bb   :  { %v1128_v51 = vrot.slane %v1101_v35, %v4895_v17  ;;  %v1114_v57 = vmul.f32 %v1106_v34, %v1006_v27  ;;  %v1115_v4 = vmul.f32 %v1106_v34, %v1007_v33  ;;  %v1116_v61 = vmul.f32 %v1106_v34, %v1008_v56 }
 0x4bc   :  { %v1117_v0 = vmul.f32 %v1106_v34, %v1009_v9  ;;  %v1118_v1 = vmul.f32 %v1106_v34, %v1010_v53  ;;  %v1119_v6 = vmul.f32 %v1106_v34, %v1011_v2  ;;  %v1120_v7 = vmul.f32 %v1106_v34, %v1012_v46 }
 0x4bd   :  { %v1143_v13 = vadd.f32 %v1128_v51, %v1121_v38  ;;  %v1130_v25 = vadd.f32 %v1128_v51, %v1108_v39  ;;  %v1131_v27 = vadd.f32 %v1128_v51, %v1109_v42  ;;  %v1132_v28 = vadd.f32 %v1128_v51, %v1110_v43 }
 0x4be   :  { %v1133_v31 = vadd.f32 %v1128_v51, %v1111_v44  ;;  %v1134_v32 = vadd.f32 %v1128_v51, %v1112_v47  ;;  %v1135_v33 = vadd.f32 %v1128_v51, %v1113_v48  ;;  %v1136_v37 = vadd.f32 %v1128_v51, %v1114_v57 }
 0x4bf   :  { %v1146_v50 = vpack.c.bf16 %v1131_v27, %v1130_v25  ;;  %v1137_v56 = vadd.f32 %v1128_v51, %v1115_v4  ;;  %v1138_v62 = vadd.f32 %v1128_v51, %v1116_v61  ;;  %v1139_v9 = vadd.f32 %v1128_v51, %v1117_v0 }
 0x4c0   :  { %v1147_v45 = vpack.c.bf16 %v1133_v31, %v1132_v28  ;;  %v1148_v53 = vpack.c.bf16 %v1135_v33, %v1134_v32  ;;  %v1140_v52 = vadd.f32 %v1128_v51, %v1118_v1  ;;  %v1141_v54 = vadd.f32 %v1128_v51, %v1119_v6 }
 0x4c1   :  { %3383 = vmatpush3.bf16.msra.mxu1 %v1146_v50  ;;  %3402 = vmatprep.subr.bf16.mxu0 %v1146_v50  ;;  %v1149_v2 = vpack.c.bf16 %v1137_v56, %v1136_v37  ;;  %v1150_v36 = vpack.c.bf16 %v1139_v9, %v1138_v62  ;;  %v1142_v46 = vadd.f32 %v1128_v51, %v1120_v7  ;;  %v3785_v37 = vld [vmem:[#allocation22 + $0x30] sm:$0xff]   ;;  %v3009_v56 = vld [vmem:[#allocation20] ss:$0 sm:$0xff] }
 0x4c2   :  { %3403 = vmatpush3.bf16.msra.mxu0 %v1146_v50  ;;  %3384 = vmatprep.subr.bf16.mxu1 %v4358_v58  ;;  %v1151_v55 = vpack.c.bf16 %v1141_v54, %v1140_v52  ;;  %v1122_v63 = vmul.f32 %v1106_v34, %v1014_v40  ;;  %v1123_v3 = vmul.f32 %v1106_v34, %v1015_v49  ;;  %v4934_v40 = vld [vmem:[#allocation5] sm:$0xf]  ;;  %v3786_v50 = vld [vmem:[#allocation22 + $0x38] sm:$0xff]  }
 0x4c3   :  { %3404 = vmatprep.subr.bf16.mxu0 %v1147_v45  ;;  %v1152_v5 = vpack.c.bf16 %v1143_v13, %v1142_v46  ;;  %v3773_v49 = vld [vmem:[#allocation19 + $0x10] sm:$0xff]  }
 0x4c4   :  { %v1144_v60 = vadd.f32 %v1128_v51, %v1122_v63  ;;  %v1145_v8 = vadd.f32 %v1128_v51, %v1123_v3 }
 0x4c5   :  { %3385 = vmatpush3.bf16.msra.mxu1 %v1147_v45 }
 0x4c6   :  { %3405 = vmatpush3.bf16.msra.mxu0 %v1147_v45  ;;  %3386 = vmatprep.subr.bf16.mxu1 %v4358_v58  ;;  %v1153_v10 = vpack.c.bf16 %v1145_v8, %v1144_v60 }
 0x4c7   :  { %3406 = vmatprep.subr.bf16.mxu0 %v1148_v53 }
 0x4c9   :  { %3387 = vmatpush3.bf16.msra.mxu1 %v1148_v53 }
 0x4ca   :  { %3407 = vmatpush3.bf16.msra.mxu0 %v1148_v53  ;;  %3388 = vmatprep.subr.bf16.mxu1 %v4358_v58 }
 0x4cb   :  { %3408 = vmatprep.subr.bf16.mxu0 %v1149_v2 }
 0x4cd   :  { %3389 = vmatpush3.bf16.msra.mxu1 %v1149_v2 }
 0x4ce   :  { %3409 = vmatpush3.bf16.msra.mxu0 %v1149_v2  ;;  %3390 = vmatprep.subr.bf16.mxu1 %v4358_v58 }
 0x4cf   :  { %3410 = vmatprep.subr.bf16.mxu0 %v1150_v36 }
 0x4d1   :  { %3391 = vmatpush3.bf16.msra.mxu1 %v1150_v36 }
 0x4d2   :  { %3411 = vmatpush3.bf16.msra.mxu0 %v1150_v36  ;;  %3392 = vmatprep.subr.bf16.mxu1 %v4358_v58 }
 0x4d3   :  { %3412 = vmatprep.subr.bf16.mxu0 %v1151_v55 }
 0x4d5   :  { %3393 = vmatpush3.bf16.msra.mxu1 %v1151_v55 }
 0x4d6   :  { %3413 = vmatpush3.bf16.msra.mxu0 %v1151_v55  ;;  %3394 = vmatprep.subr.bf16.mxu1 %v4358_v58 }
 0x4d7   :  { %3414 = vmatprep.subr.bf16.mxu0 %v1152_v5 }
 0x4d9   :  { %3395 = vmatpush3.bf16.msra.mxu1 %v1152_v5 }
 0x4da   :  { %3415 = vmatpush3.bf16.msra.mxu0 %v1152_v5  ;;  %3396 = vmatprep.subr.bf16.mxu1 %v4358_v58 }
 0x4db   :  { %3416 = vmatprep.subr.bf16.mxu0 %v1153_v10 }
 0x4dd   :  { %3397 = vmatpush3.bf16.msra.mxu1 %v1153_v10 }
 0x4de   :  { %3417 = vmatpush3.bf16.msra.mxu0 %v1153_v10  ;;  %3434 = vmatprep.subr.bf16.mxu1 %v3771_v26 }
 0x4e0   :  { %3399 = vmatmul.mubr.bf16.vlgmr.msra.gmra.mrb[16].mxu1 %v4934_v40 }
 0x4e1   :  { %3419 = vmatmul.mubr.bf16.vlgmr.msra.gmra.mrb[32].mxu0 %v4777_v14  ;;  %3435 = vmatpush3.bf16.msra.mxu1 %v3771_v26  ;;  %v3777_v14 = vld [vmem:[#allocation19 + $0x30] sm:$0xff]  }
 0x4e2   :  { %3422 = vmatprep.mubr.bf16.mxu0 %v4779_v15  ;;  %3436 = vmatprep.subr.bf16.mxu1 %v3772_v41  ;;  %v3778_v15 = vld [vmem:[#allocation19 + $0x38] sm:$0xff]  }
 0x4e5   :  { %3437 = vmatpush3.bf16.msra.mxu1 %v3772_v41 }
 0x4e6   :  { %3438 = vmatprep.subr.bf16.mxu1 %v3773_v49 }
 0x4e9   :  { %3423 = vmatmul.mubr.bf16.gmra.mrb[36].mxu0 %v4783_v18  ;;  %3439 = vmatpush3.bf16.msra.mxu1 %v3773_v49  ;;  %v3779_v18 = vld [vmem:[#allocation22] sm:$0xff]  }
 0x4ea   :  { %3426 = vmatprep.mubr.bf16.mxu0 %v4785_v19  ;;  %3440 = vmatprep.subr.bf16.mxu1 %v3774_v59  ;;  %v3780_v19 = vld [vmem:[#allocation22 + $0x8] sm:$0xff]  }
 0x4eb   :  { %3466 = vmatprep.subr.bf16.mxu0 %v3779_v18 }
 0x4ec   :  { %3467 = vmatpush3.bf16.msra.mxu0 %v3779_v18 }
 0x4ed   :  { %3441 = vmatpush3.bf16.msra.mxu1 %v3774_v59  ;;  %3468 = vmatprep.subr.bf16.mxu0 %v3780_v19 }
 0x4ee   :  { %3442 = vmatprep.subr.bf16.mxu1 %v3775_v11 }
 0x4f0   :  { %3469 = vmatpush3.bf16.msra.mxu0 %v3780_v19 }
 0x4f1   :  { %3427 = vmatmul.mubr.bf16.gmra.mrb[40].mxu0 %v4789_v20  ;;  %3443 = vmatpush3.bf16.msra.mxu1 %v3775_v11  ;;  %v3781_v20 = vld [vmem:[#allocation22 + $0x10] sm:$0xff]  }
 0x4f2   :  { %3430 = vmatprep.mubr.bf16.mxu0 %v4791_v21  ;;  %3444 = vmatprep.subr.bf16.mxu1 %v3776_v12  ;;  %v3782_v21 = vld [vmem:[#allocation22 + $0x18] sm:$0xff]  }
 0x4f3   :  { %3470 = vmatprep.subr.bf16.mxu0 %v3781_v20 }
 0x4f4   :  { %3471 = vmatpush3.bf16.msra.mxu0 %v3781_v20 }
 0x4f5   :  { %3445 = vmatpush3.bf16.msra.mxu1 %v3776_v12  ;;  %3472 = vmatprep.subr.bf16.mxu0 %v3782_v21 }
 0x4f6   :  { %3446 = vmatprep.subr.bf16.mxu1 %v3777_v14 }
 0x4f8   :  { %3473 = vmatpush3.bf16.msra.mxu0 %v3782_v21 }
 0x4f9   :  { %3431 = vmatmul.mubr.bf16.gmra.mrb[44].mxu0 %v4795_v22  ;;  %3447 = vmatpush3.bf16.msra.mxu1 %v3777_v14  ;;  %v3784_v22 = vld [vmem:[#allocation22 + $0x28] sm:$0xff]  }
 0x4fa   :  { %3448 = vmatprep.subr.bf16.mxu1 %v3778_v15  ;;  %3474 = vmatprep.subr.bf16.mxu0 %v3783_v16 }
 0x4fc   :  { %3475 = vmatpush3.bf16.msra.mxu0 %v3783_v16 }
 0x4fd   :  { %3449 = vmatpush3.bf16.msra.mxu1 %v3778_v15  ;;  %3476 = vmatprep.subr.bf16.mxu0 %v3784_v22 }
 0x4fe   :  { %3498 = vmatprep.subr.bf16.mxu1 %v4358_v58 }
 0x500   :  { %3477 = vmatpush3.bf16.msra.mxu0 %v3784_v22 }
 0x501   :  { %3478 = vmatprep.subr.bf16.mxu0 %v3785_v37 }
 0x504   :  { %3479 = vmatpush3.bf16.msra.mxu0 %v3785_v37  ;;  %v3788_v37 = vld [vmem:[#allocation28 + $0x8] sm:$0xff]  }
 0x505   :  { %3480 = vmatprep.subr.bf16.mxu0 %v3786_v50 }
 0x508   :  { %3481 = vmatpush3.bf16.msra.mxu0 %v3786_v50  ;;  %v3789_v50 = vld [vmem:[#allocation28 + $0x10] sm:$0xff]  }
 0x509   :  { %3518 = vmatprep.subr.bf16.mxu0 %v4358_v58 }
 0x5b3   :  { %v4945_v23 = vpop.f32.mrb[16].mxu1 }
 0x5b4   :  { %v3420_v29 = vpop.f32.mrb[32].mxu0  ;;  %v3400_v30 = vpop.f32.mrb[17].mxu1 }
 0x5b5   :  { %v1245_v24 = vpop.f32.mrb[33].mxu0  ;;  %v1191_v34 = vpop.f32.mrb[18].mxu1 }
 0x5b6   :  { %v3421_v35 = vpop.f32.mrb[34].mxu0  ;;  %v3401_v38 = vpop.f32.mrb[19].mxu1 }
 0x5b7   :  { %v1309_v39 = vpack.c.bf16 %v3421_v35, %v3420_v29  ;;  %v1248_v42 = vpop.f32.mrb[35].mxu0 }
 0x5b8   :  { %v1308_v43 = vpack.c.bf16 %v1248_v42, %v1245_v24 }
 0x5ba   :  { %3450 = vmatprep.mubr.bf16.mxu1 %v1308_v43 }
 0x5bb   :  { %3451 = vmatmul.mubr.bf16.vlgmr.msra.gmra.mrb[20].mxu1 %v1309_v39 }
 0x5bc   :  { %v3424_v44 = vpop.f32.mrb[36].mxu0 }
 0x5bd   :  { %v1261_v47 = vpop.f32.mrb[37].mxu0 }
 0x5be   :  { %v3425_v48 = vpop.f32.mrb[38].mxu0 }
 0x5bf   :  { %v1311_v51 = vpack.c.bf16 %v3425_v48, %v3424_v44  ;;  %v1264_v57 = vpop.f32.mrb[39].mxu0 }
 0x5c0   :  { %v1310_v4 = vpack.c.bf16 %v1264_v57, %v1261_v47 }
 0x5c2   :  { %3454 = vmatprep.mubr.bf16.mxu1 %v1310_v4 }
 0x5c3   :  { %3455 = vmatmul.mubr.bf16.gmra.mrb[24].mxu1 %v1311_v51 }
 0x5c4   :  { %v3428_v61 = vpop.f32.mrb[40].mxu0 }
 0x5c5   :  { %v1277_v0 = vpop.f32.mrb[41].mxu0 }
 0x5c6   :  { %v3429_v1 = vpop.f32.mrb[42].mxu0 }
 0x5c7   :  { %v1313_v6 = vpack.c.bf16 %v3429_v1, %v3428_v61  ;;  %v1280_v7 = vpop.f32.mrb[43].mxu0 }
 0x5c8   :  { %v1312_v13 = vpack.c.bf16 %v1280_v7, %v1277_v0 }
 0x5ca   :  { %3458 = vmatprep.mubr.bf16.mxu1 %v1312_v13 }
 0x5cb   :  { %3459 = vmatmul.mubr.bf16.gmra.mrb[28].mxu1 %v1313_v6 }
 0x5cc   :  { %v3432_v25 = vpop.f32.mrb[44].mxu0 }
 0x5cd   :  { %v1293_v27 = vpop.f32.mrb[45].mxu0 }
 0x5ce   :  { %v3433_v28 = vpop.f32.mrb[46].mxu0 }
 0x5cf   :  { %v1315_v31 = vpack.c.bf16 %v3433_v28, %v3432_v25  ;;  %v1296_v32 = vpop.f32.mrb[47].mxu0 }
 0x5d0   :  { %v1314_v33 = vpack.c.bf16 %v1296_v32, %v1293_v27 }
 0x5d2   :  { %3462 = vmatprep.mubr.bf16.mxu1 %v1314_v33  ;;  %v3787_v33 = vld [vmem:[#allocation28] sm:$0xff]  }
 0x5d3   :  { %3463 = vmatmul.mubr.bf16.gmra.mrb[32].mxu1 %v1315_v31 }
 0x5d4   :  { %3514 = vmatprep.mubr.msk.bf16.mxu1 %vm4359_vm0, %v4358_v58 }
 0x68e   :  { %v3452_v62 = vpop.f32.mrb[20].mxu1 }
 0x68f   :  { %v1430_v9 = vadd.f32 %v3452_v62, %v3009_v56  ;;  %v1421_v45 = vpop.f32.mrb[21].mxu1  ;;  %v3791_v62 = vld [vmem:[#allocation28 + $0x20] sm:$0xff]  }
 0x690   :  { %v1422_v53 = vadd.f32 %v3009_v56, %v1421_v45  ;;  %v3453_v52 = vpop.f32.mrb[22].mxu1  ;;  %v3793_v45 = vld [vmem:[#allocation28 + $0x30] sm:$0xff]  }
 0x691   :  { %v1433_v54 = vadd.f32 %v3453_v52, %v3009_v56  ;;  %v1424_v2 = vpop.f32.mrb[23].mxu1  ;;  %v1486_v46 = vmax.f32 %v1430_v9, 0.0  ;;  %v3792_v9 = vld [vmem:[#allocation28 + $0x28] sm:$0xff]   ;;  %v4959_v52 = vld [vmem:[#allocation23] ss:$0 sm:$0xff] }
 0x692   :  { %v1425_v36 = vadd.f32 %v3009_v56, %v1424_v2  ;;  %v1484_v63 = vmax.f32 %v1422_v53, 0.0  ;;  %v3794_v53 = vld [vmem:[#allocation28 + $0x38] sm:$0xff]  }
 0x693   :  { %v1487_v55 = vmax.f32 %v1433_v54, 0.0 }
 0x694   :  { %v1485_v3 = vmax.f32 %v1425_v36, 0.0 }
 0x695   :  { %v1501_v5 = vpack.c.bf16 %v1487_v55, %v1486_v46 }
 0x696   :  { %v1500_v60 = vpack.c.bf16 %v1485_v3, %v1484_v63  ;;  %v3456_v8 = vpop.f32.mrb[24].mxu1 }
 0x697   :  { %v1446_v10 = vadd.f32 %v3456_v8, %v3009_v56  ;;  %v1437_v26 = vpop.f32.mrb[25].mxu1 }
 0x698   :  { %v1438_v41 = vadd.f32 %v3009_v56, %v1437_v26  ;;  %v3457_v49 = vpop.f32.mrb[26].mxu1  ;;  %3482 = vmatprep.mubr.bf16.mxu0 %v1500_v60 }
 0x699   :  { %v1449_v59 = vadd.f32 %v3457_v49, %v3009_v56  ;;  %v1440_v11 = vpop.f32.mrb[27].mxu1  ;;  %3483 = vmatmul.mubr.bf16.vlgmr.msra.gmra.mrb[48].mxu0 %v1501_v5  ;;  %v1490_v14 = vmax.f32 %v1446_v10, 0.0 }
 0x69a   :  { %v1441_v12 = vadd.f32 %v3009_v56, %v1440_v11  ;;  %v1488_v18 = vmax.f32 %v1438_v41, 0.0  ;;  %3519 = vmatpush3.bf16.msra.mxu0 %v3787_v33 }
 0x69b   :  { %v1491_v15 = vmax.f32 %v1449_v59, 0.0  ;;  %3520 = vmatprep.subr.bf16.mxu0 %v4358_v58 }
 0x69c   :  { %v1489_v19 = vmax.f32 %v1441_v12, 0.0 }
 0x69d   :  { %v1503_v20 = vpack.c.bf16 %v1491_v15, %v1490_v14 }
 0x69e   :  { %v1502_v21 = vpack.c.bf16 %v1489_v19, %v1488_v18  ;;  %v3460_v16 = vpop.f32.mrb[28].mxu1  ;;  %3521 = vmatpush3.bf16.msra.mxu0 %v3788_v37 }
 0x69f   :  { %v1462_v22 = vadd.f32 %v3460_v16, %v3009_v56  ;;  %v1453_v29 = vpop.f32.mrb[29].mxu1  ;;  %3522 = vmatprep.subr.bf16.mxu0 %v4358_v58 }
 0x6a0   :  { %v1454_v30 = vadd.f32 %v3009_v56, %v1453_v29  ;;  %v3461_v24 = vpop.f32.mrb[30].mxu1  ;;  %3486 = vmatprep.mubr.bf16.mxu0 %v1502_v21 }
 0x6a1   :  { %v1465_v34 = vadd.f32 %v3461_v24, %v3009_v56  ;;  %v1456_v35 = vpop.f32.mrb[31].mxu1  ;;  %3487 = vmatmul.mubr.bf16.gmra.mrb[52].mxu0 %v1503_v20  ;;  %v1494_v39 = vmax.f32 %v1462_v22, 0.0 }
 0x6a2   :  { %v1457_v38 = vadd.f32 %v3009_v56, %v1456_v35  ;;  %v1492_v43 = vmax.f32 %v1454_v30, 0.0  ;;  %3523 = vmatpush3.bf16.msra.mxu0 %v3789_v50 }
 0x6a3   :  { %v1495_v42 = vmax.f32 %v1465_v34, 0.0  ;;  %3524 = vmatprep.subr.bf16.mxu0 %v4358_v58 }
 0x6a4   :  { %v1493_v44 = vmax.f32 %v1457_v38, 0.0 }
 0x6a5   :  { %v1505_v47 = vpack.c.bf16 %v1495_v42, %v1494_v39 }
 0x6a6   :  { %v1504_v48 = vpack.c.bf16 %v1493_v44, %v1492_v43  ;;  %v3464_v51 = vpop.f32.mrb[32].mxu1 }
 0x6a7   :  { %v1478_v57 = vadd.f32 %v3464_v51, %v3009_v56  ;;  %v1469_v4 = vpop.f32.mrb[33].mxu1 }
 0x6a8   :  { %v1470_v61 = vadd.f32 %v3009_v56, %v1469_v4  ;;  %v3465_v0 = vpop.f32.mrb[34].mxu1  ;;  %3490 = vmatprep.mubr.bf16.mxu0 %v1504_v48 }
 0x6a9   :  { %v1481_v1 = vadd.f32 %v3465_v0, %v3009_v56  ;;  %v1472_v6 = vpop.f32.mrb[35].mxu1  ;;  %3491 = vmatmul.mubr.bf16.gmra.mrb[56].mxu0 %v1505_v47  ;;  %v1498_v13 = vmax.f32 %v1478_v57, 0.0 }
 0x6aa   :  { %v1473_v7 = vadd.f32 %v3009_v56, %v1472_v6  ;;  %v1496_v27 = vmax.f32 %v1470_v61, 0.0  ;;  %v3790_v56 = vld [vmem:[#allocation28 + $0x18] sm:$0xff]  }
 0x6ab   :  { %v1499_v25 = vmax.f32 %v1481_v1, 0.0  ;;  %3525 = vmatpush3.bf16.msra.mxu0 %v3790_v56 }
 0x6ac   :  { %v1497_v28 = vmax.f32 %v1473_v7, 0.0  ;;  %3526 = vmatprep.subr.bf16.mxu0 %v4358_v58 }
 0x6ad   :  { %v1507_v31 = vpack.c.bf16 %v1499_v25, %v1498_v13 }
 0x6ae   :  { %v1506_v32 = vpack.c.bf16 %v1497_v28, %v1496_v27 }
 0x6af   :  { %3527 = vmatpush3.bf16.msra.mxu0 %v3791_v62 }
 0x6b0   :  { %3494 = vmatprep.mubr.bf16.mxu0 %v1506_v32  ;;  %3528 = vmatprep.subr.bf16.mxu0 %v4358_v58 }
 0x6b1   :  { %3495 = vmatmul.mubr.bf16.gmra.mrb[60].mxu0 %v1507_v31 }
 0x6b2   :  { %3534 = vmatprep.mubr.msk.bf16.mxu0 %vm4359_vm0, %v4358_v58 }
 0x6b3   :  { %3529 = vmatpush3.bf16.msra.mxu0 %v3792_v9 }
 0x6b4   :  { %3530 = vmatprep.subr.bf16.mxu0 %v4358_v58 }
 0x6b7   :  { %3531 = vmatpush3.bf16.msra.mxu0 %v3793_v45 }
 0x6b8   :  { %3532 = vmatprep.subr.bf16.mxu0 %v4358_v58 }
 0x6bb   :  { %3533 = vmatpush3.bf16.msra.mxu0 %v3794_v53 }
 0x76c   :  { %v3484_v54 = vpop.f32.mrb[48].mxu0 }
 0x76d   :  { %v4962_v2 = vadd.f32 %v3484_v54, %v4959_v52  ;;  %v1613_v36 = vpop.f32.mrb[49].mxu0 }
 0x76e   :  { %v1614_v46 = vadd.f32 %v4959_v52, %v1613_v36  ;;  %v3485_v55 = vpop.f32.mrb[50].mxu0 }
 0x76f   :  { %v1678_v63 = vmax.f32 %v4962_v2, 0.0  ;;  %v4967_v3 = vadd.f32 %v3485_v55, %v4959_v52  ;;  %v1616_v5 = vpop.f32.mrb[51].mxu0 }
 0x770   :  { %v4969_v60 = vmax.f32 %v1614_v46, 0.0  ;;  %v1617_v8 = vadd.f32 %v4959_v52, %v1616_v5 }
 0x771   :  { %v1694_v10 = vmul.f32 0.0, %v1678_v63  ;;  %v1679_v26 = vmax.f32 %v4967_v3, 0.0 }
 0x772   :  { %v4975_v41 = vmax.f32 %v1617_v8, 0.0  ;;  %v1729_v49 = vmul.f32 %v4969_v60, %v4969_v60 }
 0x773   :  { %v1731_v14 = vmul.f32 %v1694_v10, %v1694_v10  ;;  %v1695_v19 = vmul.f32 0.0, %v1679_v26 }
 0x774   :  { %v1708_v59 = vadd.f32 %v4975_v41, %v4969_v60  ;;  %v1730_v11 = vmul.f32 %v4975_v41, %v4975_v41  ;;  %v3488_v12 = vpop.f32.mrb[52].mxu0 }
 0x775   :  { %v4984_v15 = vadd.f32 %v3488_v12, %v4959_v52  ;;  %v1629_v18 = vpop.f32.mrb[53].mxu0  ;;  %v1732_v42 = vmul.f32 %v1695_v19, %v1695_v19 }
 0x776   :  { %v1709_v20 = vadd.f32 %v1708_v59, %v1694_v10  ;;  %v1745_v21 = vadd.f32 %v1730_v11, %v1729_v49  ;;  %v4989_v16 = vadd.f32 %v4959_v52, %v1629_v18  ;;  %v3489_v22 = vpop.f32.mrb[54].mxu0 }
 0x777   :  { %v1682_v29 = vmax.f32 %v4984_v15, 0.0  ;;  %v4993_v30 = vadd.f32 %v3489_v22, %v4959_v52  ;;  %v1632_v24 = vpop.f32.mrb[55].mxu0 }
 0x778   :  { %v1746_v34 = vadd.f32 %v1745_v21, %v1731_v14  ;;  %v1680_v35 = vmax.f32 %v4989_v16, 0.0  ;;  %v4997_v38 = vadd.f32 %v4959_v52, %v1632_v24  ;;  %v1710_v44 = vadd.f32 %v1709_v20, %v1695_v19 }
 0x779   :  { %v1683_v39 = vmax.f32 %v4993_v30, 0.0  ;;  %v1698_v48 = vmul.f32 0.0, %v1682_v29 }
 0x77a   :  { %v1696_v43 = vmul.f32 0.0, %v1680_v35  ;;  %v1681_v47 = vmax.f32 %v4997_v38, 0.0  ;;  %v1747_v4 = vadd.f32 %v1746_v34, %v1732_v42 }
 0x77b   :  { %v1699_v1 = vmul.f32 0.0, %v1683_v39  ;;  %v1735_v32 = vmul.f32 %v1698_v48, %v1698_v48 }
 0x77c   :  { %v1711_v51 = vadd.f32 %v1710_v44, %v1696_v43  ;;  %v1733_v57 = vmul.f32 %v1696_v43, %v1696_v43  ;;  %v1697_v61 = vmul.f32 0.0, %v1681_v47  ;;  %v3492_v0 = vpop.f32.mrb[56].mxu0 }
 0x77d   :  { %v5010_v6 = vadd.f32 %v3492_v0, %v4959_v52  ;;  %v1645_v7 = vpop.f32.mrb[57].mxu0  ;;  %v1736_v53 = vmul.f32 %v1699_v1, %v1699_v1 }
 0x77e   :  { %v1748_v13 = vadd.f32 %v1747_v4, %v1733_v57  ;;  %v1712_v25 = vadd.f32 %v1711_v51, %v1697_v61  ;;  %v1734_v27 = vmul.f32 %v1697_v61, %v1697_v61  ;;  %v5013_v28 = vadd.f32 %v4959_v52, %v1645_v7  ;;  %v3493_v31 = vpop.f32.mrb[58].mxu0 }
 0x77f   :  { %v1686_v33 = vmax.f32 %v5010_v6, 0.0  ;;  %v5017_v37 = vadd.f32 %v3493_v31, %v4959_v52  ;;  %v1648_v50 = vpop.f32.mrb[59].mxu0 }
 0x780   :  { %v1713_v56 = vadd.f32 %v1712_v25, %v1698_v48  ;;  %v1749_v62 = vadd.f32 %v1748_v13, %v1734_v27  ;;  %v1684_v9 = vmax.f32 %v5013_v28, 0.0  ;;  %v5021_v45 = vadd.f32 %v4959_v52, %v1648_v50 }
 0x781   :  { %v1687_v54 = vmax.f32 %v5017_v37, 0.0  ;;  %v1702_v8 = vmul.f32 0.0, %v1686_v33 }
 0x782   :  { %v1750_v36 = vadd.f32 %v1749_v62, %v1735_v32  ;;  %v1700_v46 = vmul.f32 0.0, %v1684_v9  ;;  %v1714_v55 = vadd.f32 %v1713_v56, %v1699_v1  ;;  %v1685_v5 = vmax.f32 %v5021_v45, 0.0 }
 0x783   :  { %v1703_v14 = vmul.f32 0.0, %v1687_v54  ;;  %v1739_v42 = vmul.f32 %v1702_v8, %v1702_v8 }
 0x784   :  { %v1715_v10 = vadd.f32 %v1714_v55, %v1700_v46  ;;  %v1737_v49 = vmul.f32 %v1700_v46, %v1700_v46  ;;  %v1751_v59 = vadd.f32 %v1750_v36, %v1736_v53  ;;  %v1701_v11 = vmul.f32 0.0, %v1685_v5  ;;  %v3496_v12 = vpop.f32.mrb[60].mxu0 }
 0x785   :  { %v5034_v18 = vadd.f32 %v3496_v12, %v4959_v52  ;;  %v1661_v19 = vpop.f32.mrb[61].mxu0  ;;  %v1740_v0 = vmul.f32 %v1703_v14, %v1703_v14 }
 0x786   :  { %v1752_v20 = vadd.f32 %v1751_v59, %v1737_v49  ;;  %v1716_v21 = vadd.f32 %v1715_v10, %v1701_v11  ;;  %v1738_v22 = vmul.f32 %v1701_v11, %v1701_v11  ;;  %v1662_v24 = vadd.f32 %v4959_v52, %v1661_v19  ;;  %v3497_v34 = vpop.f32.mrb[62].mxu0 }
 0x787   :  { %v1690_v43 = vmax.f32 %v5034_v18, 0.0  ;;  %v5039_v44 = vadd.f32 %v3497_v34, %v4959_v52  ;;  %v1664_v48 = vpop.f32.mrb[63].mxu0  ;;  %v3795_v18 = vld [vmem:[#allocation17] sm:$0xff]  }
 0x788   :  { %v1717_v51 = vadd.f32 %v1716_v21, %v1702_v8  ;;  %v1753_v57 = vadd.f32 %v1752_v20, %v1738_v22  ;;  %v1688_v4 = vmax.f32 %v1662_v24, 0.0  ;;  %v1665_v61 = vadd.f32 %v4959_v52, %v1664_v48 }
 0x789   :  { %v1691_v1 = vmax.f32 %v5039_v44, 0.0  ;;  %v1706_v31 = vmul.f32 0.0, %v1690_v43  ;;  %v3797_v44 = vld [vmem:[#allocation17 + $0x10] sm:$0xff]  }
 0x78a   :  { %v1754_v7 = vadd.f32 %v1753_v57, %v1739_v42  ;;  %v1704_v13 = vmul.f32 0.0, %v1688_v4  ;;  %v1718_v25 = vadd.f32 %v1717_v51, %v1703_v14  ;;  %v1689_v27 = vmax.f32 %v1665_v61, 0.0 }
 0x78b   :  { %v1707_v36 = vmul.f32 0.0, %v1691_v1  ;;  %v1743_v55 = vmul.f32 %v1706_v31, %v1706_v31 }
 0x78c   :  { %v1719_v32 = vadd.f32 %v1718_v25, %v1704_v13  ;;  %v1741_v50 = vmul.f32 %v1704_v13, %v1704_v13  ;;  %v1755_v56 = vadd.f32 %v1754_v7, %v1740_v0  ;;  %v1705_v62 = vmul.f32 0.0, %v1689_v27 }
 0x78d   :  { %v1744_v49 = vmul.f32 %v1707_v36, %v1707_v36 }
 0x78e   :  { %v1756_v53 = vadd.f32 %v1755_v56, %v1741_v50  ;;  %v1720_v46 = vadd.f32 %v1719_v32, %v1705_v62  ;;  %v1742_v52 = vmul.f32 %v1705_v62, %v1705_v62  ;;  %v1771_v50 = vld [vmem:[#allocation25] sm:$0x1] }
 0x790   :  { %v1721_v8 = vadd.f32 %v1720_v46, %v1706_v31  ;;  %v1757_v10 = vadd.f32 %v1756_v53, %v1742_v52  ;;  %v1775_v53 = vld [vmem:[#allocation26] sm:$0x1] }
 0x792   :  { %v1722_v59 = vadd.f32 %v1721_v8, %v1707_v36  ;;  %v1758_v11 = vadd.f32 %v1757_v10, %v1743_v55 }
 0x794   :  { %v1723_v12 = vrot.slane %v1722_v59, 4  ;;  %v1759_v14 = vadd.f32 %v1758_v11, %v1744_v49 }
 0x796   :  { %v1724_v19 = vadd.f32 %v1723_v12, %v1722_v59  ;;  %v1760_v20 = vrot.slane %v1759_v14, 4 }
 0x798   :  { %v1725_v21 = vrot.slane %v1724_v19, 2  ;;  %v1761_v22 = vadd.f32 %v1760_v20, %v1759_v14 }
 0x79a   :  { %v1726_v24 = vadd.f32 %v1725_v21, %v1724_v19  ;;  %v1762_v34 = vrot.slane %v1761_v22, 2 }
 0x79c   :  { %v1727_v42 = vrot.slane %v1726_v24, 1  ;;  %v1763_v48 = vadd.f32 %v1762_v34, %v1761_v22 }
 0x79e   :  { %v1728_v51 = vadd.f32 %v1727_v42, %v1726_v24  ;;  %v1764_v57 = vrot.slane %v1763_v48, 1 }
 0x7a0   :  { %v1765_v61 = vadd.f32 %v1764_v57, %v1763_v48  ;;  %v1766_v0 = vmul.f32 0.0625, %v1728_v51  ;;  %v3799_v57 = vld [vmem:[#allocation17 + $0x20] sm:$0xff]  }
 0x7a2   :  { %v1767_v7 = vmul.f32 0.0625, %v1765_v61  ;;  %v1768_v13 = vmul.f32 %v1766_v0, %v1766_v0  ;;  %v3801_v61 = vld [vmem:[#allocation17 + $0x30] sm:$0xff]  }
 0x7a4   :  { %v1769_v25 = vsub.f32 %v1767_v7, %v1768_v13  ;;  %v1194_v7 = vpack.c.bf16 %v4945_v23, %v4945_v23 }
 0x7a6   :  { %v1770_v31 = vmax.f32 %v1769_v25, 0.0 }
 0x7a8   :  { %v1772_v32 = vadd.f32 1e-05, %v1770_v31 }
 0x7aa   :  { %3837 = vrsqrt.f32 %v1772_v32 }
 0x7b4   :  { %v3838_v56 = vpop.eup %3837 }
 0x7b5   :  { %v1774_v62 = vmul.f32 %v3838_v56, %v1771_v50  ;;  %v3841_v56 = vld [vmem:[#allocation2] sm:$0xff]  }
 0x7b7   :  { %v1776_v36 = vmul.f32 %v1774_v62, %v1766_v0  ;;  %v1782_v46 = vrot.slane %v1774_v62, %v4895_v17  ;;  %v3802_v0 = vld [vmem:[#allocation17 + $0x38] sm:$0xff]  }
 0x7b9   :  { %v1777_v52 = vsub.f32 %v1775_v53, %v1776_v36  ;;  %v1796_v55 = vmul.f32 %v1782_v46, %v1688_v4  ;;  %v1797_v8 = vmul.f32 %v1782_v46, %v1689_v27  ;;  %v1784_v10 = vmul.f32 %v1782_v46, %v4969_v60  ;;  %v3842_v36 = vld [vmem:[#allocation2 + $0x8] sm:$0xff]  }
 0x7ba   :  { %v1785_v49 = vmul.f32 %v1782_v46, %v4975_v41  ;;  %v1786_v59 = vmul.f32 %v1782_v46, %v1678_v63  ;;  %v1787_v11 = vmul.f32 %v1782_v46, %v1679_v26  ;;  %v1788_v12 = vmul.f32 %v1782_v46, %v1680_v35 }
 0x7bb   :  { %v1804_v14 = vrot.slane %v1777_v52, %v4895_v17  ;;  %v1789_v19 = vmul.f32 %v1782_v46, %v1681_v47  ;;  %v1790_v4 = vmul.f32 %v1782_v46, %v1682_v29  ;;  %v1791_v60 = vmul.f32 %v1782_v46, %v1683_v39  ;;  %v3843_v52 = vld [vmem:[#allocation2 + $0x10] sm:$0xff]  }
 0x7bc   :  { %v1792_v2 = vmul.f32 %v1782_v46, %v1684_v9  ;;  %v1793_v63 = vmul.f32 %v1782_v46, %v1685_v5  ;;  %v1794_v3 = vmul.f32 %v1782_v46, %v1686_v33  ;;  %v1795_v26 = vmul.f32 %v1782_v46, %v1687_v54 }
 0x7bd   :  { %v1818_v41 = vadd.f32 %v1804_v14, %v1796_v55  ;;  %v1819_v16 = vadd.f32 %v1804_v14, %v1797_v8  ;;  %v1806_v35 = vadd.f32 %v1804_v14, %v1784_v10  ;;  %v1807_v15 = vadd.f32 %v1804_v14, %v1785_v49  ;;  %v3844_v55 = vld [vmem:[#allocation2 + $0x18] sm:$0xff]   ;;  %v3845_v8 = vld [vmem:[#allocation2 + $0x20] sm:$0xff]   ;;  %v3846_v10 = vld [vmem:[#allocation2 + $0x28] sm:$0xff]  }
 0x7be   :  { %v1808_v29 = vadd.f32 %v1804_v14, %v1786_v59  ;;  %v1809_v38 = vadd.f32 %v1804_v14, %v1787_v11  ;;  %v1810_v30 = vadd.f32 %v1804_v14, %v1788_v12  ;;  %v1811_v39 = vadd.f32 %v1804_v14, %v1789_v19  ;;  %v3847_v49 = vld [vmem:[#allocation2 + $0x30] sm:$0xff]   ;;  %v3848_v59 = vld [vmem:[#allocation2 + $0x38] sm:$0xff]   ;;  %v3803_v11 = vld [vmem:[%s5345_s17] sm:$0xff]  }
 0x7bf   :  { %v5071_v47 = vpack.c.bf16 %v1819_v16, %v1818_v41  ;;  %v5073_v28 = vpack.c.bf16 %v1807_v15, %v1806_v35  ;;  %v1812_v9 = vadd.f32 %v1804_v14, %v1790_v4  ;;  %v1813_v45 = vadd.f32 %v1804_v14, %v1791_v60  ;;  %v3804_v12 = vld [vmem:[%s5345_s17 + $0x8] sm:$0xff]   ;;  %v3806_v19 = vld [vmem:[%s5345_s17 + $0x18] sm:$0xff]   ;;  %v3807_v4 = vld [vmem:[%s5345_s17 + $0x20] sm:$0xff]  }
 0x7c0   :  { %v5075_v5 = vpack.c.bf16 %v1809_v38, %v1808_v29  ;;  %v5077_v6 = vpack.c.bf16 %v1811_v39, %v1810_v30  ;;  %v1814_v33 = vadd.f32 %v1804_v14, %v1792_v2  ;;  %v1815_v37 = vadd.f32 %v1804_v14, %v1793_v63  ;;  %v3808_v60 = vld [vmem:[%s5345_s17 + $0x28] sm:$0xff]   ;;  %v3809_v2 = vld [vmem:[%s5345_s17 + $0x30] sm:$0xff]   ;;  %v3810_v63 = vld [vmem:[%s5345_s17 + $0x38] sm:$0xff]  }
 0x7c1   :  { %3499 = vmatpush3.bf16.msra.mxu1 %v5073_v28  ;;  %3558 = vmatprep.subr.bf16.mxu0 %v5073_v28  ;;  %v5081_v54 = vpack.c.bf16 %v1813_v45, %v1812_v9  ;;  %v1816_v27 = vadd.f32 %v1804_v14, %v1794_v3  ;;  %v1817_v20 = vadd.f32 %v1804_v14, %v1795_v26  ;;  %v3811_v3 = vld [vmem:[#allocation29] sm:$0xff]   ;;  %v3812_v26 = vld [vmem:[#allocation29 + $0x8] sm:$0xff]   ;;  %v3813_v41 = vld [vmem:[#allocation29 + $0x10] sm:$0xff]  }
 0x7c2   :  { %3500 = vmatprep.subr.bf16.mxu1 %v4358_v58  ;;  %v5084_v21 = vpack.c.bf16 %v1815_v37, %v1814_v33  ;;  %v1798_v22 = vmul.f32 %v1782_v46, %v1690_v43  ;;  %v1799_v24 = vmul.f32 %v1782_v46, %v1691_v1  ;;  %v3796_v43 = vld [vmem:[#allocation17 + $0x8] sm:$0xff]   ;;  %v3798_v1 = vld [vmem:[#allocation17 + $0x18] sm:$0xff]   ;;  %v3814_v16 = vld [vmem:[#allocation29 + $0x18] sm:$0xff]  }
 0x7c3   :  { %v1827_v34 = vpack.c.bf16 %v1817_v20, %v1816_v27  ;;  %v3815_v35 = vld [vmem:[#allocation29 + $0x20] sm:$0xff]   ;;  %v3816_v15 = vld [vmem:[#allocation29 + $0x28] sm:$0xff]  }
 0x7c4   :  { %v1820_v42 = vadd.f32 %v1804_v14, %v1798_v22  ;;  %v1821_v48 = vadd.f32 %v1804_v14, %v1799_v24  ;;  %v3805_v14 = vld [vmem:[%s5345_s17 + $0x10] sm:$0xff]  }
 0x7c5   :  { %3501 = vmatpush3.bf16.msra.mxu1 %v5075_v5 }
 0x7c6   :  { %3502 = vmatprep.subr.bf16.mxu1 %v4358_v58  ;;  %v1829_v51 = vpack.c.bf16 %v1821_v48, %v1820_v42 }
 0x7c9   :  { %3503 = vmatpush3.bf16.msra.mxu1 %v5077_v6 }
 0x7ca   :  { %3504 = vmatprep.subr.bf16.mxu1 %v4358_v58 }
 0x7cd   :  { %3505 = vmatpush3.bf16.msra.mxu1 %v5081_v54 }
 0x7ce   :  { %3506 = vmatprep.subr.bf16.mxu1 %v4358_v58 }
 0x7d1   :  { %3507 = vmatpush3.bf16.msra.mxu1 %v5084_v21 }
 0x7d2   :  { %3508 = vmatprep.subr.bf16.mxu1 %v4358_v58 }
 0x7d5   :  { %3509 = vmatpush3.bf16.msra.mxu1 %v1827_v34 }
 0x7d6   :  { %3510 = vmatprep.subr.bf16.mxu1 %v4358_v58 }
 0x7d9   :  { %3511 = vmatpush3.bf16.msra.mxu1 %v5071_v47 }
 0x7da   :  { %3512 = vmatprep.subr.bf16.mxu1 %v4358_v58 }
 0x7dd   :  { %3513 = vmatpush3.bf16.msra.mxu1 %v1829_v51 }
 0x7de   :  { %3538 = vmatprep.subr.bf16.mxu1 %v4358_v58 }
 0x7e0   :  { %3515 = vmatmul.mubr.bf16.vlgmr.msra.gmra.mrb[36].mxu1 %v4934_v40  ;;  %v3800_v40 = vld [vmem:[#allocation17 + $0x28] sm:$0xff]  }
 0x7e1   :  { %3539 = vmatpush3.bf16.msra.mxu1 %v3795_v18  ;;  %3554 = vmatprep.mubr.msk.bf16.mxu1 %vm4359_vm0, %v4358_v58 }
 0x7e2   :  { %3540 = vmatprep.subr.bf16.mxu1 %v4358_v58 }
 0x7e5   :  { %3541 = vmatpush3.bf16.msra.mxu1 %v3796_v43 }
 0x7e6   :  { %3542 = vmatprep.subr.bf16.mxu1 %v4358_v58 }
 0x7e9   :  { %3543 = vmatpush3.bf16.msra.mxu1 %v3797_v44 }
 0x7ea   :  { %3544 = vmatprep.subr.bf16.mxu1 %v4358_v58 }
 0x7ed   :  { %3545 = vmatpush3.bf16.msra.mxu1 %v3798_v1 }
 0x7ee   :  { %3546 = vmatprep.subr.bf16.mxu1 %v4358_v58 }
 0x7f1   :  { %3547 = vmatpush3.bf16.msra.mxu1 %v3799_v57 }
 0x7f2   :  { %3548 = vmatprep.subr.bf16.mxu1 %v4358_v58 }
 0x7f5   :  { %3549 = vmatpush3.bf16.msra.mxu1 %v3800_v40 }
 0x7f6   :  { %3550 = vmatprep.subr.bf16.mxu1 %v4358_v58 }
 0x7f9   :  { %3551 = vmatpush3.bf16.msra.mxu1 %v3801_v61 }
 0x7fa   :  { %3552 = vmatprep.subr.bf16.mxu1 %v4358_v58 }
 0x7fd   :  { %3553 = vmatpush3.bf16.msra.mxu1 %v3802_v0  ;;  %v3817_v0 = vld [vmem:[#allocation29 + $0x30] sm:$0xff]  }
 0x7fe   :  { %3590 = vmatprep.subr.bf16.mxu1 %v3803_v11 }
 0x800   :  { %3555 = vmatmul.mubr.bf16.vlgmr.msra.gmra.mrb[40].mxu1 %v1194_v7  ;;  %v3818_v7 = vld [vmem:[#allocation29 + $0x38] sm:$0xff]  }
 0x801   :  { %3591 = vmatpush3.bf16.msra.mxu1 %v3803_v11 }
 0x802   :  { %3592 = vmatprep.subr.bf16.mxu1 %v3804_v12 }
 0x805   :  { %3593 = vmatpush3.bf16.msra.mxu1 %v3804_v12 }
 0x806   :  { %3594 = vmatprep.subr.bf16.mxu1 %v3805_v14 }
 0x809   :  { %3595 = vmatpush3.bf16.msra.mxu1 %v3805_v14 }
 0x80a   :  { %3596 = vmatprep.subr.bf16.mxu1 %v3806_v19 }
 0x80d   :  { %3597 = vmatpush3.bf16.msra.mxu1 %v3806_v19 }
 0x80e   :  { %3598 = vmatprep.subr.bf16.mxu1 %v3807_v4 }
 0x811   :  { %3599 = vmatpush3.bf16.msra.mxu1 %v3807_v4 }
 0x812   :  { %3600 = vmatprep.subr.bf16.mxu1 %v3808_v60 }
 0x815   :  { %3601 = vmatpush3.bf16.msra.mxu1 %v3808_v60 }
 0x816   :  { %3602 = vmatprep.subr.bf16.mxu1 %v3809_v2 }
 0x819   :  { %3603 = vmatpush3.bf16.msra.mxu1 %v3809_v2 }
 0x81a   :  { %3604 = vmatprep.subr.bf16.mxu1 %v3810_v63 }
 0x81d   :  { %3605 = vmatpush3.bf16.msra.mxu1 %v3810_v63 }
 0x81e   :  { %3654 = vmatprep.subr.bf16.mxu1 %v4358_v58 }
 0x8b3   :  { %v1864_v13 = vpop.f32.mrb[36].mxu1 }
 0x8b4   :  { %v1870_v25 = vpack.c.bf16 %v1864_v13, %v1864_v13  ;;  %v3516_v31 = vpop.f32.mrb[37].mxu1  ;;  %v3043_v13 = vld [vmem:[%s5346_s18] ss:$0 sm:$0xff] }
 0x8b5   :  { %v1867_v32 = vpop.f32.mrb[38].mxu1 }
 0x8b6   :  { %v3517_v50 = vpop.f32.mrb[39].mxu1  ;;  %3535 = vmatmul.mubr.bf16.vlgmr.msra.gmra.mrb[64].mxu0 %v1870_v25 }
 0x8b7   :  { %3559 = vmatpush3.bf16.msra.mxu0 %v5073_v28  ;;  %3574 = vmatprep.mubr.bf16.mxu0 %v3841_v56 }
 0x8b8   :  { %3560 = vmatprep.subr.bf16.mxu0 %v5075_v5 }
 0x8bb   :  { %3561 = vmatpush3.bf16.msra.mxu0 %v5075_v5 }
 0x8bc   :  { %3562 = vmatprep.subr.bf16.mxu0 %v5077_v6 }
 0x8bf   :  { %3563 = vmatpush3.bf16.msra.mxu0 %v5077_v6 }
 0x8c0   :  { %3564 = vmatprep.subr.bf16.mxu0 %v5081_v54 }
 0x8c3   :  { %3565 = vmatpush3.bf16.msra.mxu0 %v5081_v54 }
 0x8c4   :  { %3566 = vmatprep.subr.bf16.mxu0 %v5084_v21 }
 0x8c7   :  { %3567 = vmatpush3.bf16.msra.mxu0 %v5084_v21 }
 0x8c8   :  { %3568 = vmatprep.subr.bf16.mxu0 %v1827_v34 }
 0x8cb   :  { %3569 = vmatpush3.bf16.msra.mxu0 %v1827_v34 }
 0x8cc   :  { %3570 = vmatprep.subr.bf16.mxu0 %v5071_v47 }
 0x8cf   :  { %3571 = vmatpush3.bf16.msra.mxu0 %v5071_v47 }
 0x8d0   :  { %3572 = vmatprep.subr.bf16.mxu0 %v1829_v51 }
 0x8d3   :  { %3573 = vmatpush3.bf16.msra.mxu0 %v1829_v51  ;;  %v2057_v23 = vpop.f32.mrb[40].mxu1 }
 0x8d4   :  { %v3556_v62 = vpop.f32.mrb[41].mxu1  ;;  %3622 = vmatprep.subr.bf16.mxu0 %v3811_v3 }
 0x8d5   :  { %v2060_v53 = vpop.f32.mrb[42].mxu1 }
 0x8d6   :  { %3575 = vmatmul.mubr.bf16.vlgmr.msra.gmra.mrb[68].mxu0 %v3842_v36  ;;  %v3557_v46 = vpop.f32.mrb[43].mxu1 }
 0x8d7   :  { %3578 = vmatprep.mubr.bf16.mxu0 %v3843_v52  ;;  %3623 = vmatpush3.bf16.msra.mxu0 %v3811_v3 }
 0x8d8   :  { %3624 = vmatprep.subr.bf16.mxu0 %v3812_v26 }
 0x8db   :  { %3625 = vmatpush3.bf16.msra.mxu0 %v3812_v26 }
 0x8dc   :  { %3626 = vmatprep.subr.bf16.mxu0 %v3813_v41 }
 0x8de   :  { %3579 = vmatmul.mubr.bf16.gmra.mrb[72].mxu0 %v3844_v55 }
 0x8df   :  { %3582 = vmatprep.mubr.bf16.mxu0 %v3845_v8  ;;  %3627 = vmatpush3.bf16.msra.mxu0 %v3813_v41 }
 0x8e0   :  { %3628 = vmatprep.subr.bf16.mxu0 %v3814_v16 }
 0x8e3   :  { %3629 = vmatpush3.bf16.msra.mxu0 %v3814_v16 }
 0x8e4   :  { %3630 = vmatprep.subr.bf16.mxu0 %v3815_v35 }
 0x8e6   :  { %3583 = vmatmul.mubr.bf16.gmra.mrb[76].mxu0 %v3846_v10 }
 0x8e7   :  { %3586 = vmatprep.mubr.bf16.mxu0 %v3847_v49  ;;  %3631 = vmatpush3.bf16.msra.mxu0 %v3815_v35 }
 0x8e8   :  { %3632 = vmatprep.subr.bf16.mxu0 %v3816_v15 }
 0x8eb   :  { %3633 = vmatpush3.bf16.msra.mxu0 %v3816_v15 }
 0x8ec   :  { %3634 = vmatprep.subr.bf16.mxu0 %v3817_v0 }
 0x8ee   :  { %3587 = vmatmul.mubr.bf16.gmra.mrb[80].mxu0 %v3848_v59 }
 0x8ef   :  { %3635 = vmatpush3.bf16.msra.mxu0 %v3817_v0  ;;  %v3821_v0 = vld [vmem:[#allocation31 + $0x10] sm:$0xff]  }
 0x8f0   :  { %3636 = vmatprep.subr.bf16.mxu0 %v3818_v7 }
 0x8f3   :  { %3637 = vmatpush3.bf16.msra.mxu0 %v3818_v7  ;;  %v5165_v7 = vld [vmem:[%s5348_s20] ss:$0 sm:$0xff] }
 0x8f4   :  { %3674 = vmatprep.subr.bf16.mxu0 %v4358_v58 }
 0x989   :  { %v1969_v29 = vpop.f32.mrb[64].mxu0 }
 0x98a   :  { %v5150_v38 = vadd.f32 %v2057_v23, %v1969_v29  ;;  %v3536_v30 = vpop.f32.mrb[65].mxu0 }
 0x98b   :  { %v1972_v39 = vpop.f32.mrb[66].mxu0 }
 0x98c   :  { %v3537_v47 = vpop.f32.mrb[67].mxu0 }
 0x9a9   :  { %v3576_v28 = vpop.f32.mrb[68].mxu0 }
 0x9aa   :  { %v2097_v9 = vpop.f32.mrb[69].mxu0 }
 0x9ab   :  { %v3577_v45 = vpop.f32.mrb[70].mxu0 }
 0x9ac   :  { %v2161_v5 = vpack.c.bf16 %v3577_v45, %v3576_v28  ;;  %v2100_v6 = vpop.f32.mrb[71].mxu0 }
 0x9ad   :  { %v2160_v33 = vpack.c.bf16 %v2100_v6, %v2097_v9 }
 0x9af   :  { %3606 = vmatprep.mubr.bf16.mxu1 %v2160_v33 }
 0x9b0   :  { %3607 = vmatmul.mubr.bf16.vlgmr.msra.gmra.mrb[44].mxu1 %v2161_v5 }
 0x9b1   :  { %v3580_v37 = vpop.f32.mrb[72].mxu0 }
 0x9b2   :  { %v2113_v54 = vpop.f32.mrb[73].mxu0 }
 0x9b3   :  { %v3581_v27 = vpop.f32.mrb[74].mxu0 }
 0x9b4   :  { %v2163_v20 = vpack.c.bf16 %v3581_v27, %v3580_v37  ;;  %v2116_v21 = vpop.f32.mrb[75].mxu0 }
 0x9b5   :  { %v2162_v22 = vpack.c.bf16 %v2116_v21, %v2113_v54 }
 0x9b7   :  { %3610 = vmatprep.mubr.bf16.mxu1 %v2162_v22 }
 0x9b8   :  { %3611 = vmatmul.mubr.bf16.gmra.mrb[48].mxu1 %v2163_v20 }
 0x9b9   :  { %v3584_v24 = vpop.f32.mrb[76].mxu0 }
 0x9ba   :  { %v2129_v34 = vpop.f32.mrb[77].mxu0 }
 0x9bb   :  { %v3585_v42 = vpop.f32.mrb[78].mxu0 }
 0x9bc   :  { %v2165_v48 = vpack.c.bf16 %v3585_v42, %v3584_v24  ;;  %v2132_v51 = vpop.f32.mrb[79].mxu0 }
 0x9bd   :  { %v2164_v18 = vpack.c.bf16 %v2132_v51, %v2129_v34 }
 0x9bf   :  { %3614 = vmatprep.mubr.bf16.mxu1 %v2164_v18 }
 0x9c0   :  { %3615 = vmatmul.mubr.bf16.gmra.mrb[52].mxu1 %v2165_v48 }
 0x9c1   :  { %v3588_v43 = vpop.f32.mrb[80].mxu0 }
 0x9c2   :  { %v2145_v44 = vpop.f32.mrb[81].mxu0 }
 0x9c3   :  { %v3589_v1 = vpop.f32.mrb[82].mxu0 }
 0x9c4   :  { %v2167_v57 = vpack.c.bf16 %v3589_v1, %v3588_v43  ;;  %v2148_v40 = vpop.f32.mrb[83].mxu0 }
 0x9c5   :  { %v2166_v61 = vpack.c.bf16 %v2148_v40, %v2145_v44  ;;  %v3819_v40 = vld [vmem:[#allocation31] sm:$0xff]  }
 0x9c7   :  { %3618 = vmatprep.mubr.bf16.mxu1 %v2166_v61  ;;  %v3820_v61 = vld [vmem:[#allocation31 + $0x8] sm:$0xff]  }
 0x9c8   :  { %3619 = vmatmul.mubr.bf16.gmra.mrb[56].mxu1 %v2167_v57 }
 0x9c9   :  { %3670 = vmatprep.mubr.msk.bf16.mxu1 %vm4359_vm0, %v4358_v58 }
 0xa83   :  { %v3608_v25 = vpop.f32.mrb[44].mxu1 }
 0xa84   :  { %v2282_v31 = vadd.f32 %v3608_v25, %v3043_v13  ;;  %v2273_v32 = vpop.f32.mrb[45].mxu1 }
 0xa85   :  { %v2274_v50 = vadd.f32 %v3043_v13, %v2273_v32  ;;  %v3609_v56 = vpop.f32.mrb[46].mxu1 }
 0xa86   :  { %v2285_v23 = vadd.f32 %v3609_v56, %v3043_v13  ;;  %v2276_v62 = vpop.f32.mrb[47].mxu1  ;;  %v2338_v36 = vmax.f32 %v2282_v31, 0.0 }
 0xa87   :  { %v2277_v53 = vadd.f32 %v3043_v13, %v2276_v62  ;;  %v2336_v52 = vmax.f32 %v2274_v50, 0.0 }
 0xa88   :  { %v2339_v46 = vmax.f32 %v2285_v23, 0.0  ;;  %v3823_v23 = vld [vmem:[#allocation31 + $0x20] sm:$0xff]  }
 0xa89   :  { %v2337_v55 = vmax.f32 %v2277_v53, 0.0 }
 0xa8a   :  { %v2353_v8 = vpack.c.bf16 %v2339_v46, %v2338_v36 }
 0xa8b   :  { %v2352_v10 = vpack.c.bf16 %v2337_v55, %v2336_v52  ;;  %v3612_v49 = vpop.f32.mrb[48].mxu1 }
 0xa8c   :  { %v2298_v59 = vadd.f32 %v3612_v49, %v3043_v13  ;;  %v2289_v11 = vpop.f32.mrb[49].mxu1  ;;  %v3824_v49 = vld [vmem:[#allocation31 + $0x28] sm:$0xff]  }
 0xa8d   :  { %v2290_v12 = vadd.f32 %v3043_v13, %v2289_v11  ;;  %v3613_v14 = vpop.f32.mrb[50].mxu1  ;;  %3638 = vmatprep.mubr.bf16.mxu0 %v2352_v10 }
 0xa8e   :  { %v2301_v19 = vadd.f32 %v3613_v14, %v3043_v13  ;;  %v2292_v4 = vpop.f32.mrb[51].mxu1  ;;  %3639 = vmatmul.mubr.bf16.vlgmr.msra.gmra.mrb[84].mxu0 %v2353_v8  ;;  %v2342_v2 = vmax.f32 %v2298_v59, 0.0 }
 0xa8f   :  { %v2293_v60 = vadd.f32 %v3043_v13, %v2292_v4  ;;  %v2340_v3 = vmax.f32 %v2290_v12, 0.0  ;;  %3675 = vmatpush3.bf16.msra.mxu0 %v3819_v40 }
 0xa90   :  { %v2343_v63 = vmax.f32 %v2301_v19, 0.0  ;;  %3676 = vmatprep.subr.bf16.mxu0 %v4358_v58 }
 0xa91   :  { %v2341_v26 = vmax.f32 %v2293_v60, 0.0 }
 0xa92   :  { %v2355_v41 = vpack.c.bf16 %v2343_v63, %v2342_v2 }
 0xa93   :  { %v2354_v16 = vpack.c.bf16 %v2341_v26, %v2340_v3  ;;  %v3616_v35 = vpop.f32.mrb[52].mxu1  ;;  %3677 = vmatpush3.bf16.msra.mxu0 %v3820_v61 }
 0xa94   :  { %v2314_v15 = vadd.f32 %v3616_v35, %v3043_v13  ;;  %v2305_v29 = vpop.f32.mrb[53].mxu1  ;;  %3678 = vmatprep.subr.bf16.mxu0 %v4358_v58 }
 0xa95   :  { %v2306_v30 = vadd.f32 %v3043_v13, %v2305_v29  ;;  %v3617_v39 = vpop.f32.mrb[54].mxu1  ;;  %3642 = vmatprep.mubr.bf16.mxu0 %v2354_v16  ;;  %v3825_v16 = vld [vmem:[#allocation31 + $0x30] sm:$0xff]  }
 0xa96   :  { %v2317_v47 = vadd.f32 %v3617_v39, %v3043_v13  ;;  %v2308_v28 = vpop.f32.mrb[55].mxu1  ;;  %3643 = vmatmul.mubr.bf16.gmra.mrb[88].mxu0 %v2355_v41  ;;  %v2346_v45 = vmax.f32 %v2314_v15, 0.0 }
 0xa97   :  { %v2309_v9 = vadd.f32 %v3043_v13, %v2308_v28  ;;  %v2344_v6 = vmax.f32 %v2306_v30, 0.0  ;;  %3679 = vmatpush3.bf16.msra.mxu0 %v3821_v0 }
 0xa98   :  { %v2347_v5 = vmax.f32 %v2317_v47, 0.0  ;;  %3680 = vmatprep.subr.bf16.mxu0 %v4358_v58 }
 0xa99   :  { %v2345_v33 = vmax.f32 %v2309_v9, 0.0 }
 0xa9a   :  { %v2357_v37 = vpack.c.bf16 %v2347_v5, %v2346_v45 }
 0xa9b   :  { %v2356_v54 = vpack.c.bf16 %v2345_v33, %v2344_v6  ;;  %v3620_v27 = vpop.f32.mrb[56].mxu1 }
 0xa9c   :  { %v2330_v20 = vadd.f32 %v3620_v27, %v3043_v13  ;;  %v2321_v21 = vpop.f32.mrb[57].mxu1 }
 0xa9d   :  { %v2322_v22 = vadd.f32 %v3043_v13, %v2321_v21  ;;  %v3621_v24 = vpop.f32.mrb[58].mxu1  ;;  %3646 = vmatprep.mubr.bf16.mxu0 %v2356_v54 }
 0xa9e   :  { %v2333_v34 = vadd.f32 %v3621_v24, %v3043_v13  ;;  %v2324_v42 = vpop.f32.mrb[59].mxu1  ;;  %3647 = vmatmul.mubr.bf16.gmra.mrb[92].mxu0 %v2357_v37  ;;  %v2350_v51 = vmax.f32 %v2330_v20, 0.0 }
 0xa9f   :  { %v2325_v48 = vadd.f32 %v3043_v13, %v2324_v42  ;;  %v2348_v43 = vmax.f32 %v2322_v22, 0.0  ;;  %v3822_v13 = vld [vmem:[#allocation31 + $0x18] sm:$0xff]  }
 0xaa0   :  { %v2351_v18 = vmax.f32 %v2333_v34, 0.0  ;;  %3681 = vmatpush3.bf16.msra.mxu0 %v3822_v13 }
 0xaa1   :  { %v2349_v44 = vmax.f32 %v2325_v48, 0.0  ;;  %3682 = vmatprep.subr.bf16.mxu0 %v4358_v58 }
 0xaa2   :  { %v2359_v1 = vpack.c.bf16 %v2351_v18, %v2350_v51 }
 0xaa3   :  { %v2358_v57 = vpack.c.bf16 %v2349_v44, %v2348_v43 }
 0xaa4   :  { %3683 = vmatpush3.bf16.msra.mxu0 %v3823_v23 }
 0xaa5   :  { %3650 = vmatprep.mubr.bf16.mxu0 %v2358_v57  ;;  %3684 = vmatprep.subr.bf16.mxu0 %v4358_v58 }
 0xaa6   :  { %3651 = vmatmul.mubr.bf16.gmra.mrb[96].mxu0 %v2359_v1 }
 0xaa7   :  { %3690 = vmatprep.mubr.msk.bf16.mxu0 %vm4359_vm0, %v4358_v58 }
 0xaa8   :  { %3685 = vmatpush3.bf16.msra.mxu0 %v3824_v49 }
 0xaa9   :  { %3686 = vmatprep.subr.bf16.mxu0 %v4358_v58 }
 0xaac   :  { %3687 = vmatpush3.bf16.msra.mxu0 %v3825_v16 }
 0xaad   :  { %3688 = vmatprep.subr.bf16.mxu0 %v4358_v58 }
 0xb61   :  { %v3640_v25 = vpop.f32.mrb[84].mxu0 }
 0xb62   :  { %v5169_v31 = vadd.f32 %v3640_v25, %v5165_v7  ;;  %v2465_v32 = vpop.f32.mrb[85].mxu0 }
 0xb63   :  { %v2466_v50 = vadd.f32 %v5165_v7, %v2465_v32  ;;  %v3641_v56 = vpop.f32.mrb[86].mxu0 }
 0xb64   :  { %v2530_v62 = vmax.f32 %v5169_v31, 0.0  ;;  %v5174_v53 = vadd.f32 %v3641_v56, %v5165_v7  ;;  %v2468_v36 = vpop.f32.mrb[87].mxu0 }
 0xb65   :  { %v5177_v46 = vmax.f32 %v2466_v50, 0.0  ;;  %v2469_v52 = vadd.f32 %v5165_v7, %v2468_v36 }
 0xb66   :  { %v2546_v55 = vmul.f32 0.0, %v2530_v62  ;;  %v2531_v8 = vmax.f32 %v5174_v53, 0.0 }
 0xb67   :  { %v5183_v10 = vmax.f32 %v2469_v52, 0.0  ;;  %v2581_v59 = vmul.f32 %v5177_v46, %v5177_v46 }
 0xb68   :  { %v2583_v19 = vmul.f32 %v2546_v55, %v2546_v55  ;;  %v2547_v2 = vmul.f32 0.0, %v2531_v8 }
 0xb69   :  { %v2560_v11 = vadd.f32 %v5183_v10, %v5177_v46  ;;  %v2582_v12 = vmul.f32 %v5183_v10, %v5183_v10  ;;  %v3644_v14 = vpop.f32.mrb[88].mxu0 }
 0xb6a   :  { %v5193_v4 = vadd.f32 %v3644_v14, %v5165_v7  ;;  %v2481_v60 = vpop.f32.mrb[89].mxu0  ;;  %v2584_v9 = vmul.f32 %v2547_v2, %v2547_v2 }
 0xb6b   :  { %v2561_v63 = vadd.f32 %v2560_v11, %v2546_v55  ;;  %v2597_v3 = vadd.f32 %v2582_v12, %v2581_v59  ;;  %v5198_v26 = vadd.f32 %v5165_v7, %v2481_v60  ;;  %v3645_v41 = vpop.f32.mrb[90].mxu0 }
 0xb6c   :  { %v2534_v35 = vmax.f32 %v5193_v4, 0.0  ;;  %v5202_v15 = vadd.f32 %v3645_v41, %v5165_v7  ;;  %v2484_v29 = vpop.f32.mrb[91].mxu0 }
 0xb6d   :  { %v2598_v30 = vadd.f32 %v2597_v3, %v2583_v19  ;;  %v2532_v39 = vmax.f32 %v5198_v26, 0.0  ;;  %v5207_v47 = vadd.f32 %v5165_v7, %v2484_v29  ;;  %v2562_v5 = vadd.f32 %v2561_v63, %v2547_v2 }
 0xb6e   :  { %v2535_v28 = vmax.f32 %v5202_v15, 0.0  ;;  %v2550_v33 = vmul.f32 0.0, %v2534_v35 }
 0xb6f   :  { %v2548_v45 = vmul.f32 0.0, %v2532_v39  ;;  %v2533_v6 = vmax.f32 %v5207_v47, 0.0  ;;  %v2599_v27 = vadd.f32 %v2598_v30, %v2584_v9 }
 0xb70   :  { %v2551_v22 = vmul.f32 0.0, %v2535_v28  ;;  %v2587_v44 = vmul.f32 %v2550_v33, %v2550_v33 }
 0xb71   :  { %v2563_v37 = vadd.f32 %v2562_v5, %v2548_v45  ;;  %v2585_v54 = vmul.f32 %v2548_v45, %v2548_v45  ;;  %v2549_v20 = vmul.f32 0.0, %v2533_v6  ;;  %v3648_v21 = vpop.f32.mrb[92].mxu0 }
 0xb72   :  { %v5221_v24 = vadd.f32 %v3648_v21, %v5165_v7  ;;  %v2497_v34 = vpop.f32.mrb[93].mxu0  ;;  %v2588_v32 = vmul.f32 %v2551_v22, %v2551_v22 }
 0xb73   :  { %v2600_v42 = vadd.f32 %v2599_v27, %v2585_v54  ;;  %v2564_v48 = vadd.f32 %v2563_v37, %v2549_v20  ;;  %v2586_v51 = vmul.f32 %v2549_v20, %v2549_v20  ;;  %v5224_v18 = vadd.f32 %v5165_v7, %v2497_v34  ;;  %v3649_v43 = vpop.f32.mrb[94].mxu0 }
 0xb74   :  { %v2538_v1 = vmax.f32 %v5221_v24, 0.0  ;;  %v5228_v57 = vadd.f32 %v3649_v43, %v5165_v7  ;;  %v2500_v40 = vpop.f32.mrb[95].mxu0 }
 0xb75   :  { %v2565_v61 = vadd.f32 %v2564_v48, %v2550_v33  ;;  %v2601_v0 = vadd.f32 %v2600_v42, %v2586_v51  ;;  %v2536_v13 = vmax.f32 %v5224_v18, 0.0  ;;  %v5232_v25 = vadd.f32 %v5165_v7, %v2500_v40 }
 0xb76   :  { %v2539_v50 = vmax.f32 %v5228_v57, 0.0  ;;  %v2554_v55 = vmul.f32 0.0, %v2538_v1 }
 0xb77   :  { %v2602_v56 = vadd.f32 %v2601_v0, %v2587_v44  ;;  %v2552_v23 = vmul.f32 0.0, %v2536_v13  ;;  %v2566_v36 = vadd.f32 %v2565_v61, %v2551_v22  ;;  %v2537_v52 = vmax.f32 %v5232_v25, 0.0 }
 0xb78   :  { %v2555_v19 = vmul.f32 0.0, %v2539_v50  ;;  %v2591_v30 = vmul.f32 %v2554_v55, %v2554_v55 }
 0xb79   :  { %v2567_v49 = vadd.f32 %v2566_v36, %v2552_v23  ;;  %v2589_v59 = vmul.f32 %v2552_v23, %v2552_v23  ;;  %v2603_v11 = vadd.f32 %v2602_v56, %v2588_v32  ;;  %v2553_v12 = vmul.f32 0.0, %v2537_v52  ;;  %v3652_v14 = vpop.f32.mrb[96].mxu0 }
 0xb7a   :  { %v5245_v60 = vadd.f32 %v3652_v14, %v5165_v7  ;;  %v2513_v2 = vpop.f32.mrb[97].mxu0  ;;  %v2592_v20 = vmul.f32 %v2555_v19, %v2555_v19 }
 0xb7b   :  { %v2604_v63 = vadd.f32 %v2603_v11, %v2589_v59  ;;  %v2568_v3 = vadd.f32 %v2567_v49, %v2553_v12  ;;  %v2590_v41 = vmul.f32 %v2553_v12, %v2553_v12  ;;  %v2514_v16 = vadd.f32 %v5165_v7, %v2513_v2  ;;  %v3653_v29 = vpop.f32.mrb[98].mxu0 }
 0xb7c   :  { %v2542_v9 = vmax.f32 %v5245_v60, 0.0  ;;  %v5250_v45 = vadd.f32 %v3653_v29, %v5165_v7  ;;  %v2516_v5 = vpop.f32.mrb[99].mxu0  ;;  %v3849_v60 = vld [vmem:[#allocation5] sm:$0xf] }
 0xb7d   :  { %v2569_v33 = vadd.f32 %v2568_v3, %v2554_v55  ;;  %v2605_v37 = vadd.f32 %v2604_v63, %v2590_v41  ;;  %v2540_v54 = vmax.f32 %v2514_v16, 0.0  ;;  %v2517_v27 = vadd.f32 %v5165_v7, %v2516_v5 }
 0xb7e   :  { %v2543_v21 = vmax.f32 %v5250_v45, 0.0  ;;  %v2558_v51 = vmul.f32 0.0, %v2542_v9  ;;  %v3827_v45 = vld [vmem:[#allocation32] sm:$0xff]  }
 0xb7f   :  { %v2606_v22 = vadd.f32 %v2605_v37, %v2591_v30  ;;  %v2556_v34 = vmul.f32 0.0, %v2540_v54  ;;  %v2570_v42 = vadd.f32 %v2569_v33, %v2555_v19  ;;  %v2541_v48 = vmax.f32 %v2517_v27, 0.0 }
 0xb80   :  { %v2559_v32 = vmul.f32 0.0, %v2543_v21  ;;  %v2595_v23 = vmul.f32 %v2558_v51, %v2558_v51 }
 0xb81   :  { %v2571_v43 = vadd.f32 %v2570_v42, %v2556_v34  ;;  %v2593_v44 = vmul.f32 %v2556_v34, %v2556_v34  ;;  %v2607_v40 = vadd.f32 %v2606_v22, %v2592_v20  ;;  %v2557_v61 = vmul.f32 0.0, %v2541_v48 }
 0xb82   :  { %v2596_v49 = vmul.f32 %v2559_v32, %v2559_v32 }
 0xb83   :  { %v2608_v0 = vadd.f32 %v2607_v40, %v2593_v44  ;;  %v2572_v56 = vadd.f32 %v2571_v43, %v2557_v61  ;;  %v2594_v7 = vmul.f32 %v2557_v61, %v2557_v61  ;;  %v2623_v43 = vld [vmem:[%s5349_s21] sm:$0x1] }
 0xb84   :  { %v2627_v61 = vld [vmem:[%s5350_s22] sm:$0x1] }
 0xb85   :  { %v2573_v36 = vadd.f32 %v2572_v56, %v2558_v51  ;;  %v2609_v55 = vadd.f32 %v2608_v0, %v2594_v7 }
 0xb87   :  { %v2574_v59 = vadd.f32 %v2573_v36, %v2559_v32  ;;  %v2610_v11 = vadd.f32 %v2609_v55, %v2595_v23 }
 0xb89   :  { %v2575_v12 = vrot.slane %v2574_v59, 4  ;;  %v2611_v14 = vadd.f32 %v2610_v11, %v2596_v49 }
 0xb8b   :  { %v2576_v19 = vadd.f32 %v2575_v12, %v2574_v59  ;;  %v2612_v2 = vrot.slane %v2611_v14, 4 }
 0xb8d   :  { %v2577_v63 = vrot.slane %v2576_v19, 2  ;;  %v2613_v3 = vadd.f32 %v2612_v2, %v2611_v14 }
 0xb8f   :  { %v2578_v41 = vadd.f32 %v2577_v63, %v2576_v19  ;;  %v2614_v16 = vrot.slane %v2613_v3, 2 }
 0xb91   :  { %v2579_v29 = vrot.slane %v2578_v41, 1  ;;  %v2615_v30 = vadd.f32 %v2614_v16, %v2613_v3 }
 0xb93   :  { %v2580_v5 = vadd.f32 %v2579_v29, %v2578_v41  ;;  %v2616_v33 = vrot.slane %v2615_v30, 1 }
 0xb95   :  { %v2617_v37 = vadd.f32 %v2616_v33, %v2615_v30  ;;  %v2618_v27 = vmul.f32 0.0625, %v2580_v5  ;;  %v3829_v30 = vld [vmem:[#allocation32 + $0x10] sm:$0xff]   ;;  %v3830_v5 = vld [vmem:[#allocation32 + $0x18] sm:$0xff]   ;;  %v3831_v33 = vld [vmem:[#allocation32 + $0x20] sm:$0xff]  }
 0xb97   :  { %v2619_v20 = vmul.f32 0.0625, %v2617_v37  ;;  %v2620_v22 = vmul.f32 %v2618_v27, %v2618_v27  ;;  %v3832_v37 = vld [vmem:[#allocation32 + $0x28] sm:$0xff]  }
 0xb99   :  { %v2621_v34 = vsub.f32 %v2619_v20, %v2620_v22 }
 0xb9b   :  { %v2622_v42 = vmax.f32 %v2621_v34, 0.0 }
 0xb9d   :  { %v2624_v51 = vadd.f32 1e-05, %v2622_v42 }
 0xb9f   :  { %3839 = vrsqrt.f32 %v2624_v51  ;;  %v3833_v51 = vld [vmem:[#allocation32 + $0x30] sm:$0xff]  }
 0xba9   :  { %v3840_v44 = vpop.eup %3839 }
 0xbaa   :  { %v2626_v40 = vmul.f32 %v3840_v44, %v2623_v43  ;;  %v3834_v43 = vld [vmem:[#allocation32 + $0x38] sm:$0xff]  }
 0xbac   :  { %v2628_v0 = vmul.f32 %v2626_v40, %v2618_v27  ;;  %v2634_v32 = vrot.slane %v2626_v40, %v4895_v17  ;;  %v3069_v40 = vld [vmem:[%s5396_s24] ss:$0 sm:$0xff] }
 0xbae   :  { %v2629_v56 = vsub.f32 %v2627_v61, %v2628_v0  ;;  %v2648_v7 = vmul.f32 %v2634_v32, %v2540_v54  ;;  %v2649_v23 = vmul.f32 %v2634_v32, %v2541_v48  ;;  %v2636_v36 = vmul.f32 %v2634_v32, %v5177_v46 }
 0xbaf   :  { %v2637_v55 = vmul.f32 %v2634_v32, %v5183_v10  ;;  %v2638_v49 = vmul.f32 %v2634_v32, %v2530_v62  ;;  %v2639_v59 = vmul.f32 %v2634_v32, %v2531_v8  ;;  %v2640_v11 = vmul.f32 %v2634_v32, %v2532_v39 }
 0xbb0   :  { %v2656_v12 = vrot.slane %v2629_v56, %v4895_v17  ;;  %v2641_v14 = vmul.f32 %v2634_v32, %v2533_v6  ;;  %v2642_v54 = vmul.f32 %v2634_v32, %v2534_v35  ;;  %v2643_v46 = vmul.f32 %v2634_v32, %v2535_v28 }
 0xbb1   :  { %v2644_v31 = vmul.f32 %v2634_v32, %v2536_v13  ;;  %v2645_v62 = vmul.f32 %v2634_v32, %v2537_v52  ;;  %v2646_v53 = vmul.f32 %v2634_v32, %v2538_v1  ;;  %v2647_v17 = vmul.f32 %v2634_v32, %v2539_v50 }
 0xbb2   :  { %v2670_v8 = vadd.f32 %v2656_v12, %v2648_v7  ;;  %v2671_v10 = vadd.f32 %v2656_v12, %v2649_v23  ;;  %v2658_v26 = vadd.f32 %v2656_v12, %v2636_v36  ;;  %v2659_v4 = vadd.f32 %v2656_v12, %v2637_v55  ;;  %v3070_v55 = vld [vmem:[%s5397_s23] ss:$0 sm:$0xff] }
 0xbb3   :  { %v2660_v35 = vadd.f32 %v2656_v12, %v2638_v49  ;;  %v2661_v39 = vadd.f32 %v2656_v12, %v2639_v59  ;;  %v2662_v15 = vadd.f32 %v2656_v12, %v2640_v11  ;;  %v2663_v47 = vadd.f32 %v2656_v12, %v2641_v14 }
 0xbb4   :  { %v2680_v28 = vpack.c.bf16 %v2671_v10, %v2670_v8  ;;  %v2674_v6 = vpack.c.bf16 %v2659_v4, %v2658_v26  ;;  %v2664_v18 = vadd.f32 %v2656_v12, %v2642_v54  ;;  %v2665_v13 = vadd.f32 %v2656_v12, %v2643_v46 }
 0xbb5   :  { %v2675_v25 = vpack.c.bf16 %v2661_v39, %v2660_v35  ;;  %v2676_v52 = vpack.c.bf16 %v2663_v47, %v2662_v15  ;;  %v2666_v48 = vadd.f32 %v2656_v12, %v2644_v31  ;;  %v2667_v24 = vadd.f32 %v2656_v12, %v2645_v62 }
 0xbb6   :  { %3655 = vmatpush3.bf16.msra.mxu1 %v2674_v6  ;;  %v2677_v1 = vpack.c.bf16 %v2665_v13, %v2664_v18  ;;  %v2668_v57 = vadd.f32 %v2656_v12, %v2646_v53  ;;  %v2669_v50 = vadd.f32 %v2656_v12, %v2647_v17  ;;  %v2650_v19 = vmul.f32 %v2634_v32, %v2542_v9  ;;  %v3826_v9 = vld [vmem:[#allocation31 + $0x38] sm:$0xff]  }
 0xbb7   :  { %3656 = vmatprep.subr.bf16.mxu1 %v4358_v58  ;;  %v2678_v2 = vpack.c.bf16 %v2667_v24, %v2666_v48  ;;  %v2651_v63 = vmul.f32 %v2634_v32, %v2543_v21  ;;  %3689 = vmatpush3.bf16.msra.mxu0 %v3826_v9  ;;  %v3828_v21 = vld [vmem:[#allocation32 + $0x8] sm:$0xff]  }
 0xbb8   :  { %v2679_v3 = vpack.c.bf16 %v2669_v50, %v2668_v57  ;;  %v2672_v41 = vadd.f32 %v2656_v12, %v2650_v19 }
 0xbb9   :  { %v2673_v16 = vadd.f32 %v2656_v12, %v2651_v63 }
 0xbba   :  { %3657 = vmatpush3.bf16.msra.mxu1 %v2675_v25 }
 0xbbb   :  { %3658 = vmatprep.subr.bf16.mxu1 %v4358_v58  ;;  %v2681_v29 = vpack.c.bf16 %v2673_v16, %v2672_v41 }
 0xbbe   :  { %3659 = vmatpush3.bf16.msra.mxu1 %v2676_v52 }
 0xbbf   :  { %3660 = vmatprep.subr.bf16.mxu1 %v4358_v58 }
 0xbc2   :  { %3661 = vmatpush3.bf16.msra.mxu1 %v2677_v1 }
 0xbc3   :  { %3662 = vmatprep.subr.bf16.mxu1 %v4358_v58 }
 0xbc6   :  { %3663 = vmatpush3.bf16.msra.mxu1 %v2678_v2 }
 0xbc7   :  { %3664 = vmatprep.subr.bf16.mxu1 %v4358_v58 }
 0xbca   :  { %3665 = vmatpush3.bf16.msra.mxu1 %v2679_v3 }
 0xbcb   :  { %3666 = vmatprep.subr.bf16.mxu1 %v4358_v58 }
 0xbce   :  { %3667 = vmatpush3.bf16.msra.mxu1 %v2680_v28 }
 0xbcf   :  { %3668 = vmatprep.subr.bf16.mxu1 %v4358_v58 }
 0xbd2   :  { %3669 = vmatpush3.bf16.msra.mxu1 %v2681_v29 }
 0xbd3   :  { %3694 = vmatprep.subr.bf16.mxu1 %v4358_v58 }
 0xbd5   :  { %3671 = vmatmul.mubr.bf16.vlgmr.msra.gmra.mrb[60].mxu1 %v3849_v60 }
 0xbd6   :  { %3710 = vmatprep.mubr.msk.bf16.mxu1 %vm4359_vm0, %v4358_v58  ;;  %3695 = vmatpush3.bf16.msra.mxu1 %v3827_v45 }
 0xbd7   :  { %3696 = vmatprep.subr.bf16.mxu1 %v4358_v58 }
 0xbda   :  { %3697 = vmatpush3.bf16.msra.mxu1 %v3828_v21 }
 0xbdb   :  { %3698 = vmatprep.subr.bf16.mxu1 %v4358_v58 }
 0xbde   :  { %3699 = vmatpush3.bf16.msra.mxu1 %v3829_v30 }
 0xbdf   :  { %3700 = vmatprep.subr.bf16.mxu1 %v4358_v58 }
 0xbe2   :  { %3701 = vmatpush3.bf16.msra.mxu1 %v3830_v5 }
 0xbe3   :  { %3702 = vmatprep.subr.bf16.mxu1 %v4358_v58 }
 0xbe6   :  { %3703 = vmatpush3.bf16.msra.mxu1 %v3831_v33 }
 0xbe7   :  { %3704 = vmatprep.subr.bf16.mxu1 %v4358_v58 }
 0xbea   :  { %3705 = vmatpush3.bf16.msra.mxu1 %v3832_v37 }
 0xbeb   :  { %3706 = vmatprep.subr.bf16.mxu1 %v4358_v58 }
 0xbee   :  { %3707 = vmatpush3.bf16.msra.mxu1 %v3833_v51 }
 0xbef   :  { %3708 = vmatprep.subr.bf16.mxu1 %v4358_v58 }
 0xbf2   :  { %3709 = vmatpush3.bf16.msra.mxu1 %v3834_v43 }
 0xca8   :  { %v2716_v27 = vpop.f32.mrb[60].mxu1 }
 0xca9   :  { %v2722_v20 = vpack.c.bf16 %v2716_v27, %v2716_v27  ;;  %v3672_v22 = vpop.f32.mrb[61].mxu1 }
 0xcaa   :  { %v2719_v34 = vpop.f32.mrb[62].mxu1 }
 0xcab   :  { %v3673_v42 = vpop.f32.mrb[63].mxu1  ;;  %3691 = vmatmul.mubr.bf16.vlgmr.msra.gmra.mrb[100].mxu0 %v2722_v20 }
 0xd7e   :  { %v2821_v44 = vpop.f32.mrb[100].mxu0 }
 0xd7f   :  { %v2827_v61 = vadd.f32 %v2821_v44, %v5150_v38  ;;  %v3692_v0 = vpop.f32.mrb[101].mxu0 }
 0xd80   :  { %v2824_v32 = vpop.f32.mrb[102].mxu0 }
 0xd81   :  { %v2835_v56 = vadd.f32 %v3069_v40, %v2827_v61  ;;  %v3693_v7 = vpop.f32.mrb[103].mxu0 }
 0xd83   :  { %v2836_v23 = vmax.f32 %v2835_v56, 0.0 }
 0xd85   :  { %v2837_v36 = vpack.c.bf16 %v2836_v23, %v2836_v23 }
 0xd87   :  { %3711 = vmatmul.mubr.bf16.vlgmr.msra.gmra.mrb[64].mxu1 %v2837_v36 }
 0xe5a   :  { %v2943_v58 = vpop.f32.mrb[64].mxu1 }
 0xe5b   :  { %v2944_v49 = vadd.f32 %v3070_v55, %v2943_v58  ;;  %v3712_v59 = vpop.f32.mrb[65].mxu1 }
 0xe5c   :  { %v2946_v11 = vpop.f32.mrb[66].mxu1 }
 0xe5d   :  { %2949 = vst [vmem:[#allocation34] sm:$0xff] %v2944_v49  ;;  %v3713_v38 = vpop.f32.mrb[67].mxu1 }
 0xe5e   :  { %4301 = shalt.err (!%p4298_p10)
}
 0xe5f   :  { %s5398_s30 = sld [smem:[#allocation61_spill]] }
 0xe65   :  { %s4302_s2 = scalar_lea.hbm %s5398_s30, 128 }
 0xe66   :  { %p4303_p11 = scmp.ne.s32.totalorder %s5398_s30, %s4302_s2  ;;  %p4306_p12 = scmp.lt.u32.totalorder %s4302_s2, %s5398_s30 }
 0xe68   :  { %p4308_p13 = pnand %p4306_p12, %p4303_p11 }
 0xe6a   :  { %4311 = shalt.err (!%p4308_p13)
}
 0xe6b   :  { %2959 = dma.vmem_to_hbm [thread:$0]  %s2957_s25, 128, %s5398_s30, [#allocation4]  }
 0xe6c   :  { %4334 = dma.done.wait [#allocation4], 128  }
 0xe6d   :  { %4335 = vsyncadd [#allocation4], 4294967168 }
 0xe6e   :  { %2963 = vsyncpa [#allocation3], 1 }
 0xe6f   :  { %2964 = vsyncpa [#allocation6], 1 }
 0xe70   :  { %2965 = vsyncpa [#allocation9], 1 }
 0xe71   :  { %2966 = vsyncpa [#allocation12], 1 }
 0xe72   :  { %2967 = vsyncpa [#allocation15], 1 }
 0xe73   :  { %2968 = vsyncpa [#allocation18], 1 }
 0xe74   :  { %2969 = vsyncpa [#allocation21], 1 }
 0xe75   :  { %2970 = vsyncpa [#allocation24], 1 }
 0xe76   :  { %2971 = vsyncpa [#allocation27], 1 }
 0xe77   :  { %2972 = vsyncpa [#allocation30], 1 }
 0xe78   :  { %2973 = vsyncpa [#allocation33], 1 }
 0xe79   :  { %2974 = vsyncpa [#allocation4], 1 }

</bundles_post_ra>
